<compile_context>
chip_gen: v5e
topology: v5e:2x2
jax: 0.10.0
libtpu: 0.0.40
codegen_flags: <defaults>
</compile_context>

<pallas_src>
import math
import functools

import jax
import jax.numpy as jnp
from jax.experimental import pallas as pl
from jax.experimental.pallas import tpu as pltpu


# ----------------------------------------------------------------------------
# Tiling helper
# ----------------------------------------------------------------------------
def _pick_tile(dim, target, align):
    """Largest tile <= target that divides `dim` and is a multiple of `align`;
    falls back to the full dim (always a legal block shape)."""
    if dim <= target:
        return dim
    t = (target // align) * align
    while t >= align:
        if dim % t == 0:
            return t
        t -= align
    return dim


# ----------------------------------------------------------------------------
# In-kernel LayerNorm helper (f32 math, torch semantics: unbiased std, eps on
# the std, scalar gamma/beta broadcast to lane-dense rows).
# ----------------------------------------------------------------------------
def _ln_f32(x_f32, gb, eps, feature_dim):
    mean = jnp.mean(x_f32, axis=-1, keepdims=True)
    xc = x_f32 - mean
    var = jnp.sum(xc * xc, axis=-1, keepdims=True) * (1.0 / (feature_dim - 1))
    std = jnp.sqrt(var)
    return gb[0:1, :] * (xc / (std + eps)) + gb[1:2, :]


# ----------------------------------------------------------------------------
# Linear (x @ W + b [+ residual]) kernels — bf16 MXU inputs, f32 accumulation,
# K tiled as a reduction grid axis.
# ----------------------------------------------------------------------------
def _linear_kernel(x_ref, w_ref, b_ref, o_ref, acc_ref):
    k = pl.program_id(2)

    @pl.when(k == 0)
    def _():
        acc_ref[...] = jnp.zeros_like(acc_ref)

    acc_ref[...] += jnp.dot(x_ref[...].astype(jnp.bfloat16),
                            w_ref[...].astype(jnp.bfloat16),
                            preferred_element_type=jnp.float32)

    @pl.when(k == pl.num_programs(2) - 1)
    def _():
        o_ref[...] = (acc_ref[...] + b_ref[...].astype(jnp.float32)
                      ).astype(o_ref.dtype)


def _linear_residual_kernel(x_ref, w_ref, b_ref, r_ref, o_ref, acc_ref):
    k = pl.program_id(2)

    @pl.when(k == 0)
    def _():
        acc_ref[...] = jnp.zeros_like(acc_ref)

    acc_ref[...] += jnp.dot(x_ref[...].astype(jnp.bfloat16),
                            w_ref[...].astype(jnp.bfloat16),
                            preferred_element_type=jnp.float32)

    @pl.when(k == pl.num_programs(2) - 1)
    def _():
        o_ref[...] = (acc_ref[...] + b_ref[...].astype(jnp.float32)
                      + r_ref[...].astype(jnp.float32)).astype(o_ref.dtype)


def linear_pallas(x, w, b, residual=None, out_dtype=jnp.float32):
    """x: (M, K) bf16; w: (K, N) bf16 (pre-transposed); b: (1, N) f32."""
    M, K = x.shape
    _, N = w.shape
    tm = _pick_tile(M, 256, 16)
    tn = _pick_tile(N, 256, 128)
    tk = _pick_tile(K, 512, 128)
    grid = (M // tm, N // tn, K // tk)

    in_specs = [
        pl.BlockSpec((tm, tk), lambda i, j, k: (i, k)),
        pl.BlockSpec((tk, tn), lambda i, j, k: (k, j)),
        pl.BlockSpec((1, tn), lambda i, j, k: (0, j)),
    ]
    args = [x, w, b]
    if residual is not None:
        in_specs.append(pl.BlockSpec((tm, tn), lambda i, j, k: (i, j)))
        args.append(residual)
        kernel = _linear_residual_kernel
    else:
        kernel = _linear_kernel

    return pl.pallas_call(
        kernel,
        out_shape=jax.ShapeDtypeStruct((M, N), out_dtype),
        grid_spec=pltpu.PrefetchScalarGridSpec(
            num_scalar_prefetch=0,
            grid=grid,
            in_specs=in_specs,
            out_specs=pl.BlockSpec((tm, tn), lambda i, j, k: (i, j)),
            scratch_shapes=[pltpu.VMEM((tm, tn), jnp.float32)],
        ),
        compiler_params=pltpu.CompilerParams(
            dimension_semantics=("parallel", "parallel", "arbitrary")),
    )(*args)


# ----------------------------------------------------------------------------
# Fused LayerNorm + linear projection: y = LN(x) @ W + b  (no K tiling; the x
# tile spans the full feature dim so the norm is computed on the resident tile)
# ----------------------------------------------------------------------------
def _ln_linear_kernel(x_ref, gb_ref, w_ref, b_ref, o_ref, *, eps, feature_dim):
    xn = _ln_f32(x_ref[...].astype(jnp.float32), gb_ref[...], eps, feature_dim)
    y = jnp.dot(xn.astype(jnp.bfloat16), w_ref[...],
                preferred_element_type=jnp.float32) + b_ref[...].astype(jnp.float32)
    o_ref[...] = y.astype(o_ref.dtype)


def ln_linear_pallas(x, gamma_beta, w, b, *, eps, out_dtype=jnp.bfloat16):
    """x: (M, D) f32 residual stream; gamma_beta: (2, D); w: (D, N) bf16."""
    M, D = x.shape
    _, N = w.shape
    tm = _pick_tile(M, 128, 16)
    tn = _pick_tile(N, 256, 128)
    grid = (M // tm, N // tn)
    kernel = functools.partial(_ln_linear_kernel, eps=eps, feature_dim=D)
    return pl.pallas_call(
        kernel,
        out_shape=jax.ShapeDtypeStruct((M, N), out_dtype),
        grid_spec=pltpu.PrefetchScalarGridSpec(
            num_scalar_prefetch=0,
            grid=grid,
            in_specs=[
                pl.BlockSpec((tm, D), lambda i, j: (i, 0)),
                pl.BlockSpec((2, D), lambda i, j: (0, 0)),
                pl.BlockSpec((D, tn), lambda i, j: (0, j)),
                pl.BlockSpec((1, tn), lambda i, j: (0, j)),
            ],
            out_specs=pl.BlockSpec((tm, tn), lambda i, j: (i, j)),
        ),
        compiler_params=pltpu.CompilerParams(
            dimension_semantics=("parallel", "parallel")),
    )(x, gamma_beta, w, b)


# ----------------------------------------------------------------------------
# Flash attention kernel: head-major (H, tq, d_k) tiles, batched over heads,
# online softmax, additive mask bias computed once per tile.
# ----------------------------------------------------------------------------
def _flash_mha_kernel(q_ref, k_ref, v_ref, mask_ref, o_ref,
                      m_scr, l_scr, acc_scr):
    ki = pl.program_id(2)

    @pl.when(ki == 0)
    def _():
        m_scr[...] = jnp.full_like(m_scr, -jnp.inf)
        l_scr[...] = jnp.zeros_like(l_scr)
        acc_scr[...] = jnp.zeros_like(acc_scr)

    q = q_ref[0]                                      # (H, tq, d_k) bf16 (pre-scaled)
    k = k_ref[0]                                      # (H, tk, d_k) bf16
    v = v_ref[0]                                      # (H, tk, d_k) bf16

    # Batched QK^T over heads: (H, tq, tk), f32 accumulation on the MXU.
    s = jnp.einsum('hqd,hkd->hqk', q, k, preferred_element_type=jnp.float32)

    # masked_fill_ semantics as an additive bias, computed once per tile and
    # broadcast over heads (and over q rows when the mask is (1, tk)).
    mask_t = mask_ref[0, 0]                           # (mq, tk) int32
    bias = jnp.where(mask_t == 0, jnp.float32(-1e9), jnp.float32(0.0))
    s = s + bias[None]

    m_prev = m_scr[...]                               # (H, tq, 1)
    m_new = jnp.maximum(m_prev, jnp.max(s, axis=-1, keepdims=True))
    alpha = jnp.exp(m_prev - m_new)
    p = jnp.exp(s - m_new)                            # f32
    l_scr[...] = alpha * l_scr[...] + jnp.sum(p, axis=-1, keepdims=True)
    pv = jnp.einsum('hqk,hkd->hqd', p.astype(jnp.bfloat16), v,
                    preferred_element_type=jnp.float32)
    acc_scr[...] = alpha * acc_scr[...] + pv
    m_scr[...] = m_new

    @pl.when(ki == pl.num_programs(2) - 1)
    def _():
        inv = pl.reciprocal(l_scr[...], approx=True)  # EUP slot
        o_ref[0] = (acc_scr[...] * inv).astype(o_ref.dtype)


def flash_attention_pallas(q, k, v, mask, *, out_dtype=jnp.bfloat16):
    """q: (B, H, Sq, d_k); k, v: (B, H, Sk, d_k); mask: (B|1, 1, Sq|1, Sk) int32."""
    B, H, Sq, dk = q.shape
    _, _, Sk, _ = k.shape
    mb, _, mq_dim, _ = mask.shape

    tq = _pick_tile(Sq, 128, 16)
    tk = _pick_tile(Sk, 256, 128)
    grid = (B, Sq // tq, Sk // tk)

    batch_bcast = (mb == 1)
    q_bcast = (mq_dim != Sq)
    mq = 1 if q_bcast else tq

    def mask_map(b, qi, ki):
        return (0 if batch_bcast else b, 0, 0 if q_bcast else qi, ki)

    return pl.pallas_call(
        _flash_mha_kernel,
        out_shape=jax.ShapeDtypeStruct((B, H, Sq, dk), out_dtype),
        grid_spec=pltpu.PrefetchScalarGridSpec(
            num_scalar_prefetch=0,
            grid=grid,
            in_specs=[
                pl.BlockSpec((1, H, tq, dk), lambda b, qi, ki: (b, 0, qi, 0)),
                pl.BlockSpec((1, H, tk, dk), lambda b, qi, ki: (b, 0, ki, 0)),
                pl.BlockSpec((1, H, tk, dk), lambda b, qi, ki: (b, 0, ki, 0)),
                pl.BlockSpec((1, 1, mq, tk), mask_map),
            ],
            out_specs=pl.BlockSpec((1, H, tq, dk), lambda b, qi, ki: (b, 0, qi, 0)),
            scratch_shapes=[
                pltpu.VMEM((H, tq, 1), jnp.float32),    # running max
                pltpu.VMEM((H, tq, 1), jnp.float32),    # running denom
                pltpu.VMEM((H, tq, dk), jnp.float32),   # output accumulator
            ],
        ),
        compiler_params=pltpu.CompilerParams(
            dimension_semantics=("parallel", "parallel", "arbitrary"),
            vmem_limit_bytes=32 * 1024 * 1024),
    )(q, k, v, mask)


# ----------------------------------------------------------------------------
# Fused LayerNorm + FFN kernel: relu(LN(x)@W1+b1)@W2 + b2 + x, with d_ff tiled
# as a reduction grid axis (accumulator in VMEM, weights streamed in chunks).
# The resident x tile doubles as the residual (no extra DMA).
# ----------------------------------------------------------------------------
def _ln_ffn_kernel(x_ref, gb_ref, w1_ref, b1_ref, w2_ref, b2_ref, o_ref,
                   xn_scr, acc_ref, *, eps, feature_dim):
    k = pl.program_id(1)

    @pl.when(k == 0)
    def _():
        xn = _ln_f32(x_ref[...].astype(jnp.float32), gb_ref[...], eps, feature_dim)
        xn_scr[...] = xn.astype(jnp.bfloat16)
        acc_ref[...] = jnp.zeros_like(acc_ref)

    h = jnp.dot(xn_scr[...], w1_ref[...],
                preferred_element_type=jnp.float32) + b1_ref[...].astype(jnp.float32)
    h = jnp.maximum(h, 0.0)
    acc_ref[...] += jnp.dot(h.astype(jnp.bfloat16), w2_ref[...],
                            preferred_element_type=jnp.float32)

    @pl.when(k == pl.num_programs(1) - 1)
    def _():
        o_ref[...] = (acc_ref[...] + b2_ref[...].astype(jnp.float32)
                      + x_ref[...].astype(jnp.float32)).astype(o_ref.dtype)


def ln_ffn_pallas(x, gamma_beta, w1, b1, w2, b2, *, eps, out_dtype=jnp.float32):
    """x: (M, D) f32 residual stream; w1: (D, d_ff) bf16; w2: (d_ff, D) bf16."""
    M, D = x.shape
    _, d_ff = w1.shape
    tm = _pick_tile(M, 128, 16)
    tf = _pick_tile(d_ff, 512, 128)
    grid = (M // tm, d_ff // tf)
    kernel = functools.partial(_ln_ffn_kernel, eps=eps, feature_dim=D)
    return pl.pallas_call(
        kernel,
        out_shape=jax.ShapeDtypeStruct((M, D), out_dtype),
        grid_spec=pltpu.PrefetchScalarGridSpec(
            num_scalar_prefetch=0,
            grid=grid,
            in_specs=[
                pl.BlockSpec((tm, D), lambda i, k: (i, 0)),
                pl.BlockSpec((2, D), lambda i, k: (0, 0)),
                pl.BlockSpec((D, tf), lambda i, k: (0, k)),
                pl.BlockSpec((1, tf), lambda i, k: (0, k)),
                pl.BlockSpec((tf, D), lambda i, k: (k, 0)),
                pl.BlockSpec((1, D), lambda i, k: (0, 0)),
            ],
            out_specs=pl.BlockSpec((tm, D), lambda i, k: (i, 0)),
            scratch_shapes=[
                pltpu.VMEM((tm, D), jnp.bfloat16),     # normalized x, computed once
                pltpu.VMEM((tm, D), jnp.float32),      # second-matmul accumulator
            ],
        ),
        compiler_params=pltpu.CompilerParams(
            dimension_semantics=("parallel", "arbitrary"),
            vmem_limit_bytes=32 * 1024 * 1024),
    )(x, gamma_beta, w1, b1, w2, b2)


# ----------------------------------------------------------------------------
# Standalone LayerNormalization kernel (final Decoder norm only)
# ----------------------------------------------------------------------------
def _layernorm_kernel(x_ref, gb_ref, o_ref, *, eps, feature_dim):
    y = _ln_f32(x_ref[...].astype(jnp.float32), gb_ref[...], eps, feature_dim)
    o_ref[...] = y.astype(o_ref.dtype)


def layernorm_pallas(x, gamma_beta, *, eps, out_dtype=jnp.float32):
    M, D = x.shape
    tm = _pick_tile(M, 512, 16)
    grid = (M // tm,)
    kernel = functools.partial(_layernorm_kernel, eps=eps, feature_dim=D)
    return pl.pallas_call(
        kernel,
        out_shape=jax.ShapeDtypeStruct((M, D), out_dtype),
        grid_spec=pltpu.PrefetchScalarGridSpec(
            num_scalar_prefetch=0,
            grid=grid,
            in_specs=[
                pl.BlockSpec((tm, D), lambda i: (i, 0)),
                pl.BlockSpec((2, D), lambda i: (0, 0)),
            ],
            out_specs=pl.BlockSpec((tm, D), lambda i: (i, 0)),
        ),
        compiler_params=pltpu.CompilerParams(
            dimension_semantics=("parallel",)),
    )(x, gamma_beta)


# ----------------------------------------------------------------------------
# Parameter preparation (done once): transpose to (in, out), fuse QKV / KV,
# fold 1/sqrt(d_k) into W_q / b_q, cast weights to bf16, broadcast scalar norm
# params to lane-dense rows.
# ----------------------------------------------------------------------------
def _norm_param(gamma, beta, d):
    return jnp.concatenate([jnp.broadcast_to(gamma, (1, d)),
                            jnp.broadcast_to(beta, (1, d))], axis=0).astype(jnp.float32)


def prepare_decoder_params(raw_layers, final_gamma, final_beta, d_model, num_heads):
    d_k = d_model // num_heads
    scale = 1.0 / math.sqrt(d_k)
    layers = []
    for r in raw_layers:
        p = {}
        p["sa_wqkv"] = jnp.concatenate(
            [r["sa_q_w"].T * scale, r["sa_k_w"].T, r["sa_v_w"].T],
            axis=1).astype(jnp.bfloat16)
        p["sa_bqkv"] = jnp.concatenate(
            [r["sa_q_b"] * scale, r["sa_k_b"], r["sa_v_b"]]
        ).reshape(1, -1).astype(jnp.float32)
        p["sa_wo"] = r["sa_o_w"].T.astype(jnp.bfloat16)
        p["sa_bo"] = r["sa_o_b"].reshape(1, -1).astype(jnp.float32)

        p["ca_wq"] = (r["ca_q_w"].T * scale).astype(jnp.bfloat16)
        p["ca_bq"] = (r["ca_q_b"] * scale).reshape(1, -1).astype(jnp.float32)
        p["ca_wkv"] = jnp.concatenate(
            [r["ca_k_w"].T, r["ca_v_w"].T], axis=1).astype(jnp.bfloat16)
        p["ca_bkv"] = jnp.concatenate(
            [r["ca_k_b"], r["ca_v_b"]]).reshape(1, -1).astype(jnp.float32)
        p["ca_wo"] = r["ca_o_w"].T.astype(jnp.bfloat16)
        p["ca_bo"] = r["ca_o_b"].reshape(1, -1).astype(jnp.float32)

        p["ff_w1"] = r["ff1_w"].T.astype(jnp.bfloat16)
        p["ff_b1"] = r["ff1_b"].reshape(1, -1).astype(jnp.float32)
        p["ff_w2"] = r["ff2_w"].T.astype(jnp.bfloat16)
        p["ff_b2"] = r["ff2_b"].reshape(1, -1).astype(jnp.float32)

        for i in (1, 2, 3):
            p[f"norm{i}"] = _norm_param(r[f"norm{i}_g"], r[f"norm{i}_b"], d_model)
        layers.append(p)
    return {"layers": layers,
            "final_norm": _norm_param(final_gamma, final_beta, d_model)}


# ----------------------------------------------------------------------------
# Decoder forward (Pallas building blocks + thin JAX glue)
# ----------------------------------------------------------------------------
def decoder_forward(params, x, encoder_output, src_mask, target_mask,
                    *, num_heads, eps=1e-6):
    B, St, D = x.shape
    _, Ss, _ = encoder_output.shape
    H = num_heads
    dk = D // H

    tgt_mask = target_mask.astype(jnp.int32)          # native shape, no broadcast_to
    srcm = src_mask.astype(jnp.int32)                 # native (B,1,1,Ss)

    x2d = x.reshape(B * St, D).astype(jnp.float32)    # f32 residual stream
    enc2d = encoder_output.reshape(B * Ss, D).astype(jnp.bfloat16)

    for lyr in params["layers"]:
        # --- masked self-attention sublayer: x = x + SelfAttn(norm1(x)) ---
        qkv = ln_linear_pallas(x2d, lyr["norm1"], lyr["sa_wqkv"], lyr["sa_bqkv"],
                               eps=eps, out_dtype=jnp.bfloat16)       # (B*St, 3D)
        qkv_h = qkv.reshape(B, St, 3, H, dk).transpose(2, 0, 3, 1, 4)  # (3,B,H,St,dk)
        attn = flash_attention_pallas(qkv_h[0], qkv_h[1], qkv_h[2], tgt_mask)
        attn2d = attn.transpose(0, 2, 1, 3).reshape(B * St, D)
        x2d = linear_pallas(attn2d, lyr["sa_wo"], lyr["sa_bo"],
                            residual=x2d, out_dtype=jnp.float32)

        # --- cross-attention sublayer: x = x + CrossAttn(norm2(x), enc_out) ---
        q = ln_linear_pallas(x2d, lyr["norm2"], lyr["ca_wq"], lyr["ca_bq"],
                             eps=eps, out_dtype=jnp.bfloat16)
        q_h = q.reshape(B, St, H, dk).transpose(0, 2, 1, 3)            # (B,H,St,dk)
        kv = linear_pallas(enc2d, lyr["ca_wkv"], lyr["ca_bkv"],
                           out_dtype=jnp.bfloat16)                     # (B*Ss, 2D)
        kv_h = kv.reshape(B, Ss, 2, H, dk).transpose(2, 0, 3, 1, 4)    # (2,B,H,Ss,dk)
        attn = flash_attention_pallas(q_h, kv_h[0], kv_h[1], srcm)
        attn2d = attn.transpose(0, 2, 1, 3).reshape(B * St, D)
        x2d = linear_pallas(attn2d, lyr["ca_wo"], lyr["ca_bo"],
                            residual=x2d, out_dtype=jnp.float32)

        # --- feed-forward sublayer: x = x + FFN(norm3(x)) ---
        x2d = ln_ffn_pallas(x2d, lyr["norm3"], lyr["ff_w1"], lyr["ff_b1"],
                            lyr["ff_w2"], lyr["ff_b2"], eps=eps)

    out2d = layernorm_pallas(x2d, params["final_norm"], eps=eps)
    return out2d.reshape(B, St, D)


# ----------------------------------------------------------------------------
# Pure-JAX (f32) reference mirroring the PyTorch forward
# ----------------------------------------------------------------------------
def _ref_layernorm(x, gamma, beta, eps):
    mean = jnp.mean(x, axis=-1, keepdims=True)
    std = jnp.std(x, axis=-1, keepdims=True, ddof=1)
    return gamma * ((x - mean) / (std + eps)) + beta


def _ref_mha(q, k, v, mask, w, num_heads):
    B, Sq, D = q.shape
    d_k = D // num_heads
    lin = lambda x, W, b: x @ W.T + b
    Q = lin(q, w["q_w"], w["q_b"]).reshape(B, Sq, num_heads, d_k).transpose(0, 2, 1, 3)
    K = lin(k, w["k_w"], w["k_b"]).reshape(B, -1, num_heads, d_k).transpose(0, 2, 1, 3)
    V = lin(v, w["v_w"], w["v_b"]).reshape(B, -1, num_heads, d_k).transpose(0, 2, 1, 3)
    scores = jnp.einsum("bhqd,bhkd->bhqk", Q, K) / math.sqrt(d_k)
    scores = jnp.where(mask == 0, -1e9, scores)
    attn = jax.nn.softmax(scores, axis=-1)
    out = jnp.einsum("bhqk,bhkd->bhqd", attn, V)
    out = out.transpose(0, 2, 1, 3).reshape(B, Sq, D)
    return lin(out, w["o_w"], w["o_b"])


def reference_decoder(raw_layers, final_gamma, final_beta, x, enc, src_mask,
                      tgt_mask, *, num_heads, eps=1e-6):
    for r in raw_layers:
        xn = _ref_layernorm(x, r["norm1_g"], r["norm1_b"], eps)
        sa = {"q_w": r["sa_q_w"], "q_b": r["sa_q_b"], "k_w": r["sa_k_w"],
              "k_b": r["sa_k_b"], "v_w": r["sa_v_w"], "v_b": r["sa_v_b"],
              "o_w": r["sa_o_w"], "o_b": r["sa_o_b"]}
        x = x + _ref_mha(xn, xn, xn, tgt_mask, sa, num_heads)
        xn = _ref_layernorm(x, r["norm2_g"], r["norm2_b"], eps)
        ca = {"q_w": r["ca_q_w"], "q_b": r["ca_q_b"], "k_w": r["ca_k_w"],
              "k_b": r["ca_k_b"], "v_w": r["ca_v_w"], "v_b": r["ca_v_b"],
              "o_w": r["ca_o_w"], "o_b": r["ca_o_b"]}
        x = x + _ref_mha(xn, enc, enc, src_mask, ca, num_heads)
        xn = _ref_layernorm(x, r["norm3_g"], r["norm3_b"], eps)
        h = jnp.maximum(xn @ r["ff1_w"].T + r["ff1_b"], 0.0)
        x = x + (h @ r["ff2_w"].T + r["ff2_b"])
    return _ref_layernorm(x, final_gamma, final_beta, eps)


# ----------------------------------------------------------------------------
# Test
# ----------------------------------------------------------------------------
if __name__ == "__main__":
    B, S_tgt, S_src = 2, 8, 16
    d_model, num_heads, d_ff, num_layers = 32, 4, 64, 2
    eps = 1e-6

    keys = iter(jax.random.split(jax.random.PRNGKey(0), 256))
    nk = lambda: next(keys)

    def linear_init(fan_in, fan_out):
        bound = 1.0 / math.sqrt(fan_in)
        w = jax.random.uniform(nk(), (fan_out, fan_in), jnp.float32, -bound, bound)
        b = jax.random.uniform(nk(), (fan_out,), jnp.float32, -bound, bound)
        return w, b

    def norm_init():
        g = jax.random.uniform(nk(), (), jnp.float32, 0.5, 1.5)
        bta = jax.random.uniform(nk(), (), jnp.float32, -0.5, 0.5)
        return g, bta

    raw_layers = []
    for _ in range(num_layers):
        r = {}
        for nm in ("sa_q", "sa_k", "sa_v", "sa_o", "ca_q", "ca_k", "ca_v", "ca_o"):
            r[nm + "_w"], r[nm + "_b"] = linear_init(d_model, d_model)
        r["ff1_w"], r["ff1_b"] = linear_init(d_model, d_ff)
        r["ff2_w"], r["ff2_b"] = linear_init(d_ff, d_model)
        for i in (1, 2, 3):
            r[f"norm{i}_g"], r[f"norm{i}_b"] = norm_init()
        raw_layers.append(r)
    final_g, final_b = norm_init()

    params = prepare_decoder_params(raw_layers, final_g, final_b, d_model, num_heads)

    x = jax.random.normal(nk(), (B, S_tgt, d_model), jnp.float32)
    enc = jax.random.normal(nk(), (B, S_src, d_model), jnp.float32)
    # target mask: causal (1,1,S_tgt,S_tgt), broadcast over batch in the kernel;
    # src mask: all-ones (B,1,1,S_src)
    tgt_mask = jnp.tril(jnp.ones((S_tgt, S_tgt), jnp.int32))[None, None]
    src_mask = jnp.ones((B, 1, 1, S_src), jnp.int32)

    fwd = jax.jit(functools.partial(decoder_forward, num_heads=num_heads, eps=eps))
    out = jax.block_until_ready(fwd(params, x, enc, src_mask, tgt_mask))

    ref = reference_decoder(raw_layers, final_g, final_b, x, enc, src_mask, tgt_mask,
                            num_heads=num_heads, eps=eps)

    assert out.shape == (B, S_tgt, d_model)
    err = float(jnp.max(jnp.abs(out - ref)))
    assert err < 5e-2, f"max abs error {err} vs pure-JAX reference"

    print("KERNEL_OK")
</pallas_src>

<mosaic_0001>
module attributes {stable_mosaic.version = 11 : i64} {
  func.func @_ln_linear_kernel(%arg0: i32, %arg1: i32, %arg2: memref<16x32xf32, #tpu.memory_space<vmem>>, %arg3: memref<2x32xf32, #tpu.memory_space<vmem>>, %arg4: memref<32x96xbf16, #tpu.memory_space<vmem>>, %arg5: memref<1x96xf32, #tpu.memory_space<vmem>>, %arg6: memref<16x96xbf16, #tpu.memory_space<vmem>>) attributes {dimension_semantics = [#tpu.dimension_semantics<parallel>, #tpu.dimension_semantics<parallel>], iteration_bounds = array<i64: 1, 1>, scalar_prefetch = 0 : i64, scratch_operands = 0 : i64, tpu.core_type = #tpu.core_type<tc>, window_params = [{transform_indices = @transform_0, window_bounds = array<i64: 16, 32>}, {pipeline_mode = #tpu.pipeline_mode<synchronous>, transform_indices = @transform_1, window_bounds = array<i64: 2, 32>}, {transform_indices = @transform_2, window_bounds = array<i64: 32, 96>}, {transform_indices = @transform_3, window_bounds = array<i64: 1, 96>}, {transform_indices = @transform_4, window_bounds = array<i64: 16, 96>}]} {
    %c0 = arith.constant 0 : index
    %c0_0 = arith.constant 0 : index
    %0 = vector.load %arg2[%c0, %c0_0] : memref<16x32xf32, #tpu.memory_space<vmem>>, vector<16x32xf32>
    %c0_1 = arith.constant 0 : index
    %c0_2 = arith.constant 0 : index
    %1 = vector.load %arg3[%c0_1, %c0_2] : memref<2x32xf32, #tpu.memory_space<vmem>>, vector<2x32xf32>
    %cst = arith.constant dense<0.000000e+00> : vector<16xf32>
    %2 = vector.multi_reduction <add>, %0, %cst [1] : vector<16x32xf32> to vector<16xf32>
    %3 = vector.shape_cast %2 : vector<16xf32> to vector<16x1xf32>
    %cst_3 = arith.constant 3.200000e+01 : f32
    %4 = vector.broadcast %cst_3 : f32 to vector<16x1xf32>
    %5 = arith.divf %3, %4 : vector<16x1xf32>
    %6 = vector.broadcast %5 : vector<16x1xf32> to vector<16x32xf32>
    %7 = arith.subf %0, %6 : vector<16x32xf32>
    %8 = arith.mulf %7, %7 : vector<16x32xf32>
    %cst_4 = arith.constant dense<0.000000e+00> : vector<16xf32>
    %9 = vector.multi_reduction <add>, %8, %cst_4 [1] : vector<16x32xf32> to vector<16xf32>
    %10 = vector.shape_cast %9 : vector<16xf32> to vector<16x1xf32>
    %cst_5 = arith.constant 0.0322580636 : f32
    %11 = vector.broadcast %cst_5 : f32 to vector<16x1xf32>
    %12 = arith.mulf %10, %11 : vector<16x1xf32>
    %13 = math.sqrt %12 : vector<16x1xf32>
    %14 = vector.extract_strided_slice %1 {offsets = [0, 0], sizes = [1, 32], strides = [1, 1]} : vector<2x32xf32> to vector<1x32xf32>
    %cst_6 = arith.constant 9.99999997E-7 : f32
    %15 = vector.broadcast %cst_6 : f32 to vector<16x1xf32>
    %16 = arith.addf %13, %15 : vector<16x1xf32>
    %17 = vector.broadcast %16 : vector<16x1xf32> to vector<16x32xf32>
    %18 = arith.divf %7, %17 : vector<16x32xf32>
    %19 = vector.broadcast %14 : vector<1x32xf32> to vector<16x32xf32>
    %20 = arith.mulf %19, %18 : vector<16x32xf32>
    %21 = vector.extract_strided_slice %1 {offsets = [1, 0], sizes = [1, 32], strides = [1, 1]} : vector<2x32xf32> to vector<1x32xf32>
    %22 = vector.broadcast %21 : vector<1x32xf32> to vector<16x32xf32>
    %23 = arith.addf %20, %22 : vector<16x32xf32>
    %24 = arith.truncf %23 : vector<16x32xf32> to vector<16x32xbf16>
    %c0_7 = arith.constant 0 : index
    %c0_8 = arith.constant 0 : index
    %25 = vector.load %arg4[%c0_7, %c0_8] : memref<32x96xbf16, #tpu.memory_space<vmem>>, vector<32x96xbf16>
    %cst_9 = arith.constant dense<0.000000e+00> : vector<16x96xf32>
    %26 = tpu.matmul %24, %25, %cst_9 {dimension_numbers = #tpu.dot_dimension_numbers<[1], [0], [0], [1], [0, 0, 1, 1], [], []>} : vector<16x32xbf16>, vector<32x96xbf16>, vector<16x96xf32> -> vector<16x96xf32>
    %c0_10 = arith.constant 0 : index
    %c0_11 = arith.constant 0 : index
    %27 = vector.load %arg5[%c0_10, %c0_11] : memref<1x96xf32, #tpu.memory_space<vmem>>, vector<1x96xf32>
    %28 = vector.broadcast %27 : vector<1x96xf32> to vector<16x96xf32>
    %29 = arith.addf %26, %28 : vector<16x96xf32>
    %30 = arith.truncf %29 : vector<16x96xf32> to vector<16x96xbf16>
    %c0_12 = arith.constant 0 : index
    %c0_13 = arith.constant 0 : index
    %31 = vector.load %arg6[%c0_12, %c0_13] : memref<16x96xbf16, #tpu.memory_space<vmem>>, vector<16x96xbf16>
    tpu.vector_store %arg6[%c0_12, %c0_13], %30 {strides = array<i32>} : memref<16x96xbf16, #tpu.memory_space<vmem>>, vector<16x96xbf16>,
    return
  }
  func.func @transform_0(%arg0: i32, %arg1: i32) -> (i32, i32) {
    %c0_i32 = arith.constant 0 : i32
    %c0_i32_0 = arith.constant 0 : i32
    return %arg0, %c0_i32 : i32, i32
  }
  func.func @transform_1(%arg0: i32, %arg1: i32) -> (i32, i32) {
    %c0_i32 = arith.constant 0 : i32
    %c0_i32_0 = arith.constant 0 : i32
    %c0_i32_1 = arith.constant 0 : i32
    return %c0_i32, %c0_i32_0 : i32, i32
  }
  func.func @transform_2(%arg0: i32, %arg1: i32) -> (i32, i32) {
    %c0_i32 = arith.constant 0 : i32
    %c0_i32_0 = arith.constant 0 : i32
    return %c0_i32, %arg1 : i32, i32
  }
  func.func @transform_3(%arg0: i32, %arg1: i32) -> (i32, i32) {
    %c0_i32 = arith.constant 0 : i32
    %c0_i32_0 = arith.constant 0 : i32
    return %c0_i32, %arg1 : i32, i32
  }
  func.func @transform_4(%arg0: i32, %arg1: i32) -> (i32, i32) {
    %c0_i32 = arith.constant 0 : i32
    return %arg0, %arg1 : i32, i32
  }
}

module attributes {stable_mosaic.version = 11 : i64} {
  func.func @_flash_mha_kernel(%arg0: i32, %arg1: i32, %arg2: i32, %arg3: memref<1x4x8x8xbf16, #tpu.memory_space<vmem>>, %arg4: memref<1x4x8x8xbf16, #tpu.memory_space<vmem>>, %arg5: memref<1x4x8x8xbf16, #tpu.memory_space<vmem>>, %arg6: memref<1x1x8x8xi32, #tpu.memory_space<vmem>>, %arg7: memref<1x4x8x8xbf16, #tpu.memory_space<vmem>>, %arg8: memref<4x8x1xf32, #tpu.memory_space<vmem>>, %arg9: memref<4x8x1xf32, #tpu.memory_space<vmem>>, %arg10: memref<4x8x8xf32, #tpu.memory_space<vmem>>) attributes {dimension_semantics = [#tpu.dimension_semantics<parallel>, #tpu.dimension_semantics<parallel>, #tpu.dimension_semantics<arbitrary>], iteration_bounds = array<i64: 2, 1, 1>, scalar_prefetch = 0 : i64, scratch_operands = 3 : i64, tpu.core_type = #tpu.core_type<tc>, window_params = [{transform_indices = @transform_0, window_bounds = array<i64: 1, 4, 8, 8>}, {transform_indices = @transform_1, window_bounds = array<i64: 1, 4, 8, 8>}, {transform_indices = @transform_2, window_bounds = array<i64: 1, 4, 8, 8>}, {transform_indices = @transform_3, window_bounds = array<i64: 1, 1, 8, 8>}, {transform_indices = @transform_4, window_bounds = array<i64: 1, 4, 8, 8>}]} {
    %c0_i32 = arith.constant 0 : i32
    %0 = arith.cmpi eq, %arg2, %c0_i32 : i32
    %1 = arith.extui %0 : i1 to i32
    %c0_i32_0 = arith.constant 0 : i32
    %2 = arith.cmpi ne, %1, %c0_i32_0 : i32
    scf.if %2 {
      %cst_42 = arith.constant 0xFF800000 : f32
      %46 = vector.broadcast %cst_42 : f32 to vector<4x8x1xf32>
      %c0_43 = arith.constant 0 : index
      %c0_44 = arith.constant 0 : index
      %c0_45 = arith.constant 0 : index
      %47 = vector.load %arg8[%c0_43, %c0_44, %c0_45] : memref<4x8x1xf32, #tpu.memory_space<vmem>>, vector<4x8x1xf32>
      tpu.vector_store %arg8[%c0_43, %c0_44, %c0_45], %46 {strides = array<i32>} : memref<4x8x1xf32, #tpu.memory_space<vmem>>, vector<4x8x1xf32>,
      %cst_46 = arith.constant 0.000000e+00 : f32
      %48 = vector.broadcast %cst_46 : f32 to vector<4x8x1xf32>
      %c0_47 = arith.constant 0 : index
      %c0_48 = arith.constant 0 : index
      %c0_49 = arith.constant 0 : index
      %49 = vector.load %arg9[%c0_47, %c0_48, %c0_49] : memref<4x8x1xf32, #tpu.memory_space<vmem>>, vector<4x8x1xf32>
      tpu.vector_store %arg9[%c0_47, %c0_48, %c0_49], %48 {strides = array<i32>} : memref<4x8x1xf32, #tpu.memory_space<vmem>>, vector<4x8x1xf32>,
      %cst_50 = arith.constant 0.000000e+00 : f32
      %50 = vector.broadcast %cst_50 : f32 to vector<4x8x8xf32>
      %c0_51 = arith.constant 0 : index
      %c0_52 = arith.constant 0 : index
      %c0_53 = arith.constant 0 : index
      %51 = vector.load %arg10[%c0_51, %c0_52, %c0_53] : memref<4x8x8xf32, #tpu.memory_space<vmem>>, vector<4x8x8xf32>
      tpu.vector_store %arg10[%c0_51, %c0_52, %c0_53], %50 {strides = array<i32>} : memref<4x8x8xf32, #tpu.memory_space<vmem>>, vector<4x8x8xf32>,
    } else {
    }
    %c0 = arith.constant 0 : index
    %c0_1 = arith.constant 0 : index
    %c0_2 = arith.constant 0 : index
    %c0_3 = arith.constant 0 : index
    %3 = vector.load %arg3[%c0, %c0_1, %c0_2, %c0_3] : memref<1x4x8x8xbf16, #tpu.memory_space<vmem>>, vector<1x4x8x8xbf16>
    %4 = vector.shape_cast %3 : vector<1x4x8x8xbf16> to vector<4x8x8xbf16>
    %c0_4 = arith.constant 0 : index
    %c0_5 = arith.constant 0 : index
    %c0_6 = arith.constant 0 : index
    %c0_7 = arith.constant 0 : index
    %5 = vector.load %arg4[%c0_4, %c0_5, %c0_6, %c0_7] : memref<1x4x8x8xbf16, #tpu.memory_space<vmem>>, vector<1x4x8x8xbf16>
    %6 = vector.shape_cast %5 : vector<1x4x8x8xbf16> to vector<4x8x8xbf16>
    %c0_8 = arith.constant 0 : index
    %c0_9 = arith.constant 0 : index
    %c0_10 = arith.constant 0 : index
    %c0_11 = arith.constant 0 : index
    %7 = vector.load %arg5[%c0_8, %c0_9, %c0_10, %c0_11] : memref<1x4x8x8xbf16, #tpu.memory_space<vmem>>, vector<1x4x8x8xbf16>
    %8 = vector.shape_cast %7 : vector<1x4x8x8xbf16> to vector<4x8x8xbf16>
    "tpu.trace_start"() <{level = 10 : i32, message = "hqd,hkd->hqk"}> : () -> ()
    %cst = arith.constant dense<0.000000e+00> : vector<4x8x8xf32>
    %9 = tpu.matmul %4, %6, %cst {dimension_numbers = #tpu.dot_dimension_numbers<[2], [2], [1], [1], [0, 0, 0, 1, 1, 1], [0], [0]>} : vector<4x8x8xbf16>, vector<4x8x8xbf16>, vector<4x8x8xf32> -> vector<4x8x8xf32>
    "tpu.trace_stop"() : () -> ()
    %c0_12 = arith.constant 0 : index
    %c0_13 = arith.constant 0 : index
    %c0_14 = arith.constant 0 : index
    %c0_15 = arith.constant 0 : index
    %10 = vector.load %arg6[%c0_12, %c0_13, %c0_14, %c0_15] : memref<1x1x8x8xi32, #tpu.memory_space<vmem>>, vector<1x1x8x8xi32>
    %11 = vector.shape_cast %10 : vector<1x1x8x8xi32> to vector<8x8xi32>
    %c0_i32_16 = arith.constant 0 : i32
    %12 = vector.broadcast %c0_i32_16 : i32 to vector<8x8xi32>
    %13 = arith.cmpi eq, %11, %12 : vector<8x8xi32>
    %cst_17 = arith.constant -1.000000e+09 : f32
    %cst_18 = arith.constant 0.000000e+00 : f32
    %14 = vector.broadcast %cst_17 : f32 to vector<8x8xf32>
    %15 = vector.broadcast %cst_18 : f32 to vector<8x8xf32>
    %16 = arith.select %13, %14, %15 : vector<8x8xi1>, vector<8x8xf32>
    %17 = vector.shape_cast %16 : vector<8x8xf32> to vector<1x8x8xf32>
    %18 = vector.broadcast %17 : vector<1x8x8xf32> to vector<4x8x8xf32>
    %19 = arith.addf %9, %18 : vector<4x8x8xf32>
    %c0_19 = arith.constant 0 : index
    %c0_20 = arith.constant 0 : index
    %c0_21 = arith.constant 0 : index
    %20 = vector.load %arg8[%c0_19, %c0_20, %c0_21] : memref<4x8x1xf32, #tpu.memory_space<vmem>>, vector<4x8x1xf32>
    %cst_22 = arith.constant dense<0xFF800000> : vector<4x8xf32>
    %21 = vector.multi_reduction <maximumf>, %19, %cst_22 [2] : vector<4x8x8xf32> to vector<4x8xf32>
    %22 = vector.shape_cast %21 : vector<4x8xf32> to vector<4x8x1xf32>
    %23 = arith.maximumf %20, %22 : vector<4x8x1xf32>
    %24 = arith.subf %20, %23 : vector<4x8x1xf32>
    %25 = math.exp %24 : vector<4x8x1xf32>
    %26 = vector.broadcast %23 : vector<4x8x1xf32> to vector<4x8x8xf32>
    %27 = arith.subf %19, %26 : vector<4x8x8xf32>
    %28 = math.exp %27 : vector<4x8x8xf32>
    %c0_23 = arith.constant 0 : index
    %c0_24 = arith.constant 0 : index
    %c0_25 = arith.constant 0 : index
    %29 = vector.load %arg9[%c0_23, %c0_24, %c0_25] : memref<4x8x1xf32, #tpu.memory_space<vmem>>, vector<4x8x1xf32>
    %30 = arith.mulf %25, %29 : vector<4x8x1xf32>
    %cst_26 = arith.constant dense<0.000000e+00> : vector<4x8xf32>
    %31 = vector.multi_reduction <add>, %28, %cst_26 [2] : vector<4x8x8xf32> to vector<4x8xf32>
    %32 = vector.shape_cast %31 : vector<4x8xf32> to vector<4x8x1xf32>
    %33 = arith.addf %30, %32 : vector<4x8x1xf32>
    %c0_27 = arith.constant 0 : index
    %c0_28 = arith.constant 0 : index
    %c0_29 = arith.constant 0 : index
    %34 = vector.load %arg9[%c0_27, %c0_28, %c0_29] : memref<4x8x1xf32, #tpu.memory_space<vmem>>, vector<4x8x1xf32>
    tpu.vector_store %arg9[%c0_27, %c0_28, %c0_29], %33 {strides = array<i32>} : memref<4x8x1xf32, #tpu.memory_space<vmem>>, vector<4x8x1xf32>,
    %35 = arith.truncf %28 : vector<4x8x8xf32> to vector<4x8x8xbf16>
    "tpu.trace_start"() <{level = 10 : i32, message = "hqk,hkd->hqd"}> : () -> ()
    %cst_30 = arith.constant dense<0.000000e+00> : vector<4x8x8xf32>
    %36 = tpu.matmul %35, %8, %cst_30 {dimension_numbers = #tpu.dot_dimension_numbers<[2], [1], [1], [2], [0, 0, 0, 1, 1, 2], [0], [0]>} : vector<4x8x8xbf16>, vector<4x8x8xbf16>, vector<4x8x8xf32> -> vector<4x8x8xf32>
    "tpu.trace_stop"() : () -> ()
    %c0_31 = arith.constant 0 : index
    %c0_32 = arith.constant 0 : index
    %c0_33 = arith.constant 0 : index
    %37 = vector.load %arg10[%c0_31, %c0_32, %c0_33] : memref<4x8x8xf32, #tpu.memory_space<vmem>>, vector<4x8x8xf32>
    %38 = vector.broadcast %25 : vector<4x8x1xf32> to vector<4x8x8xf32>
    %39 = arith.mulf %38, %37 : vector<4x8x8xf32>
    %40 = arith.addf %39, %36 : vector<4x8x8xf32>
    %c0_34 = arith.constant 0 : index
    %c0_35 = arith.constant 0 : index
    %c0_36 = arith.constant 0 : index
    %41 = vector.load %arg10[%c0_34, %c0_35, %c0_36] : memref<4x8x8xf32, #tpu.memory_space<vmem>>, vector<4x8x8xf32>
    tpu.vector_store %arg10[%c0_34, %c0_35, %c0_36], %40 {strides = array<i32>} : memref<4x8x8xf32, #tpu.memory_space<vmem>>, vector<4x8x8xf32>,
    %c0_37 = arith.constant 0 : index
    %c0_38 = arith.constant 0 : index
    %c0_39 = arith.constant 0 : index
    %42 = vector.load %arg8[%c0_37, %c0_38, %c0_39] : memref<4x8x1xf32, #tpu.memory_space<vmem>>, vector<4x8x1xf32>
    tpu.vector_store %arg8[%c0_37, %c0_38, %c0_39], %23 {strides = array<i32>} : memref<4x8x1xf32, #tpu.memory_space<vmem>>, vector<4x8x1xf32>,
    %c0_i32_40 = arith.constant 0 : i32
    %43 = arith.cmpi eq, %arg2, %c0_i32_40 : i32
    %44 = arith.extui %43 : i1 to i32
    %c0_i32_41 = arith.constant 0 : i32
    %45 = arith.cmpi ne, %44, %c0_i32_41 : i32
    scf.if %45 {
      %c0_42 = arith.constant 0 : index
      %c0_43 = arith.constant 0 : index
      %c0_44 = arith.constant 0 : index
      %46 = vector.load %arg9[%c0_42, %c0_43, %c0_44] : memref<4x8x1xf32, #tpu.memory_space<vmem>>, vector<4x8x1xf32>
      %47 = tpu.reciprocal %46 {approx = true} : vector<4x8x1xf32> -> vector<4x8x1xf32>
      %c0_45 = arith.constant 0 : index
      %c0_46 = arith.constant 0 : index
      %c0_47 = arith.constant 0 : index
      %48 = vector.load %arg10[%c0_45, %c0_46, %c0_47] : memref<4x8x8xf32, #tpu.memory_space<vmem>>, vector<4x8x8xf32>
      %49 = vector.broadcast %47 : vector<4x8x1xf32> to vector<4x8x8xf32>
      %50 = arith.mulf %48, %49 : vector<4x8x8xf32>
      %51 = arith.truncf %50 : vector<4x8x8xf32> to vector<4x8x8xbf16>
      %c0_48 = arith.constant 0 : index
      %c0_49 = arith.constant 0 : index
      %c0_50 = arith.constant 0 : index
      %c0_51 = arith.constant 0 : index
      %52 = vector.load %arg7[%c0_48, %c0_49, %c0_50, %c0_51] : memref<1x4x8x8xbf16, #tpu.memory_space<vmem>>, vector<1x4x8x8xbf16>
      %53 = vector.shape_cast %52 : vector<1x4x8x8xbf16> to vector<4x8x8xbf16>
      %54 = vector.shape_cast %51 : vector<4x8x8xbf16> to vector<1x4x8x8xbf16>
      tpu.vector_store %arg7[%c0_48, %c0_49, %c0_50, %c0_51], %54 {strides = array<i32>} : memref<1x4x8x8xbf16, #tpu.memory_space<vmem>>, vector<1x4x8x8xbf16>,
    } else {
    }
    return
  }
  func.func @transform_0(%arg0: i32, %arg1: i32, %arg2: i32) -> (i32, i32, i32, i32) {
    %c0_i32 = arith.constant 0 : i32
    %c0_i32_0 = arith.constant 0 : i32
    %c0_i32_1 = arith.constant 0 : i32
    return %arg0, %c0_i32, %arg1, %c0_i32_0 : i32, i32, i32, i32
  }
  func.func @transform_1(%arg0: i32, %arg1: i32, %arg2: i32) -> (i32, i32, i32, i32) {
    %c0_i32 = arith.constant 0 : i32
    %c0_i32_0 = arith.constant 0 : i32
    %c0_i32_1 = arith.constant 0 : i32
    return %arg0, %c0_i32, %arg2, %c0_i32_0 : i32, i32, i32, i32
  }
  func.func @transform_2(%arg0: i32, %arg1: i32, %arg2: i32) -> (i32, i32, i32, i32) {
    %c0_i32 = arith.constant 0 : i32
    %c0_i32_0 = arith.constant 0 : i32
    %c0_i32_1 = arith.constant 0 : i32
    return %arg0, %c0_i32, %arg2, %c0_i32_0 : i32, i32, i32, i32
  }
  func.func @transform_3(%arg0: i32, %arg1: i32, %arg2: i32) -> (i32, i32, i32, i32) {
    %c0_i32 = arith.constant 0 : i32
    %c0_i32_0 = arith.constant 0 : i32
    %c0_i32_1 = arith.constant 0 : i32
    return %c0_i32, %c0_i32_0, %arg1, %arg2 : i32, i32, i32, i32
  }
  func.func @transform_4(%arg0: i32, %arg1: i32, %arg2: i32) -> (i32, i32, i32, i32) {
    %c0_i32 = arith.constant 0 : i32
    %c0_i32_0 = arith.constant 0 : i32
    %c0_i32_1 = arith.constant 0 : i32
    return %arg0, %c0_i32, %arg1, %c0_i32_0 : i32, i32, i32, i32
  }
}

module attributes {stable_mosaic.version = 11 : i64} {
  func.func @_linear_residual_kernel(%arg0: i32, %arg1: i32, %arg2: i32, %arg3: memref<16x32xbf16, #tpu.memory_space<vmem>>, %arg4: memref<32x32xbf16, #tpu.memory_space<vmem>>, %arg5: memref<1x32xf32, #tpu.memory_space<vmem>>, %arg6: memref<16x32xf32, #tpu.memory_space<vmem>>, %arg7: memref<16x32xf32, #tpu.memory_space<vmem>>, %arg8: memref<16x32xf32, #tpu.memory_space<vmem>>) attributes {dimension_semantics = [#tpu.dimension_semantics<parallel>, #tpu.dimension_semantics<parallel>, #tpu.dimension_semantics<arbitrary>], iteration_bounds = array<i64: 1, 1, 1>, scalar_prefetch = 0 : i64, scratch_operands = 1 : i64, tpu.core_type = #tpu.core_type<tc>, window_params = [{transform_indices = @transform_0, window_bounds = array<i64: 16, 32>}, {transform_indices = @transform_1, window_bounds = array<i64: 32, 32>}, {transform_indices = @transform_2, window_bounds = array<i64: 1, 32>}, {transform_indices = @transform_3, window_bounds = array<i64: 16, 32>}, {transform_indices = @transform_4, window_bounds = array<i64: 16, 32>}]} {
    %c0_i32 = arith.constant 0 : i32
    %0 = arith.cmpi eq, %arg2, %c0_i32 : i32
    %1 = arith.extui %0 : i1 to i32
    %c0_i32_0 = arith.constant 0 : i32
    %2 = arith.cmpi ne, %1, %c0_i32_0 : i32
    scf.if %2 {
      %cst_10 = arith.constant 0.000000e+00 : f32
      %12 = vector.broadcast %cst_10 : f32 to vector<16x32xf32>
      %c0_11 = arith.constant 0 : index
      %c0_12 = arith.constant 0 : index
      %13 = vector.load %arg8[%c0_11, %c0_12] : memref<16x32xf32, #tpu.memory_space<vmem>>, vector<16x32xf32>
      tpu.vector_store %arg8[%c0_11, %c0_12], %12 {strides = array<i32>} : memref<16x32xf32, #tpu.memory_space<vmem>>, vector<16x32xf32>,
    } else {
    }
    %c0 = arith.constant 0 : index
    %c0_1 = arith.constant 0 : index
    %3 = vector.load %arg8[%c0, %c0_1] : memref<16x32xf32, #tpu.memory_space<vmem>>, vector<16x32xf32>
    %c0_2 = arith.constant 0 : index
    %c0_3 = arith.constant 0 : index
    %4 = vector.load %arg3[%c0_2, %c0_3] : memref<16x32xbf16, #tpu.memory_space<vmem>>, vector<16x32xbf16>
    %c0_4 = arith.constant 0 : index
    %c0_5 = arith.constant 0 : index
    %5 = vector.load %arg4[%c0_4, %c0_5] : memref<32x32xbf16, #tpu.memory_space<vmem>>, vector<32x32xbf16>
    %cst = arith.constant dense<0.000000e+00> : vector<16x32xf32>
    %6 = tpu.matmul %4, %5, %cst {dimension_numbers = #tpu.dot_dimension_numbers<[1], [0], [0], [1], [0, 0, 1, 1], [], []>} : vector<16x32xbf16>, vector<32x32xbf16>, vector<16x32xf32> -> vector<16x32xf32>
    %7 = arith.addf %3, %6 : vector<16x32xf32>
    %c0_6 = arith.constant 0 : index
    %c0_7 = arith.constant 0 : index
    %8 = vector.load %arg8[%c0_6, %c0_7] : memref<16x32xf32, #tpu.memory_space<vmem>>, vector<16x32xf32>
    tpu.vector_store %arg8[%c0_6, %c0_7], %7 {strides = array<i32>} : memref<16x32xf32, #tpu.memory_space<vmem>>, vector<16x32xf32>,
    %c0_i32_8 = arith.constant 0 : i32
    %9 = arith.cmpi eq, %arg2, %c0_i32_8 : i32
    %10 = arith.extui %9 : i1 to i32
    %c0_i32_9 = arith.constant 0 : i32
    %11 = arith.cmpi ne, %10, %c0_i32_9 : i32
    scf.if %11 {
      %c0_10 = arith.constant 0 : index
      %c0_11 = arith.constant 0 : index
      %12 = vector.load %arg8[%c0_10, %c0_11] : memref<16x32xf32, #tpu.memory_space<vmem>>, vector<16x32xf32>
      %c0_12 = arith.constant 0 : index
      %c0_13 = arith.constant 0 : index
      %13 = vector.load %arg5[%c0_12, %c0_13] : memref<1x32xf32, #tpu.memory_space<vmem>>, vector<1x32xf32>
      %14 = vector.broadcast %13 : vector<1x32xf32> to vector<16x32xf32>
      %15 = arith.addf %12, %14 : vector<16x32xf32>
      %c0_14 = arith.constant 0 : index
      %c0_15 = arith.constant 0 : index
      %16 = vector.load %arg6[%c0_14, %c0_15] : memref<16x32xf32, #tpu.memory_space<vmem>>, vector<16x32xf32>
      %17 = arith.addf %15, %16 : vector<16x32xf32>
      %c0_16 = arith.constant 0 : index
      %c0_17 = arith.constant 0 : index
      %18 = vector.load %arg7[%c0_16, %c0_17] : memref<16x32xf32, #tpu.memory_space<vmem>>, vector<16x32xf32>
      tpu.vector_store %arg7[%c0_16, %c0_17], %17 {strides = array<i32>} : memref<16x32xf32, #tpu.memory_space<vmem>>, vector<16x32xf32>,
    } else {
    }
    return
  }
  func.func @transform_0(%arg0: i32, %arg1: i32, %arg2: i32) -> (i32, i32) {
    %c0_i32 = arith.constant 0 : i32
    return %arg0, %arg2 : i32, i32
  }
  func.func @transform_1(%arg0: i32, %arg1: i32, %arg2: i32) -> (i32, i32) {
    %c0_i32 = arith.constant 0 : i32
    return %arg2, %arg1 : i32, i32
  }
  func.func @transform_2(%arg0: i32, %arg1: i32, %arg2: i32) -> (i32, i32) {
    %c0_i32 = arith.constant 0 : i32
    %c0_i32_0 = arith.constant 0 : i32
    return %c0_i32, %arg1 : i32, i32
  }
  func.func @transform_3(%arg0: i32, %arg1: i32, %arg2: i32) -> (i32, i32) {
    %c0_i32 = arith.constant 0 : i32
    return %arg0, %arg1 : i32, i32
  }
  func.func @transform_4(%arg0: i32, %arg1: i32, %arg2: i32) -> (i32, i32) {
    %c0_i32 = arith.constant 0 : i32
    return %arg0, %arg1 : i32, i32
  }
}

module attributes {stable_mosaic.version = 11 : i64} {
  func.func @_ln_linear_kernel(%arg0: i32, %arg1: i32, %arg2: memref<16x32xf32, #tpu.memory_space<vmem>>, %arg3: memref<2x32xf32, #tpu.memory_space<vmem>>, %arg4: memref<32x32xbf16, #tpu.memory_space<vmem>>, %arg5: memref<1x32xf32, #tpu.memory_space<vmem>>, %arg6: memref<16x32xbf16, #tpu.memory_space<vmem>>) attributes {dimension_semantics = [#tpu.dimension_semantics<parallel>, #tpu.dimension_semantics<parallel>], iteration_bounds = array<i64: 1, 1>, scalar_prefetch = 0 : i64, scratch_operands = 0 : i64, tpu.core_type = #tpu.core_type<tc>, window_params = [{transform_indices = @transform_0, window_bounds = array<i64: 16, 32>}, {pipeline_mode = #tpu.pipeline_mode<synchronous>, transform_indices = @transform_1, window_bounds = array<i64: 2, 32>}, {transform_indices = @transform_2, window_bounds = array<i64: 32, 32>}, {transform_indices = @transform_3, window_bounds = array<i64: 1, 32>}, {transform_indices = @transform_4, window_bounds = array<i64: 16, 32>}]} {
    %c0 = arith.constant 0 : index
    %c0_0 = arith.constant 0 : index
    %0 = vector.load %arg2[%c0, %c0_0] : memref<16x32xf32, #tpu.memory_space<vmem>>, vector<16x32xf32>
    %c0_1 = arith.constant 0 : index
    %c0_2 = arith.constant 0 : index
    %1 = vector.load %arg3[%c0_1, %c0_2] : memref<2x32xf32, #tpu.memory_space<vmem>>, vector<2x32xf32>
    %cst = arith.constant dense<0.000000e+00> : vector<16xf32>
    %2 = vector.multi_reduction <add>, %0, %cst [1] : vector<16x32xf32> to vector<16xf32>
    %3 = vector.shape_cast %2 : vector<16xf32> to vector<16x1xf32>
    %cst_3 = arith.constant 3.200000e+01 : f32
    %4 = vector.broadcast %cst_3 : f32 to vector<16x1xf32>
    %5 = arith.divf %3, %4 : vector<16x1xf32>
    %6 = vector.broadcast %5 : vector<16x1xf32> to vector<16x32xf32>
    %7 = arith.subf %0, %6 : vector<16x32xf32>
    %8 = arith.mulf %7, %7 : vector<16x32xf32>
    %cst_4 = arith.constant dense<0.000000e+00> : vector<16xf32>
    %9 = vector.multi_reduction <add>, %8, %cst_4 [1] : vector<16x32xf32> to vector<16xf32>
    %10 = vector.shape_cast %9 : vector<16xf32> to vector<16x1xf32>
    %cst_5 = arith.constant 0.0322580636 : f32
    %11 = vector.broadcast %cst_5 : f32 to vector<16x1xf32>
    %12 = arith.mulf %10, %11 : vector<16x1xf32>
    %13 = math.sqrt %12 : vector<16x1xf32>
    %14 = vector.extract_strided_slice %1 {offsets = [0, 0], sizes = [1, 32], strides = [1, 1]} : vector<2x32xf32> to vector<1x32xf32>
    %cst_6 = arith.constant 9.99999997E-7 : f32
    %15 = vector.broadcast %cst_6 : f32 to vector<16x1xf32>
    %16 = arith.addf %13, %15 : vector<16x1xf32>
    %17 = vector.broadcast %16 : vector<16x1xf32> to vector<16x32xf32>
    %18 = arith.divf %7, %17 : vector<16x32xf32>
    %19 = vector.broadcast %14 : vector<1x32xf32> to vector<16x32xf32>
    %20 = arith.mulf %19, %18 : vector<16x32xf32>
    %21 = vector.extract_strided_slice %1 {offsets = [1, 0], sizes = [1, 32], strides = [1, 1]} : vector<2x32xf32> to vector<1x32xf32>
    %22 = vector.broadcast %21 : vector<1x32xf32> to vector<16x32xf32>
    %23 = arith.addf %20, %22 : vector<16x32xf32>
    %24 = arith.truncf %23 : vector<16x32xf32> to vector<16x32xbf16>
    %c0_7 = arith.constant 0 : index
    %c0_8 = arith.constant 0 : index
    %25 = vector.load %arg4[%c0_7, %c0_8] : memref<32x32xbf16, #tpu.memory_space<vmem>>, vector<32x32xbf16>
    %cst_9 = arith.constant dense<0.000000e+00> : vector<16x32xf32>
    %26 = tpu.matmul %24, %25, %cst_9 {dimension_numbers = #tpu.dot_dimension_numbers<[1], [0], [0], [1], [0, 0, 1, 1], [], []>} : vector<16x32xbf16>, vector<32x32xbf16>, vector<16x32xf32> -> vector<16x32xf32>
    %c0_10 = arith.constant 0 : index
    %c0_11 = arith.constant 0 : index
    %27 = vector.load %arg5[%c0_10, %c0_11] : memref<1x32xf32, #tpu.memory_space<vmem>>, vector<1x32xf32>
    %28 = vector.broadcast %27 : vector<1x32xf32> to vector<16x32xf32>
    %29 = arith.addf %26, %28 : vector<16x32xf32>
    %30 = arith.truncf %29 : vector<16x32xf32> to vector<16x32xbf16>
    %c0_12 = arith.constant 0 : index
    %c0_13 = arith.constant 0 : index
    %31 = vector.load %arg6[%c0_12, %c0_13] : memref<16x32xbf16, #tpu.memory_space<vmem>>, vector<16x32xbf16>
    tpu.vector_store %arg6[%c0_12, %c0_13], %30 {strides = array<i32>} : memref<16x32xbf16, #tpu.memory_space<vmem>>, vector<16x32xbf16>,
    return
  }
  func.func @transform_0(%arg0: i32, %arg1: i32) -> (i32, i32) {
    %c0_i32 = arith.constant 0 : i32
    %c0_i32_0 = arith.constant 0 : i32
    return %arg0, %c0_i32 : i32, i32
  }
  func.func @transform_1(%arg0: i32, %arg1: i32) -> (i32, i32) {
    %c0_i32 = arith.constant 0 : i32
    %c0_i32_0 = arith.constant 0 : i32
    %c0_i32_1 = arith.constant 0 : i32
    return %c0_i32, %c0_i32_0 : i32, i32
  }
  func.func @transform_2(%arg0: i32, %arg1: i32) -> (i32, i32) {
    %c0_i32 = arith.constant 0 : i32
    %c0_i32_0 = arith.constant 0 : i32
    return %c0_i32, %arg1 : i32, i32
  }
  func.func @transform_3(%arg0: i32, %arg1: i32) -> (i32, i32) {
    %c0_i32 = arith.constant 0 : i32
    %c0_i32_0 = arith.constant 0 : i32
    return %c0_i32, %arg1 : i32, i32
  }
  func.func @transform_4(%arg0: i32, %arg1: i32) -> (i32, i32) {
    %c0_i32 = arith.constant 0 : i32
    return %arg0, %arg1 : i32, i32
  }
}

module attributes {stable_mosaic.version = 11 : i64} {
  func.func @_linear_kernel(%arg0: i32, %arg1: i32, %arg2: i32, %arg3: memref<32x32xbf16, #tpu.memory_space<vmem>>, %arg4: memref<32x64xbf16, #tpu.memory_space<vmem>>, %arg5: memref<1x64xf32, #tpu.memory_space<vmem>>, %arg6: memref<32x64xbf16, #tpu.memory_space<vmem>>, %arg7: memref<32x64xf32, #tpu.memory_space<vmem>>) attributes {dimension_semantics = [#tpu.dimension_semantics<parallel>, #tpu.dimension_semantics<parallel>, #tpu.dimension_semantics<arbitrary>], iteration_bounds = array<i64: 1, 1, 1>, scalar_prefetch = 0 : i64, scratch_operands = 1 : i64, tpu.core_type = #tpu.core_type<tc>, window_params = [{transform_indices = @transform_0, window_bounds = array<i64: 32, 32>}, {transform_indices = @transform_1, window_bounds = array<i64: 32, 64>}, {transform_indices = @transform_2, window_bounds = array<i64: 1, 64>}, {transform_indices = @transform_3, window_bounds = array<i64: 32, 64>}]} {
    %c0_i32 = arith.constant 0 : i32
    %0 = arith.cmpi eq, %arg2, %c0_i32 : i32
    %1 = arith.extui %0 : i1 to i32
    %c0_i32_0 = arith.constant 0 : i32
    %2 = arith.cmpi ne, %1, %c0_i32_0 : i32
    scf.if %2 {
      %cst_10 = arith.constant 0.000000e+00 : f32
      %12 = vector.broadcast %cst_10 : f32 to vector<32x64xf32>
      %c0_11 = arith.constant 0 : index
      %c0_12 = arith.constant 0 : index
      %13 = vector.load %arg7[%c0_11, %c0_12] : memref<32x64xf32, #tpu.memory_space<vmem>>, vector<32x64xf32>
      tpu.vector_store %arg7[%c0_11, %c0_12], %12 {strides = array<i32>} : memref<32x64xf32, #tpu.memory_space<vmem>>, vector<32x64xf32>,
    } else {
    }
    %c0 = arith.constant 0 : index
    %c0_1 = arith.constant 0 : index
    %3 = vector.load %arg7[%c0, %c0_1] : memref<32x64xf32, #tpu.memory_space<vmem>>, vector<32x64xf32>
    %c0_2 = arith.constant 0 : index
    %c0_3 = arith.constant 0 : index
    %4 = vector.load %arg3[%c0_2, %c0_3] : memref<32x32xbf16, #tpu.memory_space<vmem>>, vector<32x32xbf16>
    %c0_4 = arith.constant 0 : index
    %c0_5 = arith.constant 0 : index
    %5 = vector.load %arg4[%c0_4, %c0_5] : memref<32x64xbf16, #tpu.memory_space<vmem>>, vector<32x64xbf16>
    %cst = arith.constant dense<0.000000e+00> : vector<32x64xf32>
    %6 = tpu.matmul %4, %5, %cst {dimension_numbers = #tpu.dot_dimension_numbers<[1], [0], [0], [1], [0, 0, 1, 1], [], []>} : vector<32x32xbf16>, vector<32x64xbf16>, vector<32x64xf32> -> vector<32x64xf32>
    %7 = arith.addf %3, %6 : vector<32x64xf32>
    %c0_6 = arith.constant 0 : index
    %c0_7 = arith.constant 0 : index
    %8 = vector.load %arg7[%c0_6, %c0_7] : memref<32x64xf32, #tpu.memory_space<vmem>>, vector<32x64xf32>
    tpu.vector_store %arg7[%c0_6, %c0_7], %7 {strides = array<i32>} : memref<32x64xf32, #tpu.memory_space<vmem>>, vector<32x64xf32>,
    %c0_i32_8 = arith.constant 0 : i32
    %9 = arith.cmpi eq, %arg2, %c0_i32_8 : i32
    %10 = arith.extui %9 : i1 to i32
    %c0_i32_9 = arith.constant 0 : i32
    %11 = arith.cmpi ne, %10, %c0_i32_9 : i32
    scf.if %11 {
      %c0_10 = arith.constant 0 : index
      %c0_11 = arith.constant 0 : index
      %12 = vector.load %arg7[%c0_10, %c0_11] : memref<32x64xf32, #tpu.memory_space<vmem>>, vector<32x64xf32>
      %c0_12 = arith.constant 0 : index
      %c0_13 = arith.constant 0 : index
      %13 = vector.load %arg5[%c0_12, %c0_13] : memref<1x64xf32, #tpu.memory_space<vmem>>, vector<1x64xf32>
      %14 = vector.broadcast %13 : vector<1x64xf32> to vector<32x64xf32>
      %15 = arith.addf %12, %14 : vector<32x64xf32>
      %16 = arith.truncf %15 : vector<32x64xf32> to vector<32x64xbf16>
      %c0_14 = arith.constant 0 : index
      %c0_15 = arith.constant 0 : index
      %17 = vector.load %arg6[%c0_14, %c0_15] : memref<32x64xbf16, #tpu.memory_space<vmem>>, vector<32x64xbf16>
      tpu.vector_store %arg6[%c0_14, %c0_15], %16 {strides = array<i32>} : memref<32x64xbf16, #tpu.memory_space<vmem>>, vector<32x64xbf16>,
    } else {
    }
    return
  }
  func.func @transform_0(%arg0: i32, %arg1: i32, %arg2: i32) -> (i32, i32) {
    %c0_i32 = arith.constant 0 : i32
    return %arg0, %arg2 : i32, i32
  }
  func.func @transform_1(%arg0: i32, %arg1: i32, %arg2: i32) -> (i32, i32) {
    %c0_i32 = arith.constant 0 : i32
    return %arg2, %arg1 : i32, i32
  }
  func.func @transform_2(%arg0: i32, %arg1: i32, %arg2: i32) -> (i32, i32) {
    %c0_i32 = arith.constant 0 : i32
    %c0_i32_0 = arith.constant 0 : i32
    return %c0_i32, %arg1 : i32, i32
  }
  func.func @transform_3(%arg0: i32, %arg1: i32, %arg2: i32) -> (i32, i32) {
    %c0_i32 = arith.constant 0 : i32
    return %arg0, %arg1 : i32, i32
  }
}

module attributes {stable_mosaic.version = 11 : i64} {
  func.func @_flash_mha_kernel(%arg0: i32, %arg1: i32, %arg2: i32, %arg3: memref<1x4x8x8xbf16, #tpu.memory_space<vmem>>, %arg4: memref<1x4x16x8xbf16, #tpu.memory_space<vmem>>, %arg5: memref<1x4x16x8xbf16, #tpu.memory_space<vmem>>, %arg6: memref<1x1x1x16xi32, #tpu.memory_space<vmem>>, %arg7: memref<1x4x8x8xbf16, #tpu.memory_space<vmem>>, %arg8: memref<4x8x1xf32, #tpu.memory_space<vmem>>, %arg9: memref<4x8x1xf32, #tpu.memory_space<vmem>>, %arg10: memref<4x8x8xf32, #tpu.memory_space<vmem>>) attributes {dimension_semantics = [#tpu.dimension_semantics<parallel>, #tpu.dimension_semantics<parallel>, #tpu.dimension_semantics<arbitrary>], iteration_bounds = array<i64: 2, 1, 1>, scalar_prefetch = 0 : i64, scratch_operands = 3 : i64, tpu.core_type = #tpu.core_type<tc>, window_params = [{transform_indices = @transform_0, window_bounds = array<i64: 1, 4, 8, 8>}, {transform_indices = @transform_1, window_bounds = array<i64: 1, 4, 16, 8>}, {transform_indices = @transform_2, window_bounds = array<i64: 1, 4, 16, 8>}, {transform_indices = @transform_3, window_bounds = array<i64: 1, 1, 1, 16>}, {transform_indices = @transform_4, window_bounds = array<i64: 1, 4, 8, 8>}]} {
    %c0_i32 = arith.constant 0 : i32
    %0 = arith.cmpi eq, %arg2, %c0_i32 : i32
    %1 = arith.extui %0 : i1 to i32
    %c0_i32_0 = arith.constant 0 : i32
    %2 = arith.cmpi ne, %1, %c0_i32_0 : i32
    scf.if %2 {
      %cst_42 = arith.constant 0xFF800000 : f32
      %46 = vector.broadcast %cst_42 : f32 to vector<4x8x1xf32>
      %c0_43 = arith.constant 0 : index
      %c0_44 = arith.constant 0 : index
      %c0_45 = arith.constant 0 : index
      %47 = vector.load %arg8[%c0_43, %c0_44, %c0_45] : memref<4x8x1xf32, #tpu.memory_space<vmem>>, vector<4x8x1xf32>
      tpu.vector_store %arg8[%c0_43, %c0_44, %c0_45], %46 {strides = array<i32>} : memref<4x8x1xf32, #tpu.memory_space<vmem>>, vector<4x8x1xf32>,
      %cst_46 = arith.constant 0.000000e+00 : f32
      %48 = vector.broadcast %cst_46 : f32 to vector<4x8x1xf32>
      %c0_47 = arith.constant 0 : index
      %c0_48 = arith.constant 0 : index
      %c0_49 = arith.constant 0 : index
      %49 = vector.load %arg9[%c0_47, %c0_48, %c0_49] : memref<4x8x1xf32, #tpu.memory_space<vmem>>, vector<4x8x1xf32>
      tpu.vector_store %arg9[%c0_47, %c0_48, %c0_49], %48 {strides = array<i32>} : memref<4x8x1xf32, #tpu.memory_space<vmem>>, vector<4x8x1xf32>,
      %cst_50 = arith.constant 0.000000e+00 : f32
      %50 = vector.broadcast %cst_50 : f32 to vector<4x8x8xf32>
      %c0_51 = arith.constant 0 : index
      %c0_52 = arith.constant 0 : index
      %c0_53 = arith.constant 0 : index
      %51 = vector.load %arg10[%c0_51, %c0_52, %c0_53] : memref<4x8x8xf32, #tpu.memory_space<vmem>>, vector<4x8x8xf32>
      tpu.vector_store %arg10[%c0_51, %c0_52, %c0_53], %50 {strides = array<i32>} : memref<4x8x8xf32, #tpu.memory_space<vmem>>, vector<4x8x8xf32>,
    } else {
    }
    %c0 = arith.constant 0 : index
    %c0_1 = arith.constant 0 : index
    %c0_2 = arith.constant 0 : index
    %c0_3 = arith.constant 0 : index
    %3 = vector.load %arg3[%c0, %c0_1, %c0_2, %c0_3] : memref<1x4x8x8xbf16, #tpu.memory_space<vmem>>, vector<1x4x8x8xbf16>
    %4 = vector.shape_cast %3 : vector<1x4x8x8xbf16> to vector<4x8x8xbf16>
    %c0_4 = arith.constant 0 : index
    %c0_5 = arith.constant 0 : index
    %c0_6 = arith.constant 0 : index
    %c0_7 = arith.constant 0 : index
    %5 = vector.load %arg4[%c0_4, %c0_5, %c0_6, %c0_7] : memref<1x4x16x8xbf16, #tpu.memory_space<vmem>>, vector<1x4x16x8xbf16>
    %6 = vector.shape_cast %5 : vector<1x4x16x8xbf16> to vector<4x16x8xbf16>
    %c0_8 = arith.constant 0 : index
    %c0_9 = arith.constant 0 : index
    %c0_10 = arith.constant 0 : index
    %c0_11 = arith.constant 0 : index
    %7 = vector.load %arg5[%c0_8, %c0_9, %c0_10, %c0_11] : memref<1x4x16x8xbf16, #tpu.memory_space<vmem>>, vector<1x4x16x8xbf16>
    %8 = vector.shape_cast %7 : vector<1x4x16x8xbf16> to vector<4x16x8xbf16>
    "tpu.trace_start"() <{level = 10 : i32, message = "hqd,hkd->hqk"}> : () -> ()
    %cst = arith.constant dense<0.000000e+00> : vector<4x8x16xf32>
    %9 = tpu.matmul %4, %6, %cst {dimension_numbers = #tpu.dot_dimension_numbers<[2], [2], [1], [1], [0, 0, 0, 1, 1, 1], [0], [0]>} : vector<4x8x8xbf16>, vector<4x16x8xbf16>, vector<4x8x16xf32> -> vector<4x8x16xf32>
    "tpu.trace_stop"() : () -> ()
    %c0_12 = arith.constant 0 : index
    %c0_13 = arith.constant 0 : index
    %c0_14 = arith.constant 0 : index
    %c0_15 = arith.constant 0 : index
    %10 = vector.load %arg6[%c0_12, %c0_13, %c0_14, %c0_15] : memref<1x1x1x16xi32, #tpu.memory_space<vmem>>, vector<1x1x1x16xi32>
    %11 = vector.shape_cast %10 : vector<1x1x1x16xi32> to vector<1x16xi32>
    %c0_i32_16 = arith.constant 0 : i32
    %12 = vector.broadcast %c0_i32_16 : i32 to vector<1x16xi32>
    %13 = arith.cmpi eq, %11, %12 : vector<1x16xi32>
    %cst_17 = arith.constant -1.000000e+09 : f32
    %cst_18 = arith.constant 0.000000e+00 : f32
    %14 = vector.broadcast %cst_17 : f32 to vector<1x16xf32>
    %15 = vector.broadcast %cst_18 : f32 to vector<1x16xf32>
    %16 = arith.select %13, %14, %15 : vector<1x16xi1>, vector<1x16xf32>
    %17 = vector.shape_cast %16 : vector<1x16xf32> to vector<1x1x16xf32>
    %18 = vector.broadcast %17 : vector<1x1x16xf32> to vector<4x8x16xf32>
    %19 = arith.addf %9, %18 : vector<4x8x16xf32>
    %c0_19 = arith.constant 0 : index
    %c0_20 = arith.constant 0 : index
    %c0_21 = arith.constant 0 : index
    %20 = vector.load %arg8[%c0_19, %c0_20, %c0_21] : memref<4x8x1xf32, #tpu.memory_space<vmem>>, vector<4x8x1xf32>
    %cst_22 = arith.constant dense<0xFF800000> : vector<4x8xf32>
    %21 = vector.multi_reduction <maximumf>, %19, %cst_22 [2] : vector<4x8x16xf32> to vector<4x8xf32>
    %22 = vector.shape_cast %21 : vector<4x8xf32> to vector<4x8x1xf32>
    %23 = arith.maximumf %20, %22 : vector<4x8x1xf32>
    %24 = arith.subf %20, %23 : vector<4x8x1xf32>
    %25 = math.exp %24 : vector<4x8x1xf32>
    %26 = vector.broadcast %23 : vector<4x8x1xf32> to vector<4x8x16xf32>
    %27 = arith.subf %19, %26 : vector<4x8x16xf32>
    %28 = math.exp %27 : vector<4x8x16xf32>
    %c0_23 = arith.constant 0 : index
    %c0_24 = arith.constant 0 : index
    %c0_25 = arith.constant 0 : index
    %29 = vector.load %arg9[%c0_23, %c0_24, %c0_25] : memref<4x8x1xf32, #tpu.memory_space<vmem>>, vector<4x8x1xf32>
    %30 = arith.mulf %25, %29 : vector<4x8x1xf32>
    %cst_26 = arith.constant dense<0.000000e+00> : vector<4x8xf32>
    %31 = vector.multi_reduction <add>, %28, %cst_26 [2] : vector<4x8x16xf32> to vector<4x8xf32>
    %32 = vector.shape_cast %31 : vector<4x8xf32> to vector<4x8x1xf32>
    %33 = arith.addf %30, %32 : vector<4x8x1xf32>
    %c0_27 = arith.constant 0 : index
    %c0_28 = arith.constant 0 : index
    %c0_29 = arith.constant 0 : index
    %34 = vector.load %arg9[%c0_27, %c0_28, %c0_29] : memref<4x8x1xf32, #tpu.memory_space<vmem>>, vector<4x8x1xf32>
    tpu.vector_store %arg9[%c0_27, %c0_28, %c0_29], %33 {strides = array<i32>} : memref<4x8x1xf32, #tpu.memory_space<vmem>>, vector<4x8x1xf32>,
    %35 = arith.truncf %28 : vector<4x8x16xf32> to vector<4x8x16xbf16>
    "tpu.trace_start"() <{level = 10 : i32, message = "hqk,hkd->hqd"}> : () -> ()
    %cst_30 = arith.constant dense<0.000000e+00> : vector<4x8x8xf32>
    %36 = tpu.matmul %35, %8, %cst_30 {dimension_numbers = #tpu.dot_dimension_numbers<[2], [1], [1], [2], [0, 0, 0, 1, 1, 2], [0], [0]>} : vector<4x8x16xbf16>, vector<4x16x8xbf16>, vector<4x8x8xf32> -> vector<4x8x8xf32>
    "tpu.trace_stop"() : () -> ()
    %c0_31 = arith.constant 0 : index
    %c0_32 = arith.constant 0 : index
    %c0_33 = arith.constant 0 : index
    %37 = vector.load %arg10[%c0_31, %c0_32, %c0_33] : memref<4x8x8xf32, #tpu.memory_space<vmem>>, vector<4x8x8xf32>
    %38 = vector.broadcast %25 : vector<4x8x1xf32> to vector<4x8x8xf32>
    %39 = arith.mulf %38, %37 : vector<4x8x8xf32>
    %40 = arith.addf %39, %36 : vector<4x8x8xf32>
    %c0_34 = arith.constant 0 : index
    %c0_35 = arith.constant 0 : index
    %c0_36 = arith.constant 0 : index
    %41 = vector.load %arg10[%c0_34, %c0_35, %c0_36] : memref<4x8x8xf32, #tpu.memory_space<vmem>>, vector<4x8x8xf32>
    tpu.vector_store %arg10[%c0_34, %c0_35, %c0_36], %40 {strides = array<i32>} : memref<4x8x8xf32, #tpu.memory_space<vmem>>, vector<4x8x8xf32>,
    %c0_37 = arith.constant 0 : index
    %c0_38 = arith.constant 0 : index
    %c0_39 = arith.constant 0 : index
    %42 = vector.load %arg8[%c0_37, %c0_38, %c0_39] : memref<4x8x1xf32, #tpu.memory_space<vmem>>, vector<4x8x1xf32>
    tpu.vector_store %arg8[%c0_37, %c0_38, %c0_39], %23 {strides = array<i32>} : memref<4x8x1xf32, #tpu.memory_space<vmem>>, vector<4x8x1xf32>,
    %c0_i32_40 = arith.constant 0 : i32
    %43 = arith.cmpi eq, %arg2, %c0_i32_40 : i32
    %44 = arith.extui %43 : i1 to i32
    %c0_i32_41 = arith.constant 0 : i32
    %45 = arith.cmpi ne, %44, %c0_i32_41 : i32
    scf.if %45 {
      %c0_42 = arith.constant 0 : index
      %c0_43 = arith.constant 0 : index
      %c0_44 = arith.constant 0 : index
      %46 = vector.load %arg9[%c0_42, %c0_43, %c0_44] : memref<4x8x1xf32, #tpu.memory_space<vmem>>, vector<4x8x1xf32>
      %47 = tpu.reciprocal %46 {approx = true} : vector<4x8x1xf32> -> vector<4x8x1xf32>
      %c0_45 = arith.constant 0 : index
      %c0_46 = arith.constant 0 : index
      %c0_47 = arith.constant 0 : index
      %48 = vector.load %arg10[%c0_45, %c0_46, %c0_47] : memref<4x8x8xf32, #tpu.memory_space<vmem>>, vector<4x8x8xf32>
      %49 = vector.broadcast %47 : vector<4x8x1xf32> to vector<4x8x8xf32>
      %50 = arith.mulf %48, %49 : vector<4x8x8xf32>
      %51 = arith.truncf %50 : vector<4x8x8xf32> to vector<4x8x8xbf16>
      %c0_48 = arith.constant 0 : index
      %c0_49 = arith.constant 0 : index
      %c0_50 = arith.constant 0 : index
      %c0_51 = arith.constant 0 : index
      %52 = vector.load %arg7[%c0_48, %c0_49, %c0_50, %c0_51] : memref<1x4x8x8xbf16, #tpu.memory_space<vmem>>, vector<1x4x8x8xbf16>
      %53 = vector.shape_cast %52 : vector<1x4x8x8xbf16> to vector<4x8x8xbf16>
      %54 = vector.shape_cast %51 : vector<4x8x8xbf16> to vector<1x4x8x8xbf16>
      tpu.vector_store %arg7[%c0_48, %c0_49, %c0_50, %c0_51], %54 {strides = array<i32>} : memref<1x4x8x8xbf16, #tpu.memory_space<vmem>>, vector<1x4x8x8xbf16>,
    } else {
    }
    return
  }
  func.func @transform_0(%arg0: i32, %arg1: i32, %arg2: i32) -> (i32, i32, i32, i32) {
    %c0_i32 = arith.constant 0 : i32
    %c0_i32_0 = arith.constant 0 : i32
    %c0_i32_1 = arith.constant 0 : i32
    return %arg0, %c0_i32, %arg1, %c0_i32_0 : i32, i32, i32, i32
  }
  func.func @transform_1(%arg0: i32, %arg1: i32, %arg2: i32) -> (i32, i32, i32, i32) {
    %c0_i32 = arith.constant 0 : i32
    %c0_i32_0 = arith.constant 0 : i32
    %c0_i32_1 = arith.constant 0 : i32
    return %arg0, %c0_i32, %arg2, %c0_i32_0 : i32, i32, i32, i32
  }
  func.func @transform_2(%arg0: i32, %arg1: i32, %arg2: i32) -> (i32, i32, i32, i32) {
    %c0_i32 = arith.constant 0 : i32
    %c0_i32_0 = arith.constant 0 : i32
    %c0_i32_1 = arith.constant 0 : i32
    return %arg0, %c0_i32, %arg2, %c0_i32_0 : i32, i32, i32, i32
  }
  func.func @transform_3(%arg0: i32, %arg1: i32, %arg2: i32) -> (i32, i32, i32, i32) {
    %c0_i32 = arith.constant 0 : i32
    %c0_i32_0 = arith.constant 0 : i32
    %c0_i32_1 = arith.constant 0 : i32
    return %arg0, %c0_i32, %c0_i32_0, %arg2 : i32, i32, i32, i32
  }
  func.func @transform_4(%arg0: i32, %arg1: i32, %arg2: i32) -> (i32, i32, i32, i32) {
    %c0_i32 = arith.constant 0 : i32
    %c0_i32_0 = arith.constant 0 : i32
    %c0_i32_1 = arith.constant 0 : i32
    return %arg0, %c0_i32, %arg1, %c0_i32_0 : i32, i32, i32, i32
  }
}

module attributes {stable_mosaic.version = 11 : i64} {
  func.func @_ln_ffn_kernel(%arg0: i32, %arg1: i32, %arg2: memref<16x32xf32, #tpu.memory_space<vmem>>, %arg3: memref<2x32xf32, #tpu.memory_space<vmem>>, %arg4: memref<32x64xbf16, #tpu.memory_space<vmem>>, %arg5: memref<1x64xf32, #tpu.memory_space<vmem>>, %arg6: memref<64x32xbf16, #tpu.memory_space<vmem>>, %arg7: memref<1x32xf32, #tpu.memory_space<vmem>>, %arg8: memref<16x32xf32, #tpu.memory_space<vmem>>, %arg9: memref<16x32xbf16, #tpu.memory_space<vmem>>, %arg10: memref<16x32xf32, #tpu.memory_space<vmem>>) attributes {dimension_semantics = [#tpu.dimension_semantics<parallel>, #tpu.dimension_semantics<arbitrary>], iteration_bounds = array<i64: 1, 1>, scalar_prefetch = 0 : i64, scratch_operands = 2 : i64, tpu.core_type = #tpu.core_type<tc>, window_params = [{transform_indices = @transform_0, window_bounds = array<i64: 16, 32>}, {pipeline_mode = #tpu.pipeline_mode<synchronous>, transform_indices = @transform_1, window_bounds = array<i64: 2, 32>}, {transform_indices = @transform_2, window_bounds = array<i64: 32, 64>}, {transform_indices = @transform_3, window_bounds = array<i64: 1, 64>}, {transform_indices = @transform_4, window_bounds = array<i64: 64, 32>}, {pipeline_mode = #tpu.pipeline_mode<synchronous>, transform_indices = @transform_5, window_bounds = array<i64: 1, 32>}, {transform_indices = @transform_6, window_bounds = array<i64: 16, 32>}]} {
    %c0_i32 = arith.constant 0 : i32
    %0 = arith.cmpi eq, %arg1, %c0_i32 : i32
    %1 = arith.extui %0 : i1 to i32
    %c0_i32_0 = arith.constant 0 : i32
    %2 = arith.cmpi ne, %1, %c0_i32_0 : i32
    scf.if %2 {
      %c0_16 = arith.constant 0 : index
      %c0_17 = arith.constant 0 : index
      %20 = vector.load %arg2[%c0_16, %c0_17] : memref<16x32xf32, #tpu.memory_space<vmem>>, vector<16x32xf32>
      %c0_18 = arith.constant 0 : index
      %c0_19 = arith.constant 0 : index
      %21 = vector.load %arg3[%c0_18, %c0_19] : memref<2x32xf32, #tpu.memory_space<vmem>>, vector<2x32xf32>
      %cst_20 = arith.constant dense<0.000000e+00> : vector<16xf32>
      %22 = vector.multi_reduction <add>, %20, %cst_20 [1] : vector<16x32xf32> to vector<16xf32>
      %23 = vector.shape_cast %22 : vector<16xf32> to vector<16x1xf32>
      %cst_21 = arith.constant 3.200000e+01 : f32
      %24 = vector.broadcast %cst_21 : f32 to vector<16x1xf32>
      %25 = arith.divf %23, %24 : vector<16x1xf32>
      %26 = vector.broadcast %25 : vector<16x1xf32> to vector<16x32xf32>
      %27 = arith.subf %20, %26 : vector<16x32xf32>
      %28 = arith.mulf %27, %27 : vector<16x32xf32>
      %cst_22 = arith.constant dense<0.000000e+00> : vector<16xf32>
      %29 = vector.multi_reduction <add>, %28, %cst_22 [1] : vector<16x32xf32> to vector<16xf32>
      %30 = vector.shape_cast %29 : vector<16xf32> to vector<16x1xf32>
      %cst_23 = arith.constant 0.0322580636 : f32
      %31 = vector.broadcast %cst_23 : f32 to vector<16x1xf32>
      %32 = arith.mulf %30, %31 : vector<16x1xf32>
      %33 = math.sqrt %32 : vector<16x1xf32>
      %34 = vector.extract_strided_slice %21 {offsets = [0, 0], sizes = [1, 32], strides = [1, 1]} : vector<2x32xf32> to vector<1x32xf32>
      %cst_24 = arith.constant 9.99999997E-7 : f32
      %35 = vector.broadcast %cst_24 : f32 to vector<16x1xf32>
      %36 = arith.addf %33, %35 : vector<16x1xf32>
      %37 = vector.broadcast %36 : vector<16x1xf32> to vector<16x32xf32>
      %38 = arith.divf %27, %37 : vector<16x32xf32>
      %39 = vector.broadcast %34 : vector<1x32xf32> to vector<16x32xf32>
      %40 = arith.mulf %39, %38 : vector<16x32xf32>
      %41 = vector.extract_strided_slice %21 {offsets = [1, 0], sizes = [1, 32], strides = [1, 1]} : vector<2x32xf32> to vector<1x32xf32>
      %42 = vector.broadcast %41 : vector<1x32xf32> to vector<16x32xf32>
      %43 = arith.addf %40, %42 : vector<16x32xf32>
      %44 = arith.truncf %43 : vector<16x32xf32> to vector<16x32xbf16>
      %c0_25 = arith.constant 0 : index
      %c0_26 = arith.constant 0 : index
      %45 = vector.load %arg9[%c0_25, %c0_26] : memref<16x32xbf16, #tpu.memory_space<vmem>>, vector<16x32xbf16>
      tpu.vector_store %arg9[%c0_25, %c0_26], %44 {strides = array<i32>} : memref<16x32xbf16, #tpu.memory_space<vmem>>, vector<16x32xbf16>,
      %cst_27 = arith.constant 0.000000e+00 : f32
      %46 = vector.broadcast %cst_27 : f32 to vector<16x32xf32>
      %c0_28 = arith.constant 0 : index
      %c0_29 = arith.constant 0 : index
      %47 = vector.load %arg10[%c0_28, %c0_29] : memref<16x32xf32, #tpu.memory_space<vmem>>, vector<16x32xf32>
      tpu.vector_store %arg10[%c0_28, %c0_29], %46 {strides = array<i32>} : memref<16x32xf32, #tpu.memory_space<vmem>>, vector<16x32xf32>,
    } else {
    }
    %c0 = arith.constant 0 : index
    %c0_1 = arith.constant 0 : index
    %3 = vector.load %arg9[%c0, %c0_1] : memref<16x32xbf16, #tpu.memory_space<vmem>>, vector<16x32xbf16>
    %c0_2 = arith.constant 0 : index
    %c0_3 = arith.constant 0 : index
    %4 = vector.load %arg4[%c0_2, %c0_3] : memref<32x64xbf16, #tpu.memory_space<vmem>>, vector<32x64xbf16>
    %cst = arith.constant dense<0.000000e+00> : vector<16x64xf32>
    %5 = tpu.matmul %3, %4, %cst {dimension_numbers = #tpu.dot_dimension_numbers<[1], [0], [0], [1], [0, 0, 1, 1], [], []>} : vector<16x32xbf16>, vector<32x64xbf16>, vector<16x64xf32> -> vector<16x64xf32>
    %c0_4 = arith.constant 0 : index
    %c0_5 = arith.constant 0 : index
    %6 = vector.load %arg5[%c0_4, %c0_5] : memref<1x64xf32, #tpu.memory_space<vmem>>, vector<1x64xf32>
    %7 = vector.broadcast %6 : vector<1x64xf32> to vector<16x64xf32>
    %8 = arith.addf %5, %7 : vector<16x64xf32>
    %cst_6 = arith.constant 0.000000e+00 : f32
    %9 = vector.broadcast %cst_6 : f32 to vector<16x64xf32>
    %10 = arith.maximumf %8, %9 : vector<16x64xf32>
    %c0_7 = arith.constant 0 : index
    %c0_8 = arith.constant 0 : index
    %11 = vector.load %arg10[%c0_7, %c0_8] : memref<16x32xf32, #tpu.memory_space<vmem>>, vector<16x32xf32>
    %12 = arith.truncf %10 : vector<16x64xf32> to vector<16x64xbf16>
    %c0_9 = arith.constant 0 : index
    %c0_10 = arith.constant 0 : index
    %13 = vector.load %arg6[%c0_9, %c0_10] : memref<64x32xbf16, #tpu.memory_space<vmem>>, vector<64x32xbf16>
    %cst_11 = arith.constant dense<0.000000e+00> : vector<16x32xf32>
    %14 = tpu.matmul %12, %13, %cst_11 {dimension_numbers = #tpu.dot_dimension_numbers<[1], [0], [0], [1], [0, 0, 1, 1], [], []>} : vector<16x64xbf16>, vector<64x32xbf16>, vector<16x32xf32> -> vector<16x32xf32>
    %15 = arith.addf %11, %14 : vector<16x32xf32>
    %c0_12 = arith.constant 0 : index
    %c0_13 = arith.constant 0 : index
    %16 = vector.load %arg10[%c0_12, %c0_13] : memref<16x32xf32, #tpu.memory_space<vmem>>, vector<16x32xf32>
    tpu.vector_store %arg10[%c0_12, %c0_13], %15 {strides = array<i32>} : memref<16x32xf32, #tpu.memory_space<vmem>>, vector<16x32xf32>,
    %c0_i32_14 = arith.constant 0 : i32
    %17 = arith.cmpi eq, %arg1, %c0_i32_14 : i32
    %18 = arith.extui %17 : i1 to i32
    %c0_i32_15 = arith.constant 0 : i32
    %19 = arith.cmpi ne, %18, %c0_i32_15 : i32
    scf.if %19 {
      %c0_16 = arith.constant 0 : index
      %c0_17 = arith.constant 0 : index
      %20 = vector.load %arg10[%c0_16, %c0_17] : memref<16x32xf32, #tpu.memory_space<vmem>>, vector<16x32xf32>
      %c0_18 = arith.constant 0 : index
      %c0_19 = arith.constant 0 : index
      %21 = vector.load %arg7[%c0_18, %c0_19] : memref<1x32xf32, #tpu.memory_space<vmem>>, vector<1x32xf32>
      %22 = vector.broadcast %21 : vector<1x32xf32> to vector<16x32xf32>
      %23 = arith.addf %20, %22 : vector<16x32xf32>
      %c0_20 = arith.constant 0 : index
      %c0_21 = arith.constant 0 : index
      %24 = vector.load %arg2[%c0_20, %c0_21] : memref<16x32xf32, #tpu.memory_space<vmem>>, vector<16x32xf32>
      %25 = arith.addf %23, %24 : vector<16x32xf32>
      %c0_22 = arith.constant 0 : index
      %c0_23 = arith.constant 0 : index
      %26 = vector.load %arg8[%c0_22, %c0_23] : memref<16x32xf32, #tpu.memory_space<vmem>>, vector<16x32xf32>
      tpu.vector_store %arg8[%c0_22, %c0_23], %25 {strides = array<i32>} : memref<16x32xf32, #tpu.memory_space<vmem>>, vector<16x32xf32>,
    } else {
    }
    return
  }
  func.func @transform_0(%arg0: i32, %arg1: i32) -> (i32, i32) {
    %c0_i32 = arith.constant 0 : i32
    %c0_i32_0 = arith.constant 0 : i32
    return %arg0, %c0_i32 : i32, i32
  }
  func.func @transform_1(%arg0: i32, %arg1: i32) -> (i32, i32) {
    %c0_i32 = arith.constant 0 : i32
    %c0_i32_0 = arith.constant 0 : i32
    %c0_i32_1 = arith.constant 0 : i32
    return %c0_i32, %c0_i32_0 : i32, i32
  }
  func.func @transform_2(%arg0: i32, %arg1: i32) -> (i32, i32) {
    %c0_i32 = arith.constant 0 : i32
    %c0_i32_0 = arith.constant 0 : i32
    return %c0_i32, %arg1 : i32, i32
  }
  func.func @transform_3(%arg0: i32, %arg1: i32) -> (i32, i32) {
    %c0_i32 = arith.constant 0 : i32
    %c0_i32_0 = arith.constant 0 : i32
    return %c0_i32, %arg1 : i32, i32
  }
  func.func @transform_4(%arg0: i32, %arg1: i32) -> (i32, i32) {
    %c0_i32 = arith.constant 0 : i32
    %c0_i32_0 = arith.constant 0 : i32
    return %arg1, %c0_i32 : i32, i32
  }
  func.func @transform_5(%arg0: i32, %arg1: i32) -> (i32, i32) {
    %c0_i32 = arith.constant 0 : i32
    %c0_i32_0 = arith.constant 0 : i32
    %c0_i32_1 = arith.constant 0 : i32
    return %c0_i32, %c0_i32_0 : i32, i32
  }
  func.func @transform_6(%arg0: i32, %arg1: i32) -> (i32, i32) {
    %c0_i32 = arith.constant 0 : i32
    %c0_i32_0 = arith.constant 0 : i32
    return %arg0, %c0_i32 : i32, i32
  }
}

module attributes {stable_mosaic.version = 11 : i64} {
  func.func @_layernorm_kernel(%arg0: i32, %arg1: memref<16x32xf32, #tpu.memory_space<vmem>>, %arg2: memref<2x32xf32, #tpu.memory_space<vmem>>, %arg3: memref<16x32xf32, #tpu.memory_space<vmem>>) attributes {dimension_semantics = [#tpu.dimension_semantics<parallel>], iteration_bounds = array<i64: 1>, scalar_prefetch = 0 : i64, scratch_operands = 0 : i64, tpu.core_type = #tpu.core_type<tc>, window_params = [{transform_indices = @transform_0, window_bounds = array<i64: 16, 32>}, {pipeline_mode = #tpu.pipeline_mode<synchronous>, transform_indices = @transform_1, window_bounds = array<i64: 2, 32>}, {transform_indices = @transform_2, window_bounds = array<i64: 16, 32>}]} {
    %c0 = arith.constant 0 : index
    %c0_0 = arith.constant 0 : index
    %0 = vector.load %arg1[%c0, %c0_0] : memref<16x32xf32, #tpu.memory_space<vmem>>, vector<16x32xf32>
    %c0_1 = arith.constant 0 : index
    %c0_2 = arith.constant 0 : index
    %1 = vector.load %arg2[%c0_1, %c0_2] : memref<2x32xf32, #tpu.memory_space<vmem>>, vector<2x32xf32>
    %cst = arith.constant dense<0.000000e+00> : vector<16xf32>
    %2 = vector.multi_reduction <add>, %0, %cst [1] : vector<16x32xf32> to vector<16xf32>
    %3 = vector.shape_cast %2 : vector<16xf32> to vector<16x1xf32>
    %cst_3 = arith.constant 3.200000e+01 : f32
    %4 = vector.broadcast %cst_3 : f32 to vector<16x1xf32>
    %5 = arith.divf %3, %4 : vector<16x1xf32>
    %6 = vector.broadcast %5 : vector<16x1xf32> to vector<16x32xf32>
    %7 = arith.subf %0, %6 : vector<16x32xf32>
    %8 = arith.mulf %7, %7 : vector<16x32xf32>
    %cst_4 = arith.constant dense<0.000000e+00> : vector<16xf32>
    %9 = vector.multi_reduction <add>, %8, %cst_4 [1] : vector<16x32xf32> to vector<16xf32>
    %10 = vector.shape_cast %9 : vector<16xf32> to vector<16x1xf32>
    %cst_5 = arith.constant 0.0322580636 : f32
    %11 = vector.broadcast %cst_5 : f32 to vector<16x1xf32>
    %12 = arith.mulf %10, %11 : vector<16x1xf32>
    %13 = math.sqrt %12 : vector<16x1xf32>
    %14 = vector.extract_strided_slice %1 {offsets = [0, 0], sizes = [1, 32], strides = [1, 1]} : vector<2x32xf32> to vector<1x32xf32>
    %cst_6 = arith.constant 9.99999997E-7 : f32
    %15 = vector.broadcast %cst_6 : f32 to vector<16x1xf32>
    %16 = arith.addf %13, %15 : vector<16x1xf32>
    %17 = vector.broadcast %16 : vector<16x1xf32> to vector<16x32xf32>
    %18 = arith.divf %7, %17 : vector<16x32xf32>
    %19 = vector.broadcast %14 : vector<1x32xf32> to vector<16x32xf32>
    %20 = arith.mulf %19, %18 : vector<16x32xf32>
    %21 = vector.extract_strided_slice %1 {offsets = [1, 0], sizes = [1, 32], strides = [1, 1]} : vector<2x32xf32> to vector<1x32xf32>
    %22 = vector.broadcast %21 : vector<1x32xf32> to vector<16x32xf32>
    %23 = arith.addf %20, %22 : vector<16x32xf32>
    %c0_7 = arith.constant 0 : index
    %c0_8 = arith.constant 0 : index
    %24 = vector.load %arg3[%c0_7, %c0_8] : memref<16x32xf32, #tpu.memory_space<vmem>>, vector<16x32xf32>
    tpu.vector_store %arg3[%c0_7, %c0_8], %23 {strides = array<i32>} : memref<16x32xf32, #tpu.memory_space<vmem>>, vector<16x32xf32>,
    return
  }
  func.func @transform_0(%arg0: i32) -> (i32, i32) {
    %c0_i32 = arith.constant 0 : i32
    %c0_i32_0 = arith.constant 0 : i32
    return %arg0, %c0_i32 : i32, i32
  }
  func.func @transform_1(%arg0: i32) -> (i32, i32) {
    %c0_i32 = arith.constant 0 : i32
    %c0_i32_0 = arith.constant 0 : i32
    %c0_i32_1 = arith.constant 0 : i32
    return %c0_i32, %c0_i32_0 : i32, i32
  }
  func.func @transform_2(%arg0: i32) -> (i32, i32) {
    %c0_i32 = arith.constant 0 : i32
    %c0_i32_0 = arith.constant 0 : i32
    return %arg0, %c0_i32 : i32, i32
  }
}

</mosaic_0001>

<bundles_post_ra>
// kernel: decoder_forward.19
= control target key start
LH: loop header
LB: loop body
LE: loop exit
PB: predicated region body
PF: predicated region fallthrough
CT: control target
= control target key end

     0   :  { %vm22_vm0 = vcmask 261120   ;;  %v111_v1 = vmov 0.0   ;;  %s168_s1 = inlined_call_operand.vmem [shape: bf16[32,32], index: 1, kind: input, shape index: {}]   ;;  %s169_s2 = inlined_call_operand.vmem [shape: f32[1,32], index: 2, kind: input, shape index: {}]   ;;  %s170_s0 = inlined_call_operand.vmem [shape: bf16[16,32], index: 0, kind: input, shape index: {}]   ;;  %s171_s3 = inlined_call_operand.vmem [shape: f32[16,32], index: 3, kind: input, shape index: {}]   ;;  %s172_s4 = inlined_call_operand.vmem [shape: f32[16,32], index: 4, kind: output, shape index: {}]  }
   0x1   :  { %v108_v0 = vld [vmem:[%s168_s1 + $0x8] sm:$0xff]  ;;  %23 = vst.msk [vmem:[#allocation2] sm:$0xff] %vm22_vm0, %v111_v1  ;;  %v107_v2 = vld [vmem:[%s168_s1] sm:$0xff] }
   0x2   :  { %24 = vst.msk [vmem:[#allocation2 + $0x8] sm:$0xff] %vm22_vm0, %v111_v1  ;;  %60 = vmatpush.bf16.msra.mxu0 %v108_v0  ;;  %v106_v3 = vld [vmem:[%s170_s0] sm:$0xff]  ;;  %v84_v16 = vld [vmem:[%s171_s3 + $0x8] sm:$0xff] }
   0x3   :  { %v110_v8 = vld [vmem:[%s169_s2] ss:$0 sm:$0xff] }
   0x4   :  { %v83_v12 = vld [vmem:[%s171_s3] sm:$0xff] }
   0x6   :  { %61 = vmatpush.bf16.msra.mxu0 %v107_v2 }
   0x8   :  { %v25_v4 = vld [vmem:[#allocation2] sm:$0xff] }
   0x9   :  { %105 = vmatmul.msk.bf16.vlgmr.msra.gmra.mxu0 %vm22_vm0, %v106_v3  ;;  %v26_v7 = vld [vmem:[#allocation2 + $0x8] sm:$0xff] }
  0x86   :  { %v63_v5 = vpop.f32.mrf.mxu0 }
  0x87   :  { %v68_v6 = vadd.f32 %v63_v5, %v25_v4 }
  0x89   :  { %70 = vst.msk [vmem:[#allocation2] sm:$0xff] %vm22_vm0, %v68_v6 }
  0x8e   :  { %v65_v9 = vpop.f32.mrf.mxu0 }
  0x8f   :  { %v69_v10 = vadd.f32 %v65_v9, %v26_v7 }
  0x90   :  { %v75_v11 = vld [vmem:[#allocation2] sm:$0xff] }
  0x91   :  { %v81_v13 = vadd.f32 %v110_v8, %v75_v11  ;;  %71 = vst.msk [vmem:[#allocation2 + $0x8] sm:$0xff] %vm22_vm0, %v69_v10 }
  0x93   :  { %v85_v14 = vadd.f32 %v83_v12, %v81_v13 }
  0x95   :  { %87 = vst.msk [vmem:[%s172_s4] sm:$0xff] %vm22_vm0, %v85_v14 }
  0x98   :  { %v76_v15 = vld [vmem:[#allocation2 + $0x8] sm:$0xff] }
  0x99   :  { %v82_v17 = vadd.f32 %v110_v8, %v76_v15 }
  0x9b   :  { %v86_v18 = vadd.f32 %v84_v16, %v82_v17 }
  0x9d   :  { %88 = vst.msk [vmem:[%s172_s4 + $0x8] sm:$0xff] %vm22_vm0, %v86_v18 }

// kernel: decoder_forward.17
= control target key start
LH: loop header
LB: loop body
LE: loop exit
PB: predicated region body
PF: predicated region fallthrough
CT: control target
= control target key end

     0   :  { %vm21_vm0 = vcmask 261120   ;;  %v181_v4 = vmov 32.0   ;;  %vm151_vm14 = vcmask 781312   ;;  %s246_s0 = inlined_call_operand.vmem [shape: f32[16,32], index: 0, kind: input, shape index: {}]   ;;  %s247_s3 = inlined_call_operand.vmem [shape: f32[1,96], index: 3, kind: input, shape index: {}]   ;;  %s248_s2 = inlined_call_operand.vmem [shape: bf16[32,96], index: 2, kind: input, shape index: {}]   ;;  %s249_s1 = inlined_call_operand.vmem [shape: f32[2,32], index: 1, kind: input, shape index: {}]   ;;  %s250_s4 = inlined_call_operand.vmem [shape: bf16[16,96], index: 4, kind: output, shape index: {}]  }
   0x1   :  { %v18_v0 = vld [vmem:[%s246_s0] sm:$0xff]  ;;  %v19_v2 = vld [vmem:[%s246_s0 + $0x8] sm:$0xff]  ;;  %171 = vrcp.f32 %v181_v4 }
   0x2   :  { %v22_v1 = vsel %vm21_vm0, %v18_v0, 0.0  ;;  %v25_v3 = vsel %vm21_vm0, %v19_v2, 0.0  ;;  %v168_v21 = vld [vmem:[%s248_s2 + $0x8] sm:$0xff]  ;;  %v167_v23 = vld [vmem:[%s248_s2] sm:$0xff] }
   0x3   :  { %23 = vadd.xlane.f32.xlu0 %v22_v1  ;;  %141 = vmatpush.bf16.msra.mxu0 %v168_v21  ;;  %v20_v61 = vld [vmem:[%s249_s1] sm:$0x3] }
   0x4   :  { %v105_v4 = vperm.slane %v20_v61, 0 }
   0x7   :  { %v172_v5 = vpop.eup %171  ;;  %142 = vmatpush.bf16.msra.mxu0 %v167_v23 }
   0x8   :  { %v29_v6 = vmul.f32 32.0, %v172_v5  ;;  %vm33_vm1 = vweird.f32 %v172_v5 }
   0xa   :  { %v30_v7 = vsub.f32 1.0, %v29_v6 }
   0xb   :  { %26 = vadd.xlane.f32.xlu0 %v25_v3 }
   0xc   :  { %v31_v8 = vmul.f32 %v172_v5, %v30_v7 }
   0xe   :  { %v32_v9 = vadd.f32 %v172_v5, %v31_v8 }
  0x10   :  { %v34_v10 = vsel %vm33_vm1, %v172_v5, %v32_v9 }
  0x76   :  { %v24_v11 = vpop.xlane.xlu0 %23 }
  0x77   :  { %v35_v12 = vmul.f32 %v34_v10, %v24_v11 }
  0x79   :  { %v215_v13 = vsub.f32 %v18_v0, %v35_v12 }
  0x7b   :  { %v39_v14 = vmul.f32 %v215_v13, %v215_v13 }
  0x7d   :  { %v41_v15 = vsel %vm21_vm0, %v39_v14, 0.0 }
  0x7e   :  { %42 = vadd.xlane.f32.xlu1 %v41_v15  ;;  %v27_v16 = vpop.xlane.xlu0 %26 }
  0x7f   :  { %v36_v17 = vmul.f32 %v34_v10, %v27_v16  ;;  %v108_v10 = vperm.slane %v20_v61, 1 }
  0x81   :  { %v220_v18 = vsub.f32 %v19_v2, %v36_v17 }
  0x83   :  { %v40_v19 = vmul.f32 %v220_v18, %v220_v18 }
  0x85   :  { %v44_v20 = vsel %vm21_vm0, %v40_v19, 0.0 }
  0x86   :  { %45 = vadd.xlane.f32.xlu1 %v44_v20 }
  0xf1   :  { %v43_v22 = vpop.xlane.xlu1 %42 }
  0xf2   :  { %v47_v24 = vmul.f32 0.032258064, %v43_v22 }
  0xf4   :  { %173 = vrsqrt.f32 %v47_v24  ;;  %vm56_vm2 = vcmp.eq.f32.partialorder %v47_v24, inf  ;;  %v59_v37 = vand.u32 2147483648, %v47_v24  ;;  %vm58_vm3 = vcmp.eq.f32.partialorder %v47_v24, 0.0 }
  0xf9   :  { %v46_v25 = vpop.xlane.xlu1 %45 }
  0xfa   :  { %v174_v26 = vpop.eup %173  ;;  %v48_v27 = vmul.f32 0.032258064, %v46_v25 }
  0xfb   :  { %v50_v28 = vmul.f32 %v174_v26, %v47_v24 }
  0xfc   :  { %175 = vrsqrt.f32 %v48_v27  ;;  %vm68_vm4 = vcmp.eq.f32.partialorder %v48_v27, inf  ;;  %v71_v45 = vand.u32 2147483648, %v48_v27  ;;  %vm70_vm5 = vcmp.eq.f32.partialorder %v48_v27, 0.0 }
  0xfd   :  { %v51_v29 = vmul.f32 %v174_v26, %v50_v28 }
  0xff   :  { %v52_v30 = vmul.f32 0.5, %v51_v29 }
 0x101   :  { %v53_v31 = vsub.f32 1.5, %v52_v30 }
 0x102   :  { %v176_v32 = vpop.eup %175 }
 0x103   :  { %v54_v33 = vmul.f32 %v174_v26, %v53_v31  ;;  %v62_v34 = vmul.f32 %v176_v32, %v48_v27 }
 0x105   :  { %v55_v35 = vmul.f32 %v54_v33, %v47_v24  ;;  %v63_v36 = vmul.f32 %v176_v32, %v62_v34 }
 0x107   :  { %v57_v38 = vsel %vm56_vm2, %v47_v24, %v55_v35  ;;  %v64_v39 = vmul.f32 0.5, %v63_v36 }
 0x108   :  { %v60_v40 = vsel %vm58_vm3, %v59_v37, %v57_v38 }
 0x109   :  { %v65_v41 = vsub.f32 1.5, %v64_v39  ;;  %v73_v42 = vadd.f32 1e-06, %v60_v40 }
 0x10b   :  { %v66_v43 = vmul.f32 %v176_v32, %v65_v41  ;;  %177 = vrcp.f32 %v73_v42  ;;  %v86_v53 = vand.u32 2147483648, %v73_v42  ;;  %vm80_vm7 = vweird.f32 %v73_v42 }
 0x10c   :  { %v84_v55 = vand.u32 2147483647, %v73_v42 }
 0x10d   :  { %v67_v44 = vmul.f32 %v66_v43, %v48_v27  ;;  %v87_v59 = vor.u32 1.1754944e-38, %v86_v53 }
 0x10e   :  { %vm85_vm9 = vcmp.eq.f32.partialorder %v84_v55, 8.507059e+37 }
 0x10f   :  { %v69_v46 = vsel %vm68_vm4, %v48_v27, %v67_v44 }
 0x110   :  { %v72_v47 = vsel %vm70_vm5, %v71_v45, %v69_v46 }
 0x111   :  { %v178_v48 = vpop.eup %177  ;;  %v74_v49 = vadd.f32 1e-06, %v72_v47 }
 0x112   :  { %v76_v50 = vmul.f32 %v178_v48, %v73_v42  ;;  %vm81_vm6 = vweird.f32 %v178_v48 }
 0x113   :  { %179 = vrcp.f32 %v74_v49  ;;  %vm82_vm8 = vmor %vm80_vm7, %vm81_vm6  ;;  %v101_v63 = vand.u32 2147483648, %v74_v49  ;;  %v99_v1 = vand.u32 2147483647, %v74_v49  ;;  %vm95_vm11 = vweird.f32 %v74_v49 }
 0x114   :  { %v77_v51 = vsub.f32 1.0, %v76_v50 }
 0x115   :  { %v102_v5 = vor.u32 1.1754944e-38, %v101_v63  ;;  %vm100_vm13 = vcmp.eq.f32.partialorder %v99_v1, 8.507059e+37 }
 0x116   :  { %v78_v52 = vmul.f32 %v178_v48, %v77_v51 }
 0x118   :  { %v79_v54 = vadd.f32 %v178_v48, %v78_v52 }
 0x119   :  { %v180_v56 = vpop.eup %179 }
 0x11a   :  { %v83_v57 = vsel %vm82_vm8, %v178_v48, %v79_v54  ;;  %v91_v58 = vmul.f32 %v180_v56, %v74_v49  ;;  %vm96_vm10 = vweird.f32 %v180_v56 }
 0x11b   :  { %v88_v62 = vsel %vm85_vm9, %v87_v59, %v83_v57  ;;  %vm97_vm12 = vmor %vm95_vm11, %vm96_vm10 }
 0x11c   :  { %v92_v60 = vsub.f32 1.0, %v91_v58  ;;  %v89_v2 = vmul.f32 %v88_v62, %v215_v13  ;;  %v170_v13 = vld [vmem:[%s247_s3] ss:$0 sm:$0xff] }
 0x11e   :  { %v93_v0 = vmul.f32 %v180_v56, %v92_v60  ;;  %v106_v9 = vmul.f32 %v105_v4, %v89_v2 }
 0x120   :  { %v94_v3 = vadd.f32 %v180_v56, %v93_v0  ;;  %v109_v12 = vadd.f32 %v108_v10, %v106_v9 }
 0x122   :  { %v98_v6 = vsel %vm97_vm12, %v180_v56, %v94_v3 }
 0x123   :  { %v103_v7 = vsel %vm100_vm13, %v102_v5, %v98_v6 }
 0x124   :  { %v104_v8 = vmul.f32 %v103_v7, %v220_v18 }
 0x126   :  { %v107_v11 = vmul.f32 %v105_v4, %v104_v8 }
 0x128   :  { %v110_v14 = vadd.f32 %v108_v10, %v107_v11 }
 0x12a   :  { %v111_v15 = vpack.c.bf16 %v110_v14, %v109_v12 }
 0x12c   :  { %166 = vmatmul.msk.bf16.vlgmr.msra.gmra.mxu0 %vm21_vm0, %v111_v15 }
 0x1a9   :  { %v144_v16 = vpop.f32.mrf.mxu0 }
 0x1aa   :  { %v145_v17 = vadd.f32 %v170_v13, %v144_v16 }
 0x1ac   :  { %v149_v19 = vpack.c.bf16 %v145_v17, %v145_v17 }
 0x1ae   :  { %152 = vst.msk [vmem:[%s250_s4] sm:$0xf] %vm151_vm14, %v149_v19 }
 0x1b1   :  { %v146_v18 = vpop.f32.mrf.mxu0 }
 0x1b2   :  { %v147_v20 = vadd.f32 %v170_v13, %v146_v18 }
 0x1b4   :  { %v150_v21 = vpack.c.bf16 %v147_v20, %v147_v20 }
 0x1b6   :  { %153 = vst.msk [vmem:[%s250_s4 + $0x4] sm:$0xf] %vm151_vm14, %v150_v21 }

// kernel: decoder_forward.20
= control target key start
LH: loop header
LB: loop body
LE: loop exit
PB: predicated region body
PF: predicated region fallthrough
CT: control target
= control target key end

     0   :  { %vm21_vm0 = vcmask 261120   ;;  %v181_v4 = vmov 32.0   ;;  %vm151_vm14 = vcmask 257024   ;;  %s246_s0 = inlined_call_operand.vmem [shape: f32[16,32], index: 0, kind: input, shape index: {}]   ;;  %s247_s3 = inlined_call_operand.vmem [shape: f32[1,32], index: 3, kind: input, shape index: {}]   ;;  %s248_s2 = inlined_call_operand.vmem [shape: bf16[32,32], index: 2, kind: input, shape index: {}]   ;;  %s249_s1 = inlined_call_operand.vmem [shape: f32[2,32], index: 1, kind: input, shape index: {}]   ;;  %s250_s4 = inlined_call_operand.vmem [shape: bf16[16,32], index: 4, kind: output, shape index: {}]  }
   0x1   :  { %v18_v0 = vld [vmem:[%s246_s0] sm:$0xff]  ;;  %v19_v2 = vld [vmem:[%s246_s0 + $0x8] sm:$0xff]  ;;  %171 = vrcp.f32 %v181_v4 }
   0x2   :  { %v22_v1 = vsel %vm21_vm0, %v18_v0, 0.0  ;;  %v25_v3 = vsel %vm21_vm0, %v19_v2, 0.0  ;;  %v168_v21 = vld [vmem:[%s248_s2 + $0x8] sm:$0xff]  ;;  %v167_v23 = vld [vmem:[%s248_s2] sm:$0xff] }
   0x3   :  { %23 = vadd.xlane.f32.xlu0 %v22_v1  ;;  %141 = vmatpush.bf16.msra.mxu0 %v168_v21  ;;  %v20_v61 = vld [vmem:[%s249_s1] sm:$0x3] }
   0x4   :  { %v105_v4 = vperm.slane %v20_v61, 0 }
   0x7   :  { %v172_v5 = vpop.eup %171  ;;  %142 = vmatpush.bf16.msra.mxu0 %v167_v23 }
   0x8   :  { %v29_v6 = vmul.f32 32.0, %v172_v5  ;;  %vm33_vm1 = vweird.f32 %v172_v5 }
   0xa   :  { %v30_v7 = vsub.f32 1.0, %v29_v6 }
   0xb   :  { %26 = vadd.xlane.f32.xlu0 %v25_v3 }
   0xc   :  { %v31_v8 = vmul.f32 %v172_v5, %v30_v7 }
   0xe   :  { %v32_v9 = vadd.f32 %v172_v5, %v31_v8 }
  0x10   :  { %v34_v10 = vsel %vm33_vm1, %v172_v5, %v32_v9 }
  0x76   :  { %v24_v11 = vpop.xlane.xlu0 %23 }
  0x77   :  { %v35_v12 = vmul.f32 %v34_v10, %v24_v11 }
  0x79   :  { %v215_v13 = vsub.f32 %v18_v0, %v35_v12 }
  0x7b   :  { %v39_v14 = vmul.f32 %v215_v13, %v215_v13 }
  0x7d   :  { %v41_v15 = vsel %vm21_vm0, %v39_v14, 0.0 }
  0x7e   :  { %42 = vadd.xlane.f32.xlu1 %v41_v15  ;;  %v27_v16 = vpop.xlane.xlu0 %26 }
  0x7f   :  { %v36_v17 = vmul.f32 %v34_v10, %v27_v16  ;;  %v108_v10 = vperm.slane %v20_v61, 1 }
  0x81   :  { %v220_v18 = vsub.f32 %v19_v2, %v36_v17 }
  0x83   :  { %v40_v19 = vmul.f32 %v220_v18, %v220_v18 }
  0x85   :  { %v44_v20 = vsel %vm21_vm0, %v40_v19, 0.0 }
  0x86   :  { %45 = vadd.xlane.f32.xlu1 %v44_v20 }
  0xf1   :  { %v43_v22 = vpop.xlane.xlu1 %42 }
  0xf2   :  { %v47_v24 = vmul.f32 0.032258064, %v43_v22 }
  0xf4   :  { %173 = vrsqrt.f32 %v47_v24  ;;  %vm56_vm2 = vcmp.eq.f32.partialorder %v47_v24, inf  ;;  %v59_v37 = vand.u32 2147483648, %v47_v24  ;;  %vm58_vm3 = vcmp.eq.f32.partialorder %v47_v24, 0.0 }
  0xf9   :  { %v46_v25 = vpop.xlane.xlu1 %45 }
  0xfa   :  { %v174_v26 = vpop.eup %173  ;;  %v48_v27 = vmul.f32 0.032258064, %v46_v25 }
  0xfb   :  { %v50_v28 = vmul.f32 %v174_v26, %v47_v24 }
  0xfc   :  { %175 = vrsqrt.f32 %v48_v27  ;;  %vm68_vm4 = vcmp.eq.f32.partialorder %v48_v27, inf  ;;  %v71_v45 = vand.u32 2147483648, %v48_v27  ;;  %vm70_vm5 = vcmp.eq.f32.partialorder %v48_v27, 0.0 }
  0xfd   :  { %v51_v29 = vmul.f32 %v174_v26, %v50_v28 }
  0xff   :  { %v52_v30 = vmul.f32 0.5, %v51_v29 }
 0x101   :  { %v53_v31 = vsub.f32 1.5, %v52_v30 }
 0x102   :  { %v176_v32 = vpop.eup %175 }
 0x103   :  { %v54_v33 = vmul.f32 %v174_v26, %v53_v31  ;;  %v62_v34 = vmul.f32 %v176_v32, %v48_v27 }
 0x105   :  { %v55_v35 = vmul.f32 %v54_v33, %v47_v24  ;;  %v63_v36 = vmul.f32 %v176_v32, %v62_v34 }
 0x107   :  { %v57_v38 = vsel %vm56_vm2, %v47_v24, %v55_v35  ;;  %v64_v39 = vmul.f32 0.5, %v63_v36 }
 0x108   :  { %v60_v40 = vsel %vm58_vm3, %v59_v37, %v57_v38 }
 0x109   :  { %v65_v41 = vsub.f32 1.5, %v64_v39  ;;  %v73_v42 = vadd.f32 1e-06, %v60_v40 }
 0x10b   :  { %v66_v43 = vmul.f32 %v176_v32, %v65_v41  ;;  %177 = vrcp.f32 %v73_v42  ;;  %v86_v53 = vand.u32 2147483648, %v73_v42  ;;  %vm80_vm7 = vweird.f32 %v73_v42 }
 0x10c   :  { %v84_v55 = vand.u32 2147483647, %v73_v42 }
 0x10d   :  { %v67_v44 = vmul.f32 %v66_v43, %v48_v27  ;;  %v87_v59 = vor.u32 1.1754944e-38, %v86_v53 }
 0x10e   :  { %vm85_vm9 = vcmp.eq.f32.partialorder %v84_v55, 8.507059e+37 }
 0x10f   :  { %v69_v46 = vsel %vm68_vm4, %v48_v27, %v67_v44 }
 0x110   :  { %v72_v47 = vsel %vm70_vm5, %v71_v45, %v69_v46 }
 0x111   :  { %v178_v48 = vpop.eup %177  ;;  %v74_v49 = vadd.f32 1e-06, %v72_v47 }
 0x112   :  { %v76_v50 = vmul.f32 %v178_v48, %v73_v42  ;;  %vm81_vm6 = vweird.f32 %v178_v48 }
 0x113   :  { %179 = vrcp.f32 %v74_v49  ;;  %vm82_vm8 = vmor %vm80_vm7, %vm81_vm6  ;;  %v101_v63 = vand.u32 2147483648, %v74_v49  ;;  %v99_v1 = vand.u32 2147483647, %v74_v49  ;;  %vm95_vm11 = vweird.f32 %v74_v49 }
 0x114   :  { %v77_v51 = vsub.f32 1.0, %v76_v50 }
 0x115   :  { %v102_v5 = vor.u32 1.1754944e-38, %v101_v63  ;;  %vm100_vm13 = vcmp.eq.f32.partialorder %v99_v1, 8.507059e+37 }
 0x116   :  { %v78_v52 = vmul.f32 %v178_v48, %v77_v51 }
 0x118   :  { %v79_v54 = vadd.f32 %v178_v48, %v78_v52 }
 0x119   :  { %v180_v56 = vpop.eup %179 }
 0x11a   :  { %v83_v57 = vsel %vm82_vm8, %v178_v48, %v79_v54  ;;  %v91_v58 = vmul.f32 %v180_v56, %v74_v49  ;;  %vm96_vm10 = vweird.f32 %v180_v56 }
 0x11b   :  { %v88_v62 = vsel %vm85_vm9, %v87_v59, %v83_v57  ;;  %vm97_vm12 = vmor %vm95_vm11, %vm96_vm10 }
 0x11c   :  { %v92_v60 = vsub.f32 1.0, %v91_v58  ;;  %v89_v2 = vmul.f32 %v88_v62, %v215_v13  ;;  %v170_v13 = vld [vmem:[%s247_s3] ss:$0 sm:$0xff] }
 0x11e   :  { %v93_v0 = vmul.f32 %v180_v56, %v92_v60  ;;  %v106_v9 = vmul.f32 %v105_v4, %v89_v2 }
 0x120   :  { %v94_v3 = vadd.f32 %v180_v56, %v93_v0  ;;  %v109_v12 = vadd.f32 %v108_v10, %v106_v9 }
 0x122   :  { %v98_v6 = vsel %vm97_vm12, %v180_v56, %v94_v3 }
 0x123   :  { %v103_v7 = vsel %vm100_vm13, %v102_v5, %v98_v6 }
 0x124   :  { %v104_v8 = vmul.f32 %v103_v7, %v220_v18 }
 0x126   :  { %v107_v11 = vmul.f32 %v105_v4, %v104_v8 }
 0x128   :  { %v110_v14 = vadd.f32 %v108_v10, %v107_v11 }
 0x12a   :  { %v111_v15 = vpack.c.bf16 %v110_v14, %v109_v12 }
 0x12c   :  { %166 = vmatmul.msk.bf16.vlgmr.msra.gmra.mxu0 %vm21_vm0, %v111_v15 }
 0x1a9   :  { %v144_v16 = vpop.f32.mrf.mxu0 }
 0x1aa   :  { %v145_v17 = vadd.f32 %v170_v13, %v144_v16 }
 0x1ac   :  { %v149_v19 = vpack.c.bf16 %v145_v17, %v145_v17 }
 0x1ae   :  { %152 = vst.msk [vmem:[%s250_s4] sm:$0xf] %vm151_vm14, %v149_v19 }
 0x1b1   :  { %v146_v18 = vpop.f32.mrf.mxu0 }
 0x1b2   :  { %v147_v20 = vadd.f32 %v170_v13, %v146_v18 }
 0x1b4   :  { %v150_v21 = vpack.c.bf16 %v147_v20, %v147_v20 }
 0x1b6   :  { %153 = vst.msk [vmem:[%s250_s4 + $0x4] sm:$0xf] %vm151_vm14, %v150_v21 }

// kernel: decoder_forward.18
= control target key start
LH: loop header
LB: loop body
LE: loop exit
PB: predicated region body
PF: predicated region fallthrough
CT: control target
= control target key end

     0   :  { %s974_s15 = smov 0   ;;  %s976_s16 = smov 0   ;;  %s1115_s0 = inlined_call_operand.vmem [shape: bf16[2,4,8,8], index: 0, kind: input, shape index: {}]   ;;  %s1116_s1 = inlined_call_operand.vmem [shape: bf16[2,4,8,8], index: 1, kind: input, shape index: {}]   ;;  %s1117_s2 = inlined_call_operand.vmem [shape: bf16[2,4,8,8], index: 2, kind: input, shape index: {}]   ;;  %s1118_s3 = inlined_call_operand.vmem [shape: s32[1,1,8,8], index: 3, kind: input, shape index: {}]   ;;  %s1119_s4 = inlined_call_operand.vmem [shape: bf16[2,4,8,8], index: 4, kind: output, shape index: {}]  }
   0x1   :  { %s978_s17 = smov 0  }
   0x2 LB: > { %s33_s18 = sadd.s32 1, %s940_s16  ;;  %p845_p0 = scmp.ge.s32.totalorder %s944_s17, 1  ;;  %s944_s17 = sphi %s978_s17, %s14_s17   ;;  %s940_s16 = sphi %s976_s16, %s1121_s16   ;;  %s936_s15 = sphi %s974_s15, %s1120_s15  }
   0x3   : > { %p35_p1 = scmp.ge.s32.totalorder %s33_s18, 2  ;;  %p232_p2 = scmp.lt.s32.totalorder %s944_s17, 3 }
   0x5   : > { %s1123_s18 = smov (%p35_p1, %s33_s18), 0  ;;  %p233_p3 = pnand %p845_p0, %p232_p2 }
   0x6   : > { %p287_p4 = scmp.lt.s32.totalorder (!%p233_p3), %s936_s15, 1 }
   0x7   : > { %236 = sbr.rel (%p233_p3) target bundleno = 700 (0x2bc), region = 36 }
   0xc   : > { %vm340_vm0 = vcmask 64512   ;;  %v946_v0 = vmov 0.0   ;;  %s1125_s15 = smov (!%p287_p4, %s936_s15), 1  ;;  %vm331_vm1 = vcmask 7168   ;;  %v947_v13 = vmov -inf   ;;  %v357_v14 = vld [vmem:[%s1118_s3] sm:$0xff] }
   0xd   : > { %341 = vst.msk [vmem:[#allocation4] sm:$0xff] %vm340_vm0, %v946_v0  ;;  %s995_s19 = sshll.u32 %s1125_s15, 4  ;;  %vm358_vm2 = vcmp.eq.s32.totalorder %v357_v14, 0  ;;  %v948_v32 = vmov 0   ;;  %vm537_vm3 = vcmask 1043456   ;;  %vm694_vm4 = vcmask 60416  }
   0xe   : > { %342 = vst.msk [vmem:[#allocation4 + $0x8] sm:$0xff] %vm340_vm0, %v946_v0  ;;  %s302_s22 = scalar_lea.vmem %s1116_s1, %s995_s19  ;;  %s294_s25 = scalar_lea.vmem %s1115_s0, %s995_s19  ;;  %v359_v15 = vsel %vm358_vm2, -1e+09, %v946_v0  ;;  %896 = vset.pattern.permute.xlu0 %v948_v32  ;;  %895 = vset.pattern.permute.xlu2 %v948_v32 }
   0xf   : > { %343 = vst.msk [vmem:[#allocation4 + $0x10] sm:$0xff] %vm340_vm0, %v946_v0  ;;  %v349_v1 = vld [vmem:[%s302_s22] sm:$0xf]  ;;  %v351_v2 = vld [vmem:[%s302_s22 + $0x8] sm:$0xf]  ;;  %897 = vset.pattern.permute.xlu1 %v948_v32  ;;  %s310_s30 = scalar_lea.vmem %s1117_s2, %s995_s19  ;;  %s325_s7 = scalar_lea.vmem %s1119_s4, %s995_s19 }
  0x10   : > { %344 = vst.msk [vmem:[#allocation4 + $0x18] sm:$0xff] %vm340_vm0, %v946_v0  ;;  %v365_v3 = vsel %vm340_vm0, %v349_v1, 0  ;;  %v403_v4 = vsel %vm340_vm0, %v351_v2, 0  ;;  %v350_v5 = vld [vmem:[%s302_s22 + $0x4] sm:$0xf] }
  0x11   : > { %374 = vmatpush.bf16.xpose.msra.mxu0 %v365_v3  ;;  %412 = vmatpush.bf16.xpose.msra.mxu2 %v403_v4  ;;  %v384_v6 = vsel %vm340_vm0, %v350_v5, 0  ;;  %v352_v7 = vld [vmem:[%s302_s22 + $0xc] sm:$0xf]  ;;  %v345_v9 = vld [vmem:[%s294_s25] sm:$0xf]  ;;  %332 = vst.msk [vmem:[#allocation2] sm:$0xff] %vm331_vm1, %v947_v13 }
  0x12   : > { %393 = vmatpush.bf16.xpose.msra.mxu1 %v384_v6  ;;  %v422_v8 = vsel %vm340_vm0, %v352_v7, 0  ;;  %v347_v10 = vld [vmem:[%s294_s25 + $0x8] sm:$0xf]  ;;  %v346_v11 = vld [vmem:[%s294_s25 + $0x4] sm:$0xf]  ;;  %333 = vst.msk [vmem:[#allocation2 + $0x8] sm:$0xff] %vm331_vm1, %v947_v13 }
  0x13   : > { %431 = vmatpush.bf16.xpose.msra.mxu3 %v422_v8  ;;  %v348_v12 = vld [vmem:[%s294_s25 + $0xc] sm:$0xf]  ;;  %334 = vst.msk [vmem:[#allocation2 + $0x10] sm:$0xff] %vm331_vm1, %v947_v13  ;;  %v355_v49 = vld [vmem:[%s310_s30 + $0x8] sm:$0xf] }
  0x14   : > { %335 = vst.msk [vmem:[#allocation2 + $0x18] sm:$0xff] %vm331_vm1, %v947_v13  ;;  %v577_v50 = vsel %vm537_vm3, %v355_v49, 0  ;;  %v356_v51 = vld [vmem:[%s310_s30 + $0xc] sm:$0xf]  ;;  %v353_v53 = vld [vmem:[%s310_s30] sm:$0xf] }
  0x15   : > { %336 = vst.msk [vmem:[#allocation3] sm:$0xff] %vm331_vm1, %v946_v0  ;;  %v596_v52 = vsel %vm537_vm3, %v356_v51, 0  ;;  %v539_v54 = vsel %vm537_vm3, %v353_v53, 0  ;;  %v354_v56 = vld [vmem:[%s310_s30 + $0x4] sm:$0xf] }
  0x16   : > { %337 = vst.msk [vmem:[#allocation3 + $0x8] sm:$0xff] %vm331_vm1, %v946_v0  ;;  %v558_v58 = vsel %vm537_vm3, %v354_v56, 0 }
  0x17   : > { %338 = vst.msk [vmem:[#allocation3 + $0x10] sm:$0xff] %vm331_vm1, %v946_v0 }
  0x18   : > { %854 = vmatmul.msk.bf16.vlgmr.msra.gmra.mxu0 %vm340_vm0, %v345_v9  ;;  %856 = vmatmul.msk.bf16.vlgmr.msra.gmra.mxu2 %vm340_vm0, %v347_v10  ;;  %339 = vst.msk [vmem:[#allocation3 + $0x18] sm:$0xff] %vm331_vm1, %v946_v0  ;;  %v1035_v33 = vld [vmem:[#allocation2] sm:$0xff] }
  0x19   : > { %855 = vmatmul.msk.bf16.vlgmr.msra.gmra.mxu1 %vm340_vm0, %v346_v11  ;;  %v1047_v39 = vld [vmem:[#allocation2 + $0x8] sm:$0xff]  ;;  %586 = vmatpush.bf16.msrb.mxu2 %v577_v50 }
  0x1a   : > { %857 = vmatmul.msk.bf16.vlgmr.msra.gmra.mxu3 %vm340_vm0, %v348_v12  ;;  %v1045_v37 = vld [vmem:[#allocation2 + $0x10] sm:$0xff]  ;;  %548 = vmatpush.bf16.msrb.mxu0 %v539_v54 }
  0x1b   : > { %v1060_v45 = vld [vmem:[#allocation2 + $0x18] sm:$0xff]  ;;  %605 = vmatpush.bf16.msrb.mxu3 %v596_v52  ;;  %567 = vmatpush.bf16.msrb.mxu1 %v558_v58 }
  0x95   : > { %v376_v16 = vpop.f32.mrf.mxu0 }
  0x96   : > { %v1025_v17 = vadd.f32 %v376_v16, %v359_v15  ;;  %v395_v18 = vpop.f32.mrf.mxu1 }
  0x97   : > { %v1029_v20 = vadd.f32 %v395_v18, %v359_v15 }
  0x98   : > { %v441_v19 = vsel %vm340_vm0, %v1025_v17, -inf }
  0x99   : > { %442 = vmax.xlane.f32.xlu1 %v441_v19  ;;  %v444_v26 = vsel %vm340_vm0, %v1029_v20, -inf }
  0x9b   : > { %v414_v21 = vpop.f32.mrf.mxu2 }
  0x9c   : > { %v415_v22 = vadd.f32 %v414_v21, %v359_v15 }
  0x9d   : > { %v378_v23 = vpop.f32.mrf.mxu0  ;;  %v433_v24 = vpop.f32.mrf.mxu3 }
  0x9e   : > { %v447_v25 = vsel %vm340_vm0, %v415_v22, -inf  ;;  %v397_v27 = vpop.f32.mrf.mxu1  ;;  %v434_v28 = vadd.f32 %v433_v24, %v359_v15  ;;  %v503_v24 = vld [vmem:[#allocation3 + $0x10] sm:$0xff] }
  0x9f   : > { %448 = vmax.xlane.f32.xlu0 %v447_v25 }
  0xa0   : > { %v450_v30 = vsel %vm340_vm0, %v434_v28, -inf }
  0xa1   : > { %445 = vmax.xlane.f32.xlu1 %v444_v26 }
  0xa3   : > { %v416_v29 = vpop.f32.mrf.mxu2 }
  0xa5   : > { %v435_v31 = vpop.f32.mrf.mxu3 }
  0xa7   : > { %451 = vmax.xlane.f32.xlu0 %v450_v30  ;;  %v501_v30 = vld [vmem:[#allocation3] sm:$0xff] }
 0x10c   : > { %v443_v34 = vpop.xlane.xlu1 %442 }
 0x10d   : > { %v1038_v35 = vmax.f32 %v1035_v33, %v443_v34 }
 0x10f   : > { %v457_v36 = vsub.f32 %v1035_v33, %v1038_v35  ;;  %647 = vst.msk [vmem:[#allocation2] sm:$0xff] %vm331_vm1, %v1038_v35  ;;  %471 = vperm.xlu0 %896, %v1038_v35  }
 0x111   : > { %v461_v16 = vmul.f32 1.442695, %v457_v36  ;;  %v502_v36 = vld [vmem:[#allocation3 + $0x8] sm:$0xff] }
 0x112   : > { %v449_v38 = vpop.xlane.xlu0 %448 }
 0x113   : > { %v1050_v40 = vmax.f32 %v1045_v37, %v449_v38 }
 0x114   : > { %v446_v41 = vpop.xlane.xlu1 %445 }
 0x115   : > { %v459_v42 = vsub.f32 %v1045_v37, %v1050_v40  ;;  %649 = vst.msk [vmem:[#allocation2 + $0x10] sm:$0xff] %vm331_vm1, %v1050_v40  ;;  %v454_v43 = vmax.f32 %v1047_v39, %v446_v41  ;;  %481 = vperm.xlu2 %895, %v1050_v40   ;;  %v611_v37 = vld [vmem:[#allocation4] sm:$0xff] }
 0x117   : > { %v458_v44 = vsub.f32 %v1047_v39, %v454_v43  ;;  %648 = vst.msk [vmem:[#allocation2 + $0x8] sm:$0xff] %vm331_vm1, %v454_v43  ;;  %476 = vperm.xlu1 %897, %v454_v43  }
 0x119   : > { %v463_v18 = vmul.f32 1.442695, %v458_v44 }
 0x11a   : > { %v452_v46 = vpop.xlane.xlu0 %451 }
 0x11b   : > { %v1063_v47 = vmax.f32 %v1060_v45, %v452_v46 }
 0x11d   : > { %v460_v48 = vsub.f32 %v1060_v45, %v1063_v47  ;;  %650 = vst.msk [vmem:[#allocation2 + $0x18] sm:$0xff] %vm331_vm1, %v1063_v47  ;;  %486 = vperm.xlu2 %895, %v1063_v47  }
 0x11f   : > { %v467_v23 = vmul.f32 1.442695, %v460_v48  ;;  %v613_v48 = vld [vmem:[#allocation4 + $0x10] sm:$0xff] }
 0x16f   : > { %v482_v55 = vpop.permute.xlu2 %481 }
 0x170   : > { %v491_v57 = vsub.f32 %v415_v22, %v482_v55 }
 0x172   : > { %v497_v59 = vmul.f32 1.442695, %v491_v57 }
 0x174   : > { %898 = vpow2.f32 %v497_v59  ;;  %v612_v59 = vld [vmem:[#allocation4 + $0x8] sm:$0xff] }
 0x177   : > { %v487_v60 = vpop.permute.xlu2 %486 }
 0x178   : > { %v492_v61 = vsub.f32 %v434_v28, %v487_v60 }
 0x17a   : > { %v899_v62 = vpop.eup %898  ;;  %v499_v63 = vmul.f32 1.442695, %v492_v61 }
 0x17b   : > { %v515_v0 = vsel %vm340_vm0, %v899_v62, 0.0  ;;  %v532_v1 = vpack.c.bf16 %v899_v62, %v899_v62 }
 0x17c   : > { %900 = vpow2.f32 %v499_v63  ;;  %516 = vadd.xlane.f32.xlu0 %v515_v0  ;;  %v504_v63 = vld [vmem:[#allocation3 + $0x18] sm:$0xff] }
 0x17d   : > { %860 = vmatmul.msk.bf16.vlgmr.msrb.gmra.mxu2 %vm340_vm0, %v532_v1 }
 0x181   : > { %v472_v2 = vpop.permute.xlu0 %471 }
 0x182   : > { %v901_v3 = vpop.eup %900  ;;  %v489_v4 = vsub.f32 %v1025_v17, %v472_v2  ;;  %v465_v17 = vmul.f32 1.442695, %v459_v42 }
 0x183   : > { %v533_v5 = vpack.c.bf16 %v901_v3, %v901_v3  ;;  %v518_v22 = vsel %vm340_vm0, %v901_v3, 0.0  ;;  %v614_v3 = vld [vmem:[#allocation4 + $0x18] sm:$0xff] }
 0x184   : > { %v493_v6 = vmul.f32 1.442695, %v489_v4 }
 0x185   : > { %861 = vmatmul.msk.bf16.vlgmr.msrb.gmra.mxu3 %vm340_vm0, %v533_v5 }
 0x186   : > { %902 = vpow2.f32 %v493_v6 }
 0x189   : > { %v477_v7 = vpop.permute.xlu1 %476 }
 0x18a   : > { %v490_v8 = vsub.f32 %v1029_v20, %v477_v7 }
 0x18c   : > { %v903_v9 = vpop.eup %902  ;;  %v495_v10 = vmul.f32 1.442695, %v490_v8 }
 0x18d   : > { %v509_v11 = vsel %vm340_vm0, %v903_v9, 0.0  ;;  %v530_v12 = vpack.c.bf16 %v903_v9, %v903_v9 }
 0x18e   : > { %904 = vpow2.f32 %v495_v10  ;;  %510 = vadd.xlane.f32.xlu2 %v509_v11 }
 0x18f   : > { %858 = vmatmul.msk.bf16.vlgmr.msrb.gmra.mxu0 %vm340_vm0, %v530_v12  ;;  %906 = vpow2.f32 %v461_v16 }
 0x190   : > { %908 = vpow2.f32 %v465_v17 }
 0x191   : > { %910 = vpow2.f32 %v463_v18 }
 0x192   : > { %912 = vpow2.f32 %v467_v23 }
 0x194   : > { %v905_v13 = vpop.eup %904 }
 0x195   : > { %v512_v14 = vsel %vm340_vm0, %v905_v13, 0.0  ;;  %v531_v15 = vpack.c.bf16 %v905_v13, %v905_v13  ;;  %v907_v19 = vpop.eup %906 }
 0x196   : > { %513 = vadd.xlane.f32.xlu1 %v512_v14  ;;  %v909_v20 = vpop.eup %908  ;;  %v505_v33 = vmul.f32 %v907_v19, %v501_v30 }
 0x197   : > { %859 = vmatmul.msk.bf16.vlgmr.msrb.gmra.mxu1 %vm340_vm0, %v531_v15  ;;  %v911_v21 = vpop.eup %910  ;;  %v507_v26 = vmul.f32 %v909_v20, %v503_v24 }
 0x198   : > { %v913_v25 = vpop.eup %912  ;;  %v506_v40 = vmul.f32 %v911_v21, %v502_v36 }
 0x199   : > { %v508_v0 = vmul.f32 %v913_v25, %v504_v63 }
 0x1a6   : > { %617 = vperm.xlu2 %895, %v907_v19  }
 0x1ae   : > { %627 = vperm.xlu2 %895, %v909_v20  }
 0x1af   : > { %622 = vperm.xlu1 %897, %v911_v21  }
 0x1d7   : > { %519 = vadd.xlane.f32.xlu2 %v518_v22 }
 0x1ef   : > { %v517_v27 = vpop.xlane.xlu0 %516  ;;  %632 = vperm.xlu2 %895, %v913_v25  }
 0x1f0   : > { %v523_v28 = vadd.f32 %v517_v27, %v507_v26 }
 0x1f2   : > { %528 = vst.msk [vmem:[#allocation3 + $0x10] sm:$0xff] %vm331_vm1, %v523_v28 }
 0x1f9   : > { %v656_v29 = vld [vmem:[#allocation3 + $0x10] sm:$0xff] }
 0x1fa   : > { %914 = vrcp.f32 %v656_v29 }
 0x200   : > { %v915_v31 = vpop.eup %914  ;;  %v588_v32 = vpop.f32.mrf.mxu2 }
 0x201   : > { %v511_v34 = vpop.xlane.xlu2 %510  ;;  %678 = vperm.xlu1 %897, %v915_v31  }
 0x202   : > { %v521_v35 = vadd.f32 %v511_v34, %v505_v33 }
 0x204   : > { %526 = vst.msk [vmem:[#allocation3] sm:$0xff] %vm331_vm1, %v521_v35 }
 0x208   : > { %v590_v38 = vpop.f32.mrf.mxu2  ;;  %v607_v39 = vpop.f32.mrf.mxu3 }
 0x209   : > { %v618_v41 = vpop.permute.xlu2 %617  ;;  %v514_v42 = vpop.xlane.xlu1 %513 }
 0x20a   : > { %v635_v43 = vmul.f32 %v618_v41, %v611_v37  ;;  %v522_v44 = vadd.f32 %v514_v42, %v506_v40 }
 0x20b   : > { %v654_v45 = vld [vmem:[#allocation3] sm:$0xff] }
 0x20c   : > { %527 = vst.msk [vmem:[#allocation3 + $0x8] sm:$0xff] %vm331_vm1, %v522_v44  ;;  %v550_v46 = vpop.f32.mrf.mxu0  ;;  %916 = vrcp.f32 %v654_v45 }
 0x20d   : > { %v639_v47 = vadd.f32 %v635_v43, %v550_v46 }
 0x20f   : > { %643 = vst.msk [vmem:[#allocation4] sm:$0xff] %vm340_vm0, %v639_v47 }
 0x210   : > { %v609_v49 = vpop.f32.mrf.mxu3 }
 0x211   : > { %v628_v50 = vpop.permute.xlu2 %627 }
 0x212   : > { %v917_v51 = vpop.eup %916  ;;  %v637_v52 = vmul.f32 %v628_v50, %v613_v48 }
 0x213   : > { %668 = vperm.xlu0 %896, %v917_v51   ;;  %v655_v53 = vld [vmem:[#allocation3 + $0x8] sm:$0xff] }
 0x214   : > { %v641_v54 = vadd.f32 %v637_v52, %v588_v32  ;;  %v552_v55 = vpop.f32.mrf.mxu0  ;;  %v569_v56 = vpop.f32.mrf.mxu1  ;;  %918 = vrcp.f32 %v655_v53 }
 0x216   : > { %645 = vst.msk [vmem:[#allocation4 + $0x10] sm:$0xff] %vm340_vm0, %v641_v54  ;;  %v662_v17 = vld [vmem:[#allocation4] sm:$0xff] }
 0x21a   : > { %v919_v57 = vpop.eup %918 }
 0x21b   : > { %673 = vperm.xlu2 %895, %v919_v57  }
 0x21c   : > { %v571_v58 = vpop.f32.mrf.mxu1 }
 0x21d   : > { %v664_v9 = vld [vmem:[#allocation4 + $0x10] sm:$0xff] }
 0x221   : > { %v623_v60 = vpop.permute.xlu1 %622 }
 0x222   : > { %v636_v61 = vmul.f32 %v623_v60, %v612_v59 }
 0x224   : > { %v640_v62 = vadd.f32 %v636_v61, %v569_v56 }
 0x226   : > { %644 = vst.msk [vmem:[#allocation4 + $0x8] sm:$0xff] %vm340_vm0, %v640_v62 }
 0x22d   : > { %v663_v12 = vld [vmem:[#allocation4 + $0x8] sm:$0xff] }
 0x24a   : > { %v520_v1 = vpop.xlane.xlu2 %519 }
 0x24b   : > { %v524_v2 = vadd.f32 %v520_v1, %v508_v0 }
 0x24d   : > { %529 = vst.msk [vmem:[#allocation3 + $0x18] sm:$0xff] %vm331_vm1, %v524_v2 }
 0x252   : > { %v633_v4 = vpop.permute.xlu2 %632 }
 0x253   : > { %v638_v5 = vmul.f32 %v633_v4, %v614_v3 }
 0x254   : > { %v657_v6 = vld [vmem:[#allocation3 + $0x18] sm:$0xff] }
 0x255   : > { %v642_v7 = vadd.f32 %v638_v5, %v607_v39  ;;  %920 = vrcp.f32 %v657_v6 }
 0x257   : > { %646 = vst.msk [vmem:[#allocation4 + $0x18] sm:$0xff] %vm340_vm0, %v642_v7 }
 0x25b   : > { %v921_v8 = vpop.eup %920 }
 0x25c   : > { %683 = vperm.xlu2 %895, %v921_v8  }
 0x25e   : > { %v665_v21 = vld [vmem:[#allocation4 + $0x18] sm:$0xff] }
 0x273   : > { %v679_v10 = vpop.permute.xlu1 %678 }
 0x274   : > { %v688_v11 = vmul.f32 %v679_v10, %v664_v9 }
 0x275   : > { %v674_v13 = vpop.permute.xlu2 %673 }
 0x276   : > { %v692_v14 = vpack.c.bf16 %v688_v11, %v688_v11  ;;  %v687_v15 = vmul.f32 %v674_v13, %v663_v12 }
 0x278   : > { %697 = vst.msk [vmem:[%s325_s7 + $0x8] sm:$0xf] %vm694_vm4, %v692_v14  ;;  %v691_v16 = vpack.c.bf16 %v687_v15, %v687_v15 }
 0x27a   : > { %696 = vst.msk [vmem:[%s325_s7 + $0x4] sm:$0xf] %vm694_vm4, %v691_v16 }
 0x285   : > { %v669_v18 = vpop.permute.xlu0 %668 }
 0x286   : > { %v686_v19 = vmul.f32 %v669_v18, %v662_v17 }
 0x288   : > { %v690_v20 = vpack.c.bf16 %v686_v19, %v686_v19 }
 0x28a   : > { %695 = vst.msk [vmem:[%s325_s7] sm:$0xf] %vm694_vm4, %v690_v20 }
 0x2b6   : > { %v684_v22 = vpop.permute.xlu2 %683 }
 0x2b7   : > { %v689_v23 = vmul.f32 %v684_v22, %v665_v21 }
 0x2b9   : > { %v693_v24 = vpack.c.bf16 %v689_v23, %v689_v23 }
 0x2bb   : > { %698 = vst.msk [vmem:[%s325_s7 + $0xc] sm:$0xf] %vm694_vm4, %v693_v24 }
 0x2bc PF: > { %s14_s17 = sadd.s32 1, %s944_s17   ;;  %s1120_s15 = smov %s940_s16 }
 0x2bd   : > { %p11_p5 = scmp.ge.s32.totalorder %s14_s17, 4   ;;  %s1121_s16 = smov %s1123_s18 }
 0x2bf   :  { %13 = sbr.rel (!%p11_p5) target bundleno = 2 (0x2), region = 83 }

// kernel: decoder_forward.21
= control target key start
LH: loop header
LB: loop body
LE: loop exit
PB: predicated region body
PF: predicated region fallthrough
CT: control target
= control target key end

     0   :  { %vm19_vm0 = vcmask 523264   ;;  %v147_v1 = vmov 0.0   ;;  %vm58_vm1 = vcmask 261120   ;;  %vm112_vm2 = vcmask 519168   ;;  %s203_s1 = inlined_call_operand.vmem [shape: bf16[32,64], index: 1, kind: input, shape index: {}]   ;;  %s204_s2 = inlined_call_operand.vmem [shape: f32[1,64], index: 2, kind: input, shape index: {}]   ;;  %s205_s0 = inlined_call_operand.vmem [shape: bf16[32,32], index: 0, kind: input, shape index: {}]   ;;  %s206_s3 = inlined_call_operand.vmem [shape: bf16[32,64], index: 3, kind: output, shape index: {}]  }
   0x1   :  { %v142_v0 = vld [vmem:[%s203_s1 + $0x8] sm:$0xff]  ;;  %20 = vst.msk [vmem:[#allocation2] sm:$0xff] %vm19_vm0, %v147_v1  ;;  %v141_v2 = vld [vmem:[%s203_s1] sm:$0xff] }
   0x2   :  { %21 = vst.msk [vmem:[#allocation2 + $0x8] sm:$0xff] %vm19_vm0, %v147_v1  ;;  %71 = vmatpush.bf16.msra.mxu0 %v142_v0  ;;  %143 = vmatpush.bf16.msra.mxu1 %v142_v0  ;;  %v139_v3 = vld [vmem:[%s205_s0] sm:$0xff]  ;;  %v140_v4 = vld [vmem:[%s205_s0 + $0x8] sm:$0xff] }
   0x3   :  { %22 = vst.msk [vmem:[#allocation2 + $0x10] sm:$0xff] %vm19_vm0, %v147_v1  ;;  %v146_v13 = vld [vmem:[%s204_s2] ss:$0 sm:$0xff] }
   0x4   :  { %23 = vst.msk [vmem:[#allocation2 + $0x18] sm:$0xff] %vm19_vm0, %v147_v1 }
   0x6   :  { %72 = vmatpush.bf16.msra.mxu0 %v141_v2  ;;  %144 = vmatpush.bf16.msra.mxu1 %v141_v2 }
   0x8   :  { %v24_v5 = vld [vmem:[#allocation2] sm:$0xff] }
   0x9   :  { %137 = vmatmul.msk.bf16.vlgmr.msra.gmra.mxu0 %vm58_vm1, %v139_v3  ;;  %138 = vmatmul.msk.bf16.vlgmr.msra.gmra.mxu1 %vm58_vm1, %v140_v4  ;;  %v25_v11 = vld [vmem:[#allocation2 + $0x8] sm:$0xff] }
   0xa   :  { %v26_v6 = vld [vmem:[#allocation2 + $0x10] sm:$0xff] }
   0xb   :  { %v27_v12 = vld [vmem:[#allocation2 + $0x18] sm:$0xff] }
  0x86   :  { %v74_v7 = vpop.f32.mrf.mxu0  ;;  %v79_v8 = vpop.f32.mrf.mxu1 }
  0x87   :  { %v84_v9 = vadd.f32 %v74_v7, %v24_v5  ;;  %v86_v10 = vadd.f32 %v79_v8, %v26_v6 }
  0x89   :  { %89 = vst.msk [vmem:[#allocation2] sm:$0xff] %vm19_vm0, %v84_v9 }
  0x8a   :  { %91 = vst.msk [vmem:[#allocation2 + $0x10] sm:$0xff] %vm19_vm0, %v86_v10 }
  0x8e   :  { %v76_v14 = vpop.f32.mrf.mxu0  ;;  %v81_v15 = vpop.f32.mrf.mxu1 }
  0x8f   :  { %v85_v16 = vadd.f32 %v76_v14, %v25_v11  ;;  %v87_v17 = vadd.f32 %v81_v15, %v27_v12 }
  0x90   :  { %v96_v18 = vld [vmem:[#allocation2] sm:$0xff] }
  0x91   :  { %v104_v19 = vadd.f32 %v146_v13, %v96_v18  ;;  %v98_v20 = vld [vmem:[#allocation2 + $0x10] sm:$0xff]  ;;  %90 = vst.msk [vmem:[#allocation2 + $0x8] sm:$0xff] %vm19_vm0, %v85_v16 }
  0x92   :  { %v106_v21 = vadd.f32 %v146_v13, %v98_v20  ;;  %92 = vst.msk [vmem:[#allocation2 + $0x18] sm:$0xff] %vm19_vm0, %v87_v17 }
  0x93   :  { %v108_v22 = vpack.c.bf16 %v104_v19, %v104_v19 }
  0x94   :  { %v110_v23 = vpack.c.bf16 %v106_v21, %v106_v21 }
  0x95   :  { %113 = vst.msk [vmem:[%s206_s3] sm:$0xf] %vm112_vm2, %v108_v22 }
  0x96   :  { %115 = vst.msk [vmem:[%s206_s3 + $0x8] sm:$0xf] %vm112_vm2, %v110_v23 }
  0x98   :  { %v97_v24 = vld [vmem:[#allocation2 + $0x8] sm:$0xff] }
  0x99   :  { %v105_v25 = vadd.f32 %v146_v13, %v97_v24  ;;  %v99_v26 = vld [vmem:[#allocation2 + $0x18] sm:$0xff] }
  0x9a   :  { %v107_v27 = vadd.f32 %v146_v13, %v99_v26 }
  0x9b   :  { %v109_v28 = vpack.c.bf16 %v105_v25, %v105_v25 }
  0x9c   :  { %v111_v29 = vpack.c.bf16 %v107_v27, %v107_v27 }
  0x9d   :  { %114 = vst.msk [vmem:[%s206_s3 + $0x4] sm:$0xf] %vm112_vm2, %v109_v28 }
  0x9e   :  { %116 = vst.msk [vmem:[%s206_s3 + $0xc] sm:$0xf] %vm112_vm2, %v111_v29 }

// kernel: decoder_forward.22
= control target key start
LH: loop header
LB: loop body
LE: loop exit
PB: predicated region body
PF: predicated region fallthrough
CT: control target
= control target key end

     0   :  { %s1056_s15 = smov 0   ;;  %s1058_s16 = smov 0   ;;  %s1187_s0 = inlined_call_operand.vmem [shape: bf16[2,4,8,8], index: 0, kind: input, shape index: {}]   ;;  %s1188_s1 = inlined_call_operand.vmem [shape: bf16[2,4,16,8], index: 1, kind: input, shape index: {}]   ;;  %s1189_s2 = inlined_call_operand.vmem [shape: bf16[2,4,16,8], index: 2, kind: input, shape index: {}]   ;;  %s1190_s3 = inlined_call_operand.vmem [shape: s32[2,1,1,16], index: 3, kind: input, shape index: {}]   ;;  %s1191_s4 = inlined_call_operand.vmem [shape: bf16[2,4,8,8], index: 4, kind: output, shape index: {}]  }
   0x1   :  { %s1060_s17 = smov 0  }
   0x2 LB: > { %s33_s18 = sadd.s32 1, %s1022_s16  ;;  %p887_p0 = scmp.ge.s32.totalorder %s1026_s17, 1  ;;  %s1026_s17 = sphi %s1060_s17, %s14_s17   ;;  %s1022_s16 = sphi %s1058_s16, %s1193_s16   ;;  %s1018_s15 = sphi %s1056_s15, %s1192_s15  }
   0x3   : > { %p35_p1 = scmp.ge.s32.totalorder %s33_s18, 2  ;;  %p235_p2 = scmp.lt.s32.totalorder %s1026_s17, 3 }
   0x5   : > { %s1195_s18 = smov (%p35_p1, %s33_s18), 0  ;;  %p236_p3 = pnand %p887_p0, %p235_p2 }
   0x6   : > { %p291_p4 = scmp.lt.s32.totalorder (!%p236_p3), %s1018_s15, 1 }
   0x7   : > { %239 = sbr.rel (%p236_p3) target bundleno = 700 (0x2bc), region = 36 }
   0xc   : > { %vm347_vm0 = vcmask 64512   ;;  %v1028_v0 = vmov 0.0   ;;  %s1197_s15 = smov (!%p291_p4, %s1018_s15), 1  ;;  %vm338_vm1 = vcmask 7168   ;;  %v1029_v13 = vmov -inf  }
   0xd   : > { %348 = vst.msk [vmem:[#allocation4] sm:$0xff] %vm347_vm0, %v1028_v0  ;;  %s939_s19 = sshll.u32 %s1197_s15, 5  ;;  %s938_s23 = sshll.u32 %s1197_s15, 4  ;;  %vm479_vm3 = vcmask 130048   ;;  %v1030_v33 = vmov 0   ;;  %vm744_vm4 = vcmask 60416  }
   0xe   : > { %349 = vst.msk [vmem:[#allocation4 + $0x8] sm:$0xff] %vm347_vm0, %v1028_v0  ;;  %s307_s22 = scalar_lea.vmem %s1188_s1, %s939_s19  ;;  %s298_s26 = scalar_lea.vmem %s1187_s0, %s938_s23  ;;  %978 = vset.pattern.permute.xlu0 %v1030_v33  ;;  %977 = vset.pattern.permute.xlu2 %v1030_v33 }
   0xf   : > { %350 = vst.msk [vmem:[#allocation4 + $0x10] sm:$0xff] %vm347_vm0, %v1028_v0  ;;  %v942_v1 = vld [vmem:[%s307_s22] sm:$0xff]  ;;  %v944_v2 = vld [vmem:[%s307_s22 + $0x10] sm:$0xff]  ;;  %v943_v3 = vld [vmem:[%s307_s22 + $0x8] sm:$0xff]  ;;  %s324_s29 = scalar_lea.vmem %s1190_s3, %s1197_s15  ;;  %979 = vset.pattern.permute.xlu1 %v1030_v33  ;;  %s317_s6 = scalar_lea.vmem %s1189_s2, %s939_s19 }
  0x10   : > { %351 = vst.msk [vmem:[#allocation4 + $0x18] sm:$0xff] %vm347_vm0, %v1028_v0  ;;  %v945_v4 = vld [vmem:[%s307_s22 + $0x18] sm:$0xff]  ;;  %v388_v5 = vsel %vm347_vm0, %v942_v1, 0  ;;  %v436_v6 = vsel %vm347_vm0, %v944_v2, 0  ;;  %v412_v7 = vsel %vm347_vm0, %v943_v3, 0  ;;  %v948_v50 = vld [vmem:[%s317_s6 + $0x10] sm:$0xff]  ;;  %s332_s9 = scalar_lea.vmem %s1191_s4, %s938_s23 }
  0x11   : > { %397 = vmatpush.bf16.xpose.msra.mxu0 %v388_v5  ;;  %445 = vmatpush.bf16.xpose.msra.mxu2 %v436_v6  ;;  %v460_v8 = vsel %vm347_vm0, %v945_v4, 0  ;;  %v352_v9 = vld [vmem:[%s298_s26] sm:$0xf]  ;;  %v354_v10 = vld [vmem:[%s298_s26 + $0x8] sm:$0xf]  ;;  %339 = vst.msk [vmem:[#allocation2] sm:$0xff] %vm338_vm1, %v1029_v13 }
  0x12   : > { %421 = vmatpush.bf16.xpose.msra.mxu1 %v412_v7  ;;  %469 = vmatpush.bf16.xpose.msra.mxu3 %v460_v8  ;;  %v353_v11 = vld [vmem:[%s298_s26 + $0x4] sm:$0xf]  ;;  %v355_v12 = vld [vmem:[%s298_s26 + $0xc] sm:$0xf]  ;;  %v372_v14 = vld [vmem:[%s324_s29] sm:$0x1] }
  0x13   : > { %340 = vst.msk [vmem:[#allocation2 + $0x8] sm:$0xff] %vm338_vm1, %v1029_v13  ;;  %vm373_vm2 = vcmp.eq.s32.totalorder %v372_v14, 0  ;;  %v949_v51 = vld [vmem:[%s317_s6 + $0x18] sm:$0xff]  ;;  %v946_v52 = vld [vmem:[%s317_s6] sm:$0xff]  ;;  %v947_v54 = vld [vmem:[%s317_s6 + $0x8] sm:$0xff] }
  0x14   : > { %341 = vst.msk [vmem:[#allocation2 + $0x10] sm:$0xff] %vm338_vm1, %v1029_v13  ;;  %v374_v15 = vsel %vm373_vm2, -1e+09, %v1028_v0 }
  0x15   : > { %342 = vst.msk [vmem:[#allocation2 + $0x18] sm:$0xff] %vm338_vm1, %v1029_v13  ;;  %v376_v16 = vperm.slane %v374_v15, 0 }
  0x16   : > { %343 = vst.msk [vmem:[#allocation3] sm:$0xff] %vm338_vm1, %v1028_v0 }
  0x17   : > { %344 = vst.msk [vmem:[#allocation3 + $0x8] sm:$0xff] %vm338_vm1, %v1028_v0 }
  0x18   : > { %900 = vmatmul.msk.bf16.vlgmr.msra.gmra.mxu0 %vm347_vm0, %v352_v9  ;;  %910 = vmatmul.msk.bf16.vlgmr.msra.gmra.mxu2 %vm347_vm0, %v354_v10  ;;  %345 = vst.msk [vmem:[#allocation3 + $0x10] sm:$0xff] %vm338_vm1, %v1028_v0  ;;  %v1122_v34 = vld [vmem:[#allocation2] sm:$0xff] }
  0x19   : > { %905 = vmatmul.msk.bf16.vlgmr.msra.gmra.mxu1 %vm347_vm0, %v353_v11  ;;  %915 = vmatmul.msk.bf16.vlgmr.msra.gmra.mxu3 %vm347_vm0, %v355_v12  ;;  %346 = vst.msk [vmem:[#allocation3 + $0x18] sm:$0xff] %vm338_vm1, %v1028_v0 }
  0x1a   : > { %v476_v40 = vld [vmem:[#allocation2 + $0x8] sm:$0xff]  ;;  %633 = vmatpush.bf16.msrb.mxu2 %v948_v50  ;;  %655 = vmatpush.bf16.msrb.mxu3 %v949_v51 }
  0x1b   : > { %v1132_v38 = vld [vmem:[#allocation2 + $0x10] sm:$0xff]  ;;  %589 = vmatpush.bf16.msrb.mxu0 %v946_v52  ;;  %611 = vmatpush.bf16.msrb.mxu1 %v947_v54 }
  0x1c   : > { %v1138_v46 = vld [vmem:[#allocation2 + $0x18] sm:$0xff] }
  0x1e   : > { %v541_v33 = vld [vmem:[#allocation3 + $0x8] sm:$0xff] }
  0x95   : > { %v399_v17 = vpop.f32.mrf.mxu0 }
  0x96   : > { %v1112_v18 = vadd.f32 %v399_v17, %v376_v16  ;;  %v423_v19 = vpop.f32.mrf.mxu1 }
  0x97   : > { %v1116_v21 = vadd.f32 %v423_v19, %v376_v16 }
  0x98   : > { %v480_v20 = vsel %vm479_vm3, %v1112_v18, -inf }
  0x99   : > { %481 = vmax.xlane.f32.xlu1 %v480_v20  ;;  %v483_v27 = vsel %vm479_vm3, %v1116_v21, -inf }
  0x9b   : > { %v447_v22 = vpop.f32.mrf.mxu2 }
  0x9c   : > { %v448_v23 = vadd.f32 %v447_v22, %v376_v16  ;;  %v471_v24 = vpop.f32.mrf.mxu3 }
  0x9d   : > { %v401_v25 = vpop.f32.mrf.mxu0  ;;  %v472_v29 = vadd.f32 %v471_v24, %v376_v16 }
  0x9e   : > { %v486_v26 = vsel %vm479_vm3, %v448_v23, -inf  ;;  %v425_v28 = vpop.f32.mrf.mxu1 }
  0x9f   : > { %487 = vmax.xlane.f32.xlu0 %v486_v26  ;;  %v489_v31 = vsel %vm479_vm3, %v472_v29, -inf }
  0xa1   : > { %484 = vmax.xlane.f32.xlu1 %v483_v27  ;;  %v540_v27 = vld [vmem:[#allocation3] sm:$0xff] }
  0xa3   : > { %v449_v30 = vpop.f32.mrf.mxu2 }
  0xa4   : > { %v473_v32 = vpop.f32.mrf.mxu3 }
  0xa7   : > { %490 = vmax.xlane.f32.xlu0 %v489_v31 }
 0x10c   : > { %v482_v35 = vpop.xlane.xlu1 %481 }
 0x10d   : > { %v1125_v36 = vmax.f32 %v1122_v34, %v482_v35 }
 0x10f   : > { %v496_v37 = vsub.f32 %v1122_v34, %v1125_v36  ;;  %697 = vst.msk [vmem:[#allocation2] sm:$0xff] %vm338_vm1, %v1125_v36  ;;  %510 = vperm.xlu0 %978, %v1125_v36   ;;  %v661_v34 = vld [vmem:[#allocation4] sm:$0xff] }
 0x111   : > { %v500_v13 = vmul.f32 1.442695, %v496_v37 }
 0x112   : > { %v488_v39 = vpop.xlane.xlu0 %487 }
 0x113   : > { %v494_v41 = vmax.f32 %v1132_v38, %v488_v39 }
 0x114   : > { %v485_v42 = vpop.xlane.xlu1 %484 }
 0x115   : > { %v498_v43 = vsub.f32 %v1132_v38, %v494_v41  ;;  %699 = vst.msk [vmem:[#allocation2 + $0x10] sm:$0xff] %vm338_vm1, %v494_v41  ;;  %v493_v44 = vmax.f32 %v476_v40, %v485_v42  ;;  %520 = vperm.xlu2 %977, %v494_v41  }
 0x117   : > { %v497_v45 = vsub.f32 %v476_v40, %v493_v44  ;;  %698 = vst.msk [vmem:[#allocation2 + $0x8] sm:$0xff] %vm338_vm1, %v493_v44  ;;  %515 = vperm.xlu1 %979, %v493_v44   ;;  %v504_v14 = vmul.f32 1.442695, %v498_v43 }
 0x119   : > { %v502_v15 = vmul.f32 1.442695, %v497_v45  ;;  %v663_v45 = vld [vmem:[#allocation4 + $0x10] sm:$0xff] }
 0x11a   : > { %v491_v47 = vpop.xlane.xlu0 %490 }
 0x11b   : > { %v495_v48 = vmax.f32 %v1138_v46, %v491_v47 }
 0x11d   : > { %v499_v49 = vsub.f32 %v1138_v46, %v495_v48  ;;  %700 = vst.msk [vmem:[#allocation2 + $0x18] sm:$0xff] %vm338_vm1, %v495_v48  ;;  %525 = vperm.xlu2 %977, %v495_v48  }
 0x11f   : > { %v506_v20 = vmul.f32 1.442695, %v499_v49 }
 0x16f   : > { %v521_v53 = vpop.permute.xlu2 %520 }
 0x170   : > { %v530_v55 = vsub.f32 %v448_v23, %v521_v53 }
 0x172   : > { %v536_v56 = vmul.f32 1.442695, %v530_v55 }
 0x174   : > { %980 = vpow2.f32 %v536_v56  ;;  %v662_v56 = vld [vmem:[#allocation4 + $0x8] sm:$0xff] }
 0x177   : > { %v526_v57 = vpop.permute.xlu2 %525 }
 0x178   : > { %v531_v58 = vsub.f32 %v472_v29, %v526_v57 }
 0x17a   : > { %v981_v59 = vpop.eup %980  ;;  %v538_v60 = vmul.f32 1.442695, %v531_v58 }
 0x17b   : > { %v554_v61 = vsel %vm479_vm3, %v981_v59, 0.0  ;;  %v571_v62 = vpack.c.bf16 %v981_v59, %v981_v59 }
 0x17c   : > { %982 = vpow2.f32 %v538_v60  ;;  %555 = vadd.xlane.f32.xlu0 %v554_v61  ;;  %v543_v60 = vld [vmem:[#allocation3 + $0x18] sm:$0xff] }
 0x17d   : > { %930 = vmatmul.msk.bf16.vlgmr.msrb.gmra.mxu2 %vm479_vm3, %v571_v62 }
 0x181   : > { %v511_v63 = vpop.permute.xlu0 %510 }
 0x182   : > { %v983_v0 = vpop.eup %982  ;;  %v528_v1 = vsub.f32 %v1112_v18, %v511_v63 }
 0x183   : > { %v572_v2 = vpack.c.bf16 %v983_v0, %v983_v0  ;;  %v557_v19 = vsel %vm479_vm3, %v983_v0, 0.0  ;;  %v664_v0 = vld [vmem:[#allocation4 + $0x18] sm:$0xff] }
 0x184   : > { %v532_v3 = vmul.f32 1.442695, %v528_v1 }
 0x185   : > { %935 = vmatmul.msk.bf16.vlgmr.msrb.gmra.mxu3 %vm479_vm3, %v572_v2 }
 0x186   : > { %984 = vpow2.f32 %v532_v3 }
 0x189   : > { %v516_v4 = vpop.permute.xlu1 %515 }
 0x18a   : > { %v529_v5 = vsub.f32 %v1116_v21, %v516_v4  ;;  %v542_v21 = vld [vmem:[#allocation3 + $0x10] sm:$0xff] }
 0x18c   : > { %v985_v6 = vpop.eup %984  ;;  %v534_v7 = vmul.f32 1.442695, %v529_v5 }
 0x18d   : > { %v548_v8 = vsel %vm479_vm3, %v985_v6, 0.0  ;;  %v569_v9 = vpack.c.bf16 %v985_v6, %v985_v6 }
 0x18e   : > { %986 = vpow2.f32 %v534_v7  ;;  %549 = vadd.xlane.f32.xlu2 %v548_v8 }
 0x18f   : > { %920 = vmatmul.msk.bf16.vlgmr.msrb.gmra.mxu0 %vm479_vm3, %v569_v9  ;;  %988 = vpow2.f32 %v500_v13 }
 0x190   : > { %990 = vpow2.f32 %v504_v14 }
 0x191   : > { %992 = vpow2.f32 %v502_v15 }
 0x192   : > { %994 = vpow2.f32 %v506_v20 }
 0x194   : > { %v987_v10 = vpop.eup %986 }
 0x195   : > { %v551_v11 = vsel %vm479_vm3, %v987_v10, 0.0  ;;  %v570_v12 = vpack.c.bf16 %v987_v10, %v987_v10  ;;  %v989_v16 = vpop.eup %988 }
 0x196   : > { %552 = vadd.xlane.f32.xlu1 %v551_v11  ;;  %v991_v17 = vpop.eup %990  ;;  %v544_v30 = vmul.f32 %v989_v16, %v540_v27 }
 0x197   : > { %925 = vmatmul.msk.bf16.vlgmr.msrb.gmra.mxu1 %vm479_vm3, %v570_v12  ;;  %v993_v18 = vpop.eup %992  ;;  %v546_v23 = vmul.f32 %v991_v17, %v542_v21 }
 0x198   : > { %v995_v22 = vpop.eup %994  ;;  %v545_v37 = vmul.f32 %v993_v18, %v541_v33 }
 0x199   : > { %v547_v61 = vmul.f32 %v995_v22, %v543_v60 }
 0x1a6   : > { %667 = vperm.xlu2 %977, %v989_v16  }
 0x1ae   : > { %677 = vperm.xlu2 %977, %v991_v17  }
 0x1af   : > { %672 = vperm.xlu1 %979, %v993_v18  }
 0x1d7   : > { %558 = vadd.xlane.f32.xlu2 %v557_v19 }
 0x1ef   : > { %v556_v24 = vpop.xlane.xlu0 %555  ;;  %682 = vperm.xlu2 %977, %v995_v22  }
 0x1f0   : > { %v562_v25 = vadd.f32 %v556_v24, %v546_v23 }
 0x1f2   : > { %567 = vst.msk [vmem:[#allocation3 + $0x10] sm:$0xff] %vm338_vm1, %v562_v25 }
 0x1f9   : > { %v706_v26 = vld [vmem:[#allocation3 + $0x10] sm:$0xff] }
 0x1fa   : > { %996 = vrcp.f32 %v706_v26 }
 0x200   : > { %v997_v28 = vpop.eup %996  ;;  %v635_v29 = vpop.f32.mrf.mxu2 }
 0x201   : > { %v550_v31 = vpop.xlane.xlu2 %549  ;;  %728 = vperm.xlu1 %979, %v997_v28  }
 0x202   : > { %v560_v32 = vadd.f32 %v550_v31, %v544_v30 }
 0x204   : > { %565 = vst.msk [vmem:[#allocation3] sm:$0xff] %vm338_vm1, %v560_v32 }
 0x208   : > { %v637_v35 = vpop.f32.mrf.mxu2  ;;  %v657_v36 = vpop.f32.mrf.mxu3 }
 0x209   : > { %v668_v38 = vpop.permute.xlu2 %667  ;;  %v553_v39 = vpop.xlane.xlu1 %552 }
 0x20a   : > { %v685_v40 = vmul.f32 %v668_v38, %v661_v34  ;;  %v561_v41 = vadd.f32 %v553_v39, %v545_v37 }
 0x20b   : > { %v704_v42 = vld [vmem:[#allocation3] sm:$0xff] }
 0x20c   : > { %566 = vst.msk [vmem:[#allocation3 + $0x8] sm:$0xff] %vm338_vm1, %v561_v41  ;;  %v591_v43 = vpop.f32.mrf.mxu0  ;;  %998 = vrcp.f32 %v704_v42 }
 0x20d   : > { %v689_v44 = vadd.f32 %v685_v40, %v591_v43 }
 0x20f   : > { %693 = vst.msk [vmem:[#allocation4] sm:$0xff] %vm347_vm0, %v689_v44 }
 0x210   : > { %v659_v46 = vpop.f32.mrf.mxu3 }
 0x211   : > { %v678_v47 = vpop.permute.xlu2 %677 }
 0x212   : > { %v999_v48 = vpop.eup %998  ;;  %v687_v49 = vmul.f32 %v678_v47, %v663_v45 }
 0x213   : > { %718 = vperm.xlu0 %978, %v999_v48   ;;  %v705_v50 = vld [vmem:[#allocation3 + $0x8] sm:$0xff] }
 0x214   : > { %v691_v51 = vadd.f32 %v687_v49, %v635_v29  ;;  %v593_v52 = vpop.f32.mrf.mxu0  ;;  %v613_v53 = vpop.f32.mrf.mxu1  ;;  %1000 = vrcp.f32 %v705_v50 }
 0x216   : > { %695 = vst.msk [vmem:[#allocation4 + $0x10] sm:$0xff] %vm347_vm0, %v691_v51  ;;  %v712_v14 = vld [vmem:[#allocation4] sm:$0xff] }
 0x21a   : > { %v1001_v54 = vpop.eup %1000 }
 0x21b   : > { %723 = vperm.xlu2 %977, %v1001_v54  }
 0x21c   : > { %v615_v55 = vpop.f32.mrf.mxu1 }
 0x21d   : > { %v714_v6 = vld [vmem:[#allocation4 + $0x10] sm:$0xff] }
 0x221   : > { %v673_v57 = vpop.permute.xlu1 %672 }
 0x222   : > { %v686_v58 = vmul.f32 %v673_v57, %v662_v56 }
 0x224   : > { %v690_v59 = vadd.f32 %v686_v58, %v613_v53 }
 0x226   : > { %694 = vst.msk [vmem:[#allocation4 + $0x8] sm:$0xff] %vm347_vm0, %v690_v59 }
 0x22d   : > { %v713_v9 = vld [vmem:[#allocation4 + $0x8] sm:$0xff] }
 0x24a   : > { %v559_v62 = vpop.xlane.xlu2 %558 }
 0x24b   : > { %v563_v63 = vadd.f32 %v559_v62, %v547_v61 }
 0x24d   : > { %568 = vst.msk [vmem:[#allocation3 + $0x18] sm:$0xff] %vm338_vm1, %v563_v63 }
 0x252   : > { %v683_v1 = vpop.permute.xlu2 %682 }
 0x253   : > { %v688_v2 = vmul.f32 %v683_v1, %v664_v0 }
 0x254   : > { %v707_v3 = vld [vmem:[#allocation3 + $0x18] sm:$0xff] }
 0x255   : > { %v692_v4 = vadd.f32 %v688_v2, %v657_v36  ;;  %1002 = vrcp.f32 %v707_v3 }
 0x257   : > { %696 = vst.msk [vmem:[#allocation4 + $0x18] sm:$0xff] %vm347_vm0, %v692_v4 }
 0x25b   : > { %v1003_v5 = vpop.eup %1002 }
 0x25c   : > { %733 = vperm.xlu2 %977, %v1003_v5  }
 0x25e   : > { %v715_v18 = vld [vmem:[#allocation4 + $0x18] sm:$0xff] }
 0x273   : > { %v729_v7 = vpop.permute.xlu1 %728 }
 0x274   : > { %v738_v8 = vmul.f32 %v729_v7, %v714_v6 }
 0x275   : > { %v724_v10 = vpop.permute.xlu2 %723 }
 0x276   : > { %v742_v11 = vpack.c.bf16 %v738_v8, %v738_v8  ;;  %v737_v12 = vmul.f32 %v724_v10, %v713_v9 }
 0x278   : > { %747 = vst.msk [vmem:[%s332_s9 + $0x8] sm:$0xf] %vm744_vm4, %v742_v11  ;;  %v741_v13 = vpack.c.bf16 %v737_v12, %v737_v12 }
 0x27a   : > { %746 = vst.msk [vmem:[%s332_s9 + $0x4] sm:$0xf] %vm744_vm4, %v741_v13 }
 0x285   : > { %v719_v15 = vpop.permute.xlu0 %718 }
 0x286   : > { %v736_v16 = vmul.f32 %v719_v15, %v712_v14 }
 0x288   : > { %v740_v17 = vpack.c.bf16 %v736_v16, %v736_v16 }
 0x28a   : > { %745 = vst.msk [vmem:[%s332_s9] sm:$0xf] %vm744_vm4, %v740_v17 }
 0x2b6   : > { %v734_v19 = vpop.permute.xlu2 %733 }
 0x2b7   : > { %v739_v20 = vmul.f32 %v734_v19, %v715_v18 }
 0x2b9   : > { %v743_v21 = vpack.c.bf16 %v739_v20, %v739_v20 }
 0x2bb   : > { %748 = vst.msk [vmem:[%s332_s9 + $0xc] sm:$0xf] %vm744_vm4, %v743_v21 }
 0x2bc PF: > { %s14_s17 = sadd.s32 1, %s1026_s17   ;;  %s1192_s15 = smov %s1022_s16 }
 0x2bd   : > { %p11_p5 = scmp.ge.s32.totalorder %s14_s17, 4   ;;  %s1193_s16 = smov %s1195_s18 }
 0x2bf   :  { %13 = sbr.rel (!%p11_p5) target bundleno = 2 (0x2), region = 83 }

// kernel: decoder_forward.24
= control target key start
LH: loop header
LB: loop body
LE: loop exit
PB: predicated region body
PF: predicated region fallthrough
CT: control target
= control target key end

     0   :  { %vm31_vm0 = vcmask 261120   ;;  %v304_v4 = vmov 32.0   ;;  %vm123_vm12 = vcmask 257024   ;;  %vm210_vm15 = vcmask 523264   ;;  %s411_s0 = inlined_call_operand.vmem [shape: f32[16,32], index: 0, kind: input, shape index: {}]   ;;  %s412_s3 = inlined_call_operand.vmem [shape: f32[1,64], index: 3, kind: input, shape index: {}]   ;;  %s413_s2 = inlined_call_operand.vmem [shape: bf16[32,64], index: 2, kind: input, shape index: {}]   ;;  %s414_s1 = inlined_call_operand.vmem [shape: f32[2,32], index: 1, kind: input, shape index: {}]   ;;  %s415_s5 = inlined_call_operand.vmem [shape: f32[1,32], index: 5, kind: input, shape index: {}]   ;;  %s416_s4 = inlined_call_operand.vmem [shape: bf16[64,32], index: 4, kind: input, shape index: {}]   ;;  %s417_s6 = inlined_call_operand.vmem [shape: f32[16,32], index: 6, kind: output, shape index: {}]  }
   0x1   :  { %v344_v0 = vld [vmem:[%s411_s0] sm:$0xff]  ;;  %v351_v2 = vld [vmem:[%s411_s0 + $0x8] sm:$0xff]  ;;  %294 = vrcp.f32 %v304_v4 }
   0x2   :  { %v32_v1 = vsel %vm31_vm0, %v344_v0, 0.0  ;;  %v35_v3 = vsel %vm31_vm0, %v351_v2, 0.0  ;;  %v285_v35 = vld [vmem:[%s413_s2 + $0x8] sm:$0xff]  ;;  %v284_v39 = vld [vmem:[%s413_s2] sm:$0xff] }
   0x3   :  { %33 = vadd.xlane.f32.xlu0 %v32_v1  ;;  %165 = vmatpush.bf16.msra.mxu0 %v285_v35  ;;  %v30_v55 = vld [vmem:[%s414_s1] sm:$0x3] }
   0x4   :  { %v115_v60 = vperm.slane %v30_v55, 0  ;;  %v118_v1 = vperm.slane %v30_v55, 1 }
   0x7   :  { %v295_v5 = vpop.eup %294  ;;  %166 = vmatpush.bf16.msra.mxu0 %v284_v39 }
   0x8   :  { %v39_v6 = vmul.f32 32.0, %v295_v5  ;;  %vm43_vm1 = vweird.f32 %v295_v5 }
   0xa   :  { %v40_v7 = vsub.f32 1.0, %v39_v6 }
   0xb   :  { %36 = vadd.xlane.f32.xlu0 %v35_v3 }
   0xc   :  { %v41_v8 = vmul.f32 %v295_v5, %v40_v7 }
   0xe   :  { %v42_v9 = vadd.f32 %v295_v5, %v41_v8 }
  0x10   :  { %v44_v10 = vsel %vm43_vm1, %v295_v5, %v42_v9 }
  0x76   :  { %v34_v11 = vpop.xlane.xlu0 %33 }
  0x77   :  { %v45_v12 = vmul.f32 %v44_v10, %v34_v11 }
  0x79   :  { %v356_v13 = vsub.f32 %v344_v0, %v45_v12 }
  0x7b   :  { %v49_v14 = vmul.f32 %v356_v13, %v356_v13 }
  0x7d   :  { %v51_v15 = vsel %vm31_vm0, %v49_v14, 0.0 }
  0x7e   :  { %52 = vadd.xlane.f32.xlu1 %v51_v15  ;;  %v37_v16 = vpop.xlane.xlu0 %36 }
  0x7f   :  { %v46_v17 = vmul.f32 %v44_v10, %v37_v16 }
  0x81   :  { %v362_v18 = vsub.f32 %v351_v2, %v46_v17 }
  0x83   :  { %v50_v19 = vmul.f32 %v362_v18, %v362_v18 }
  0x85   :  { %v54_v20 = vsel %vm31_vm0, %v50_v19, 0.0 }
  0x86   :  { %55 = vadd.xlane.f32.xlu1 %v54_v20  ;;  %v289_v20 = vld [vmem:[%s416_s4 + $0x18] sm:$0xff] }
  0x87   :  { %218 = vmatpush.bf16.msra.mxu1 %v289_v20 }
  0xf1   :  { %v53_v21 = vpop.xlane.xlu1 %52 }
  0xf2   :  { %v57_v22 = vmul.f32 0.032258064, %v53_v21  ;;  %v288_v21 = vld [vmem:[%s416_s4 + $0x10] sm:$0xff] }
  0xf3   :  { %219 = vmatpush.bf16.msra.mxu1 %v288_v21 }
  0xf4   :  { %296 = vrsqrt.f32 %v57_v22  ;;  %vm66_vm2 = vcmp.eq.f32.partialorder %v57_v22, inf  ;;  %v69_v36 = vand.u32 2147483648, %v57_v22  ;;  %vm68_vm3 = vcmp.eq.f32.partialorder %v57_v22, 0.0 }
  0xf9   :  { %v56_v23 = vpop.xlane.xlu1 %55 }
  0xfa   :  { %v297_v24 = vpop.eup %296  ;;  %v58_v25 = vmul.f32 0.032258064, %v56_v23  ;;  %v305_v23 = vmov 0.0  }
  0xfb   :  { %v60_v26 = vmul.f32 %v297_v24, %v57_v22  ;;  %126 = vst.msk [vmem:[#allocation3] sm:$0xff] %vm31_vm0, %v305_v23 }
  0xfc   :  { %298 = vrsqrt.f32 %v58_v25  ;;  %vm78_vm4 = vcmp.eq.f32.partialorder %v58_v25, inf  ;;  %v81_v45 = vand.u32 2147483648, %v58_v25  ;;  %vm80_vm5 = vcmp.eq.f32.partialorder %v58_v25, 0.0  ;;  %127 = vst.msk [vmem:[#allocation3 + $0x8] sm:$0xff] %vm31_vm0, %v305_v23 }
  0xfd   :  { %v61_v27 = vmul.f32 %v297_v24, %v60_v26 }
  0xff   :  { %v62_v28 = vmul.f32 0.5, %v61_v27 }
 0x101   :  { %v63_v29 = vsub.f32 1.5, %v62_v28 }
 0x102   :  { %v299_v30 = vpop.eup %298 }
 0x103   :  { %v64_v31 = vmul.f32 %v297_v24, %v63_v29  ;;  %v72_v32 = vmul.f32 %v299_v30, %v58_v25  ;;  %v176_v35 = vld [vmem:[#allocation3 + $0x8] sm:$0xff] }
 0x105   :  { %v65_v33 = vmul.f32 %v64_v31, %v57_v22  ;;  %v73_v34 = vmul.f32 %v299_v30, %v72_v32  ;;  %v175_v32 = vld [vmem:[#allocation3] sm:$0xff] }
 0x107   :  { %v67_v37 = vsel %vm66_vm2, %v57_v22, %v65_v33  ;;  %v74_v38 = vmul.f32 0.5, %v73_v34  ;;  %v286_v22 = vld [vmem:[%s416_s4] sm:$0xff] }
 0x108   :  { %v70_v40 = vsel %vm68_vm3, %v69_v36, %v67_v37  ;;  %v293_v36 = vld [vmem:[%s415_s5] ss:$0 sm:$0xff] }
 0x109   :  { %v83_v41 = vadd.f32 1e-06, %v70_v40  ;;  %v75_v42 = vsub.f32 1.5, %v74_v38 }
 0x10b   :  { %300 = vrcp.f32 %v83_v41  ;;  %v76_v43 = vmul.f32 %v299_v30, %v75_v42  ;;  %v96_v52 = vand.u32 2147483648, %v83_v41  ;;  %v94_v54 = vand.u32 2147483647, %v83_v41 }
 0x10c   :  { %vm90_vm7 = vweird.f32 %v83_v41 }
 0x10d   :  { %v77_v44 = vmul.f32 %v76_v43, %v58_v25  ;;  %v97_v57 = vor.u32 1.1754944e-38, %v96_v52  ;;  %vm95_vm9 = vcmp.eq.f32.partialorder %v94_v54, 8.507059e+37 }
 0x10f   :  { %v79_v46 = vsel %vm78_vm4, %v58_v25, %v77_v44  ;;  %v292_v25 = vld [vmem:[%s412_s3] ss:$0 sm:$0xff] }
 0x110   :  { %v82_v48 = vsel %vm80_vm5, %v81_v45, %v79_v46 }
 0x111   :  { %v301_v47 = vpop.eup %300  ;;  %v84_v50 = vadd.f32 1e-06, %v82_v48 }
 0x112   :  { %v86_v49 = vmul.f32 %v301_v47, %v83_v41  ;;  %vm91_vm6 = vweird.f32 %v301_v47 }
 0x113   :  { %302 = vrcp.f32 %v84_v50  ;;  %vm92_vm8 = vmor %vm90_vm7, %vm91_vm6  ;;  %v111_v4 = vand.u32 2147483648, %v84_v50  ;;  %v109_v7 = vand.u32 2147483647, %v84_v50  ;;  %vm105_vm11 = vweird.f32 %v84_v50 }
 0x114   :  { %v87_v51 = vsub.f32 1.0, %v86_v49 }
 0x115   :  { %v112_v10 = vor.u32 1.1754944e-38, %v111_v4  ;;  %vm110_vm14 = vcmp.eq.f32.partialorder %v109_v7, 8.507059e+37 }
 0x116   :  { %v88_v53 = vmul.f32 %v301_v47, %v87_v51 }
 0x118   :  { %v89_v56 = vadd.f32 %v301_v47, %v88_v53 }
 0x119   :  { %v303_v58 = vpop.eup %302 }
 0x11a   :  { %v93_v59 = vsel %vm92_vm8, %v301_v47, %v89_v56  ;;  %v101_v62 = vmul.f32 %v303_v58, %v84_v50  ;;  %vm106_vm10 = vweird.f32 %v303_v58 }
 0x11b   :  { %v98_v61 = vsel %vm95_vm9, %v97_v57, %v93_v59  ;;  %vm107_vm13 = vmor %vm105_vm11, %vm106_vm10 }
 0x11c   :  { %v99_v63 = vmul.f32 %v98_v61, %v356_v13  ;;  %v102_v3 = vsub.f32 1.0, %v101_v62 }
 0x11e   :  { %v116_v5 = vmul.f32 %v115_v60, %v99_v63  ;;  %v103_v6 = vmul.f32 %v303_v58, %v102_v3 }
 0x120   :  { %v119_v8 = vadd.f32 %v118_v1, %v116_v5  ;;  %v104_v9 = vadd.f32 %v303_v58, %v103_v6 }
 0x122   :  { %v121_v11 = vpack.c.bf16 %v119_v8, %v119_v8  ;;  %v108_v12 = vsel %vm107_vm13, %v303_v58, %v104_v9 }
 0x123   :  { %v113_v14 = vsel %vm110_vm14, %v112_v10, %v108_v12 }
 0x124   :  { %124 = vst.msk [vmem:[#allocation2] sm:$0xf] %vm123_vm12, %v121_v11  ;;  %v114_v13 = vmul.f32 %v113_v14, %v362_v18  ;;  %v287_v18 = vld [vmem:[%s416_s4 + $0x8] sm:$0xff] }
 0x125   :  { %220 = vmatpush.bf16.msra.mxu1 %v287_v18 }
 0x126   :  { %v117_v15 = vmul.f32 %v115_v60, %v114_v13 }
 0x128   :  { %v120_v16 = vadd.f32 %v118_v1, %v117_v15 }
 0x129   :  { %221 = vmatpush.bf16.msra.mxu1 %v286_v22 }
 0x12a   :  { %v122_v17 = vpack.c.bf16 %v120_v16, %v120_v16 }
 0x12c   :  { %125 = vst.msk [vmem:[#allocation2 + $0x4] sm:$0xf] %vm123_vm12, %v122_v17 }
 0x133   :  { %v283_v19 = vld [vmem:[#allocation2] sm:$0xff] }
 0x134   :  { %265 = vmatmul.msk.bf16.vlgmr.msra.gmra.mxu0 %vm31_vm0, %v283_v19 }
 0x1b1   :  { %v168_v24 = vpop.f32.mrf.mxu0 }
 0x1b2   :  { %v169_v26 = vadd.f32 %v292_v25, %v168_v24 }
 0x1b4   :  { %v173_v29 = vmax.f32 %v169_v26, 0.0 }
 0x1b9   :  { %v170_v27 = vpop.f32.mrf.mxu0 }
 0x1ba   :  { %v171_v28 = vadd.f32 %v292_v25, %v170_v27 }
 0x1bc   :  { %v174_v30 = vmax.f32 %v171_v28, 0.0 }
 0x1be   :  { %v177_v31 = vpack.c.bf16 %v174_v30, %v173_v29 }
 0x1c0   :  { %282 = vmatmul.msk.bf16.vlgmr.msra.gmra.mxu1 %vm210_vm15, %v177_v31 }
 0x23d   :  { %v223_v33 = vpop.f32.mrf.mxu1 }
 0x23e   :  { %v228_v34 = vadd.f32 %v223_v33, %v175_v32 }
 0x240   :  { %230 = vst.msk [vmem:[#allocation3] sm:$0xff] %vm31_vm0, %v228_v34 }
 0x245   :  { %v225_v37 = vpop.f32.mrf.mxu1 }
 0x246   :  { %v229_v38 = vadd.f32 %v225_v37, %v176_v35 }
 0x247   :  { %v235_v39 = vld [vmem:[#allocation3] sm:$0xff] }
 0x248   :  { %v241_v40 = vadd.f32 %v293_v36, %v235_v39  ;;  %231 = vst.msk [vmem:[#allocation3 + $0x8] sm:$0xff] %vm31_vm0, %v229_v38 }
 0x24a   :  { %v245_v41 = vadd.f32 %v241_v40, %v344_v0 }
 0x24c   :  { %247 = vst.msk [vmem:[%s417_s6] sm:$0xff] %vm31_vm0, %v245_v41 }
 0x24f   :  { %v236_v42 = vld [vmem:[#allocation3 + $0x8] sm:$0xff] }
 0x250   :  { %v242_v43 = vadd.f32 %v293_v36, %v236_v42 }
 0x252   :  { %v246_v44 = vadd.f32 %v351_v2, %v242_v43 }
 0x254   :  { %248 = vst.msk [vmem:[%s417_s6 + $0x8] sm:$0xff] %vm31_vm0, %v246_v44 }

// kernel: decoder_forward.33
= control target key start
LH: loop header
LB: loop body
LE: loop exit
PB: predicated region body
PF: predicated region fallthrough
CT: control target
= control target key end

     0   :  { %vm15_vm0 = vcmask 261120   ;;  %s212_s0 = inlined_call_operand.vmem [shape: f32[16,32], index: 0, kind: input, shape index: {}]   ;;  %s213_s1 = inlined_call_operand.vmem [shape: f32[2,32], index: 1, kind: input, shape index: {}]   ;;  %s214_s2 = inlined_call_operand.hbm [shape: f32[16,32], index: 2, kind: output, shape index: {}]  }
   0x1   :  { %v12_v0 = vld [vmem:[%s212_s0] sm:$0xff] }
   0x2   :  { %7 = vsyncpa [#allocation3], 0  ;;  %v16_v1 = vsel %vm15_vm0, %v12_v0, 0.0  ;;  %v13_v2 = vld [vmem:[%s212_s0 + $0x8] sm:$0xff]  ;;  %v165_v4 = vmov 32.0   ;;  %s113_s17 = sshll.u32 %s214_s2, 4  ;;  %s114_s17 = int_to_ptr.hbm [resolvable:$true] %s113_s17 }
   0x3   :  { %17 = vadd.xlane.f32.xlu0 %v16_v1  ;;  %v19_v3 = vsel %vm15_vm0, %v13_v2, 0.0  ;;  %129 = vrcp.f32 %v165_v4  ;;  %v14_v53 = vld [vmem:[%s213_s1] sm:$0x3]  ;;  %s166_s1 = smov [#allocation2]   ;;  %s167_s18 = smov 128  }
   0x4   :  { %v99_v59 = vperm.slane %v14_v53, 0  ;;  %v102_v63 = vperm.slane %v14_v53, 1  ;;  %s111_s14 = sshll.u32 %s166_s1, 4  ;;  %s168_s19 = smov 8   ;;  %s112_s14 = int_to_ptr.vmem [resolvable:$true] %s111_s14 }
   0x9   :  { %v130_v5 = vpop.eup %129 }
   0xa   :  { %v23_v6 = vmul.f32 32.0, %v130_v5  ;;  %vm27_vm1 = vweird.f32 %v130_v5 }
   0xb   :  { %20 = vadd.xlane.f32.xlu0 %v19_v3 }
   0xc   :  { %v24_v7 = vsub.f32 1.0, %v23_v6 }
   0xe   :  { %v25_v8 = vmul.f32 %v130_v5, %v24_v7 }
  0x10   :  { %v26_v9 = vadd.f32 %v130_v5, %v25_v8 }
  0x12   :  { %v28_v10 = vsel %vm27_vm1, %v130_v5, %v26_v9 }
  0x76   :  { %v18_v11 = vpop.xlane.xlu0 %17 }
  0x77   :  { %v29_v12 = vmul.f32 %v28_v10, %v18_v11 }
  0x79   :  { %v192_v13 = vsub.f32 %v12_v0, %v29_v12 }
  0x7b   :  { %v33_v14 = vmul.f32 %v192_v13, %v192_v13 }
  0x7d   :  { %v35_v15 = vsel %vm15_vm0, %v33_v14, 0.0 }
  0x7e   :  { %36 = vadd.xlane.f32.xlu1 %v35_v15  ;;  %v21_v16 = vpop.xlane.xlu0 %20 }
  0x7f   :  { %v30_v17 = vmul.f32 %v28_v10, %v21_v16 }
  0x81   :  { %v197_v18 = vsub.f32 %v13_v2, %v30_v17 }
  0x83   :  { %v34_v19 = vmul.f32 %v197_v18, %v197_v18 }
  0x85   :  { %v38_v20 = vsel %vm15_vm0, %v34_v19, 0.0 }
  0x86   :  { %39 = vadd.xlane.f32.xlu1 %v38_v20 }
  0xf1   :  { %v37_v21 = vpop.xlane.xlu1 %36 }
  0xf2   :  { %v41_v22 = vmul.f32 0.032258064, %v37_v21 }
  0xf4   :  { %131 = vrsqrt.f32 %v41_v22  ;;  %vm50_vm2 = vcmp.eq.f32.partialorder %v41_v22, inf  ;;  %v53_v35 = vand.u32 2147483648, %v41_v22  ;;  %vm52_vm3 = vcmp.eq.f32.partialorder %v41_v22, 0.0 }
  0xf9   :  { %v40_v23 = vpop.xlane.xlu1 %39 }
  0xfa   :  { %v132_v24 = vpop.eup %131  ;;  %v42_v25 = vmul.f32 0.032258064, %v40_v23 }
  0xfb   :  { %v44_v26 = vmul.f32 %v132_v24, %v41_v22 }
  0xfc   :  { %133 = vrsqrt.f32 %v42_v25  ;;  %vm62_vm4 = vcmp.eq.f32.partialorder %v42_v25, inf  ;;  %v65_v43 = vand.u32 2147483648, %v42_v25  ;;  %vm64_vm5 = vcmp.eq.f32.partialorder %v42_v25, 0.0 }
  0xfd   :  { %v45_v27 = vmul.f32 %v132_v24, %v44_v26 }
  0xff   :  { %v46_v28 = vmul.f32 0.5, %v45_v27 }
 0x101   :  { %v47_v29 = vsub.f32 1.5, %v46_v28 }
 0x102   :  { %v134_v30 = vpop.eup %133 }
 0x103   :  { %v48_v31 = vmul.f32 %v132_v24, %v47_v29  ;;  %v56_v32 = vmul.f32 %v134_v30, %v42_v25 }
 0x105   :  { %v49_v33 = vmul.f32 %v48_v31, %v41_v22  ;;  %v57_v34 = vmul.f32 %v134_v30, %v56_v32 }
 0x107   :  { %v51_v36 = vsel %vm50_vm2, %v41_v22, %v49_v33  ;;  %v58_v37 = vmul.f32 0.5, %v57_v34 }
 0x108   :  { %v54_v38 = vsel %vm52_vm3, %v53_v35, %v51_v36 }
 0x109   :  { %v67_v39 = vadd.f32 1e-06, %v54_v38  ;;  %v59_v40 = vsub.f32 1.5, %v58_v37 }
 0x10b   :  { %135 = vrcp.f32 %v67_v39  ;;  %v60_v41 = vmul.f32 %v134_v30, %v59_v40  ;;  %v80_v50 = vand.u32 2147483648, %v67_v39  ;;  %v78_v52 = vand.u32 2147483647, %v67_v39 }
 0x10c   :  { %vm74_vm7 = vweird.f32 %v67_v39 }
 0x10d   :  { %v61_v42 = vmul.f32 %v60_v41, %v42_v25  ;;  %v81_v56 = vor.u32 1.1754944e-38, %v80_v50  ;;  %vm79_vm9 = vcmp.eq.f32.partialorder %v78_v52, 8.507059e+37 }
 0x10f   :  { %v63_v44 = vsel %vm62_vm4, %v42_v25, %v61_v42 }
 0x110   :  { %v66_v45 = vsel %vm64_vm5, %v65_v43, %v63_v44 }
 0x111   :  { %v136_v46 = vpop.eup %135  ;;  %v68_v47 = vadd.f32 1e-06, %v66_v45 }
 0x112   :  { %v70_v48 = vmul.f32 %v136_v46, %v67_v39  ;;  %vm75_vm6 = vweird.f32 %v136_v46 }
 0x113   :  { %137 = vrcp.f32 %v68_v47  ;;  %vm76_vm8 = vmor %vm74_vm7, %vm75_vm6  ;;  %v95_v0 = vand.u32 2147483648, %v68_v47  ;;  %v93_v2 = vand.u32 2147483647, %v68_v47  ;;  %vm89_vm11 = vweird.f32 %v68_v47 }
 0x114   :  { %v71_v49 = vsub.f32 1.0, %v70_v48 }
 0x115   :  { %v96_v6 = vor.u32 1.1754944e-38, %v95_v0  ;;  %vm94_vm13 = vcmp.eq.f32.partialorder %v93_v2, 8.507059e+37 }
 0x116   :  { %v72_v51 = vmul.f32 %v136_v46, %v71_v49 }
 0x118   :  { %v73_v54 = vadd.f32 %v136_v46, %v72_v51 }
 0x119   :  { %v138_v55 = vpop.eup %137 }
 0x11a   :  { %v77_v57 = vsel %vm76_vm8, %v136_v46, %v73_v54  ;;  %v85_v58 = vmul.f32 %v138_v55, %v68_v47  ;;  %vm90_vm10 = vweird.f32 %v138_v55 }
 0x11b   :  { %v82_v60 = vsel %vm79_vm9, %v81_v56, %v77_v57  ;;  %vm91_vm12 = vmor %vm89_vm11, %vm90_vm10 }
 0x11c   :  { %v83_v61 = vmul.f32 %v82_v60, %v192_v13  ;;  %v86_v62 = vsub.f32 1.0, %v85_v58 }
 0x11e   :  { %v87_v1 = vmul.f32 %v138_v55, %v86_v62  ;;  %v100_v3 = vmul.f32 %v99_v59, %v83_v61 }
 0x120   :  { %v88_v4 = vadd.f32 %v138_v55, %v87_v1  ;;  %v103_v5 = vadd.f32 %v102_v63, %v100_v3 }
 0x122   :  { %v92_v7 = vsel %vm91_vm12, %v138_v55, %v88_v4  ;;  %105 = vst.msk [vmem:[#allocation2] sm:$0xff] %vm15_vm0, %v103_v5 }
 0x123   :  { %v97_v8 = vsel %vm94_vm13, %v96_v6, %v92_v7 }
 0x124   :  { %v98_v9 = vmul.f32 %v97_v8, %v197_v18 }
 0x126   :  { %v101_v10 = vmul.f32 %v99_v59, %v98_v9 }
 0x128   :  { %v104_v11 = vadd.f32 %v102_v63, %v101_v10 }
 0x12a   :  { %106 = vst.msk [vmem:[#allocation2 + $0x8] sm:$0xff] %vm15_vm0, %v104_v11 }
 0x12b   :  { %119 = dma.vmem_to_hbm [thread:$0]  %s112_s14, 256, %s114_s17, [#allocation3], %s167_s18, %s167_s18, %s168_s19  }
 0x12c   :  { %163 = dma.done.wait [#allocation3], 256  }
 0x12d   :  { %164 = vsyncadd [#allocation3], 4294967040 }
 0x12e   :  { %124 = vsyncpa [#allocation3], 1 }

</bundles_post_ra>
